<compile_context>
chip_gen: v7x
topology: tpu7x:2x2x1
jax: 0.10.0
libtpu: 0.0.40
codegen_flags: <defaults>
</compile_context>

<pallas_src>
import numpy as np
import jax
import jax.numpy as jnp
from jax.experimental import pallas as pl
from jax.experimental.pallas import tpu as pltpu


# ------------------------------ small helpers -------------------------------

def _round_up(x, m):
    return ((x + m - 1) // m) * m


def _pad_vec(v, n, fill=0.0):
    v = jnp.asarray(v, jnp.float32)
    return jnp.pad(v, (0, n - v.shape[0]), constant_values=fill)


def _prep_weight(w_oihw, k_pad, n_pad):
    """(O,I,3,3) torch conv weight -> (9, k_pad, n_pad) bf16, tap t = dy*3+dx."""
    o, i, kh, kw = w_oihw.shape
    w = jnp.transpose(jnp.asarray(w_oihw, jnp.float32), (2, 3, 1, 0))
    w = w.reshape(kh * kw, i, o)
    w = jnp.pad(w, ((0, 0), (0, k_pad - i), (0, n_pad - o)))
    return w.astype(jnp.bfloat16)


def _bn_scale_shift(ssum, ssq, gamma, beta, count, c_pad, eps=1e-5):
    """Fold batch-stats BatchNorm into per-channel scale/shift (tiny XLA math)."""
    s1 = jnp.sum(ssum, axis=(0, 1))
    s2 = jnp.sum(ssq, axis=(0, 1))
    mean = s1 / count
    var = jnp.maximum(s2 / count - mean * mean, 0.0)
    g = _pad_vec(gamma, c_pad, 1.0)
    bt = _pad_vec(beta, c_pad, 0.0)
    scale = g * jax.lax.rsqrt(var + eps)
    shift = bt - mean * scale
    return (scale.reshape(1, c_pad).astype(jnp.float32),
            shift.reshape(1, c_pad).astype(jnp.float32))


# ----------------------------- Pallas kernels -------------------------------

def _conv3x3_wide(pad_ref, w_ref, hp, wp):
    """3x3 conv over the zero-padded image held flat in `pad_ref`.

    pad_ref : ((hp+3)*(wp+2), K) f32 VMEM scratch; image row i, col j sits at
              flat row (i+1)*(wp+2) + (j+1); borders are zero.
    w_ref   : (9, K, N) bf16 tap weights, tap t = dy*3 + dx.
    Returns (hp*(wp+2), N) f32 in the "wide" output layout (output (i, j) at
    row i*(wp+2)+j); rows with j >= wp are garbage and must be masked.
    """
    wc = wp + 2
    r = hp * wc
    acc = None
    for dy in range(3):
        for dx in range(3):
            off = dy * wc + dx
            tap = pad_ref[off:off + r, :].astype(jnp.bfloat16)
            part = jnp.dot(tap, w_ref[dy * 3 + dx],
                           preferred_element_type=jnp.float32)
            acc = part if acc is None else acc + part
    return acc


def _make_pool_conv1_kernel(hp, wp, cin):
    wc = wp + 2

    def kernel(x_ref, w_ref, b_ref, m_ref, y_ref, s1_ref, s2_ref, pad_ref):
        # fused MaxPool2d(2): x_ref block is (1, hp, 2, wp, 2, cin)
        x = x_ref[0]
        v = jnp.maximum(x[:, 0], x[:, 1])          # vertical max  -> (hp, wp, 2, cin)
        pooled = jnp.max(v, axis=2)                # horizontal max -> (hp, wp, cin)

        # build the zero-padded flat image in VMEM
        pad_ref[...] = jnp.zeros_like(pad_ref)
        for i in range(hp):                        # hp small; unrolled row stores
            base = (i + 1) * wc + 1
            pad_ref[base:base + wp, :cin] = pooled[i]

        acc = _conv3x3_wide(pad_ref, w_ref, hp, wp)
        y = (acc + b_ref[...]) * m_ref[...]        # zero the garbage columns
        s1_ref[0] = jnp.sum(y, axis=0, keepdims=True)
        s2_ref[0] = jnp.sum(y * y, axis=0, keepdims=True)
        y_ref[0] = y

    return kernel


def _make_bn_relu_conv2_kernel(hp, wp):
    wc = wp + 2
    r = hp * wc

    def kernel(y1_ref, sc_ref, sh_ref, w_ref, b_ref, m_ref,
               y2_ref, s1_ref, s2_ref, pad_ref):
        m = m_ref[...]
        # BatchNorm (folded scale/shift) + ReLU of the previous conv, in-VMEM
        z = jnp.maximum(y1_ref[0] * sc_ref[...] + sh_ref[...], 0.0) * m

        # wide layout == padded layout shifted by (wc+1) rows, so a single
        # contiguous store rebuilds the zero-padded image.
        pad_ref[...] = jnp.zeros_like(pad_ref)
        pad_ref[wc + 1:wc + 1 + r, :] = z

        acc = _conv3x3_wide(pad_ref, w_ref, hp, wp)
        y = (acc + b_ref[...]) * m
        s1_ref[0] = jnp.sum(y, axis=0, keepdims=True)
        s2_ref[0] = jnp.sum(y * y, axis=0, keepdims=True)
        y2_ref[0] = y

    return kernel


def _bn_relu_kernel(y_ref, sc_ref, sh_ref, o_ref):
    o_ref[0] = jnp.maximum(y_ref[0] * sc_ref[...] + sh_ref[...], 0.0)


# ------------------------------ pallas_call glue -----------------------------

_PARALLEL = pltpu.CompilerParams(dimension_semantics=("parallel",))


def _pool_conv1(x6, w1, b1, mask, hp, wp, cin):
    bsz = x6.shape[0]
    wc = wp + 2
    r = hp * wc
    cin_p, cmid_p = w1.shape[1], w1.shape[2]
    kernel = _make_pool_conv1_kernel(hp, wp, cin)
    return pl.pallas_call(
        kernel,
        grid=(bsz,),
        in_specs=[
            pl.BlockSpec((1, hp, 2, wp, 2, cin), lambda i: (i, 0, 0, 0, 0, 0)),
            pl.BlockSpec((9, cin_p, cmid_p), lambda i: (0, 0, 0)),
            pl.BlockSpec((1, cmid_p), lambda i: (0, 0)),
            pl.BlockSpec((r, 1), lambda i: (0, 0)),
        ],
        out_specs=(
            pl.BlockSpec((1, r, cmid_p), lambda i: (i, 0, 0)),
            pl.BlockSpec((1, 1, cmid_p), lambda i: (i, 0, 0)),
            pl.BlockSpec((1, 1, cmid_p), lambda i: (i, 0, 0)),
        ),
        out_shape=(
            jax.ShapeDtypeStruct((bsz, r, cmid_p), jnp.float32),
            jax.ShapeDtypeStruct((bsz, 1, cmid_p), jnp.float32),
            jax.ShapeDtypeStruct((bsz, 1, cmid_p), jnp.float32),
        ),
        scratch_shapes=[pltpu.VMEM(((hp + 3) * wc, cin_p), jnp.float32)],
        compiler_params=_PARALLEL,
    )(x6, w1, b1, mask)


def _bn_conv2(y1, scale1, shift1, w2, b2, mask, hp, wp):
    bsz, r, cmid_p = y1.shape
    cout_p = w2.shape[2]
    kernel = _make_bn_relu_conv2_kernel(hp, wp)
    return pl.pallas_call(
        kernel,
        grid=(bsz,),
        in_specs=[
            pl.BlockSpec((1, r, cmid_p), lambda i: (i, 0, 0)),
            pl.BlockSpec((1, cmid_p), lambda i: (0, 0)),
            pl.BlockSpec((1, cmid_p), lambda i: (0, 0)),
            pl.BlockSpec((9, cmid_p, cout_p), lambda i: (0, 0, 0)),
            pl.BlockSpec((1, cout_p), lambda i: (0, 0)),
            pl.BlockSpec((r, 1), lambda i: (0, 0)),
        ],
        out_specs=(
            pl.BlockSpec((1, r, cout_p), lambda i: (i, 0, 0)),
            pl.BlockSpec((1, 1, cout_p), lambda i: (i, 0, 0)),
            pl.BlockSpec((1, 1, cout_p), lambda i: (i, 0, 0)),
        ),
        out_shape=(
            jax.ShapeDtypeStruct((bsz, r, cout_p), jnp.float32),
            jax.ShapeDtypeStruct((bsz, 1, cout_p), jnp.float32),
            jax.ShapeDtypeStruct((bsz, 1, cout_p), jnp.float32),
        ),
        scratch_shapes=[pltpu.VMEM(((hp + 3) * (wp + 2), cmid_p), jnp.float32)],
        compiler_params=_PARALLEL,
    )(y1, scale1, shift1, w2, b2, mask)


def _bn_relu(y2, scale2, shift2):
    bsz, r, c = y2.shape
    return pl.pallas_call(
        _bn_relu_kernel,
        grid=(bsz,),
        in_specs=[
            pl.BlockSpec((1, r, c), lambda i: (i, 0, 0)),
            pl.BlockSpec((1, c), lambda i: (0, 0)),
            pl.BlockSpec((1, c), lambda i: (0, 0)),
        ],
        out_specs=pl.BlockSpec((1, r, c), lambda i: (i, 0, 0)),
        out_shape=jax.ShapeDtypeStruct((bsz, r, c), jnp.float32),
        compiler_params=_PARALLEL,
    )(y2, scale2, shift2)


def down_forward(x_nchw, params, eps=1e-5):
    """Pallas implementation of Down.forward (NCHW in, NCHW out)."""
    x = jnp.transpose(x_nchw, (0, 2, 3, 1)).astype(jnp.float32)   # NCHW -> NHWC
    bsz, h, w, cin = x.shape
    hp, wp = h // 2, w // 2
    x = x[:, :2 * hp, :2 * wp, :]          # MaxPool2d(2) floor-mode crop
    wc = wp + 2
    r = hp * wc

    cmid = params["w1"].shape[0]
    cout = params["w2"].shape[0]
    cin_p = _round_up(cin, 8)
    cmid_p = _round_up(cmid, 128)
    cout_p = _round_up(cout, 128)

    # free (row-major) reshape exposing the 2x2 pooling window to the kernel
    x6 = x.reshape(bsz, hp, 2, wp, 2, cin)

    w1 = _prep_weight(params["w1"], cin_p, cmid_p)
    b1 = _pad_vec(params["b1"], cmid_p).reshape(1, cmid_p)
    w2 = _prep_weight(params["w2"], cmid_p, cout_p)
    b2 = _pad_vec(params["b2"], cout_p).reshape(1, cout_p)

    # 0/1 mask of valid columns in the wide (Wp+2) row layout
    mask = jnp.asarray((np.arange(r) % wc < wp).astype(np.float32).reshape(r, 1))

    count = bsz * hp * wp

    y1, s1a, s1b = _pool_conv1(x6, w1, b1, mask, hp, wp, cin)
    scale1, shift1 = _bn_scale_shift(s1a, s1b, params["g1"], params["beta1"],
                                     count, cmid_p, eps)

    y2, s2a, s2b = _bn_conv2(y1, scale1, shift1, w2, b2, mask, hp, wp)
    scale2, shift2 = _bn_scale_shift(s2a, s2b, params["g2"], params["beta2"],
                                     count, cout_p, eps)

    out_wide = _bn_relu(y2, scale2, shift2)                 # (B, R, Cout_p)
    out = out_wide.reshape(bsz, hp, wc, cout_p)[:, :, :wp, :cout]
    return jnp.transpose(out, (0, 3, 1, 2))                 # NHWC -> NCHW


# --------------------------- pure-JAX reference ------------------------------

def _ref_conv_bn_relu(x_nchw, w_oihw, b, g, beta):
    y = jax.lax.conv_general_dilated(
        x_nchw, w_oihw, window_strides=(1, 1), padding=((1, 1), (1, 1)),
        dimension_numbers=("NCHW", "OIHW", "NCHW"),
        precision=jax.lax.Precision.HIGHEST)
    y = y + b.reshape(1, -1, 1, 1)
    mean = jnp.mean(y, axis=(0, 2, 3), keepdims=True)
    var = jnp.mean((y - mean) ** 2, axis=(0, 2, 3), keepdims=True)
    y = (y - mean) / jnp.sqrt(var + 1e-5)
    y = y * g.reshape(1, -1, 1, 1) + beta.reshape(1, -1, 1, 1)
    return jnp.maximum(y, 0.0)


def ref_forward(x_nchw, params):
    p = jax.lax.reduce_window(x_nchw, -jnp.inf, jax.lax.max,
                              (1, 1, 2, 2), (1, 1, 2, 2), "VALID")
    y = _ref_conv_bn_relu(p, params["w1"], params["b1"], params["g1"], params["beta1"])
    y = _ref_conv_bn_relu(y, params["w2"], params["b2"], params["g2"], params["beta2"])
    return y


# ----------------------------------- main ------------------------------------

if __name__ == "__main__":
    B, Cin, H, W = 2, 4, 16, 16
    Cout = 8
    Cmid = Cout  # DoubleConv default: mid_channels = out_channels

    key = jax.random.PRNGKey(0)
    ks = jax.random.split(key, 9)

    x = jax.random.normal(ks[0], (B, Cin, H, W), jnp.float32)

    params = {
        "w1": jax.random.normal(ks[1], (Cmid, Cin, 3, 3), jnp.float32)
              / jnp.sqrt(9.0 * Cin),
        "b1": 0.1 * jax.random.normal(ks[2], (Cmid,), jnp.float32),
        "g1": 1.0 + 0.1 * jax.random.normal(ks[3], (Cmid,), jnp.float32),
        "beta1": 0.1 * jax.random.normal(ks[4], (Cmid,), jnp.float32),
        "w2": jax.random.normal(ks[5], (Cout, Cmid, 3, 3), jnp.float32)
              / jnp.sqrt(9.0 * Cmid),
        "b2": 0.1 * jax.random.normal(ks[6], (Cout,), jnp.float32),
        "g2": 1.0 + 0.1 * jax.random.normal(ks[7], (Cout,), jnp.float32),
        "beta2": 0.1 * jax.random.normal(ks[8], (Cout,), jnp.float32),
    }

    down_fn = jax.jit(down_forward)
    out = jax.block_until_ready(down_fn(x, params))
    assert out.shape == (B, Cout, H // 2, W // 2), out.shape

    ref = jax.block_until_ready(ref_forward(x, params))
    max_err = float(jnp.max(jnp.abs(out - ref)))
    finite = bool(jnp.all(jnp.isfinite(out)))

    # bf16 MXU inputs (f32 accumulation) vs an all-f32 HIGHEST-precision reference
    if finite and max_err < 5e-2:
        print("KERNEL_OK")
    else:
        raise SystemExit(f"mismatch: max_err={max_err}, finite={finite}")
</pallas_src>

<mosaic_0001>
module attributes {stable_mosaic.version = 11 : i64} {
  func.func @_bn_relu_kernel(%arg0: i32, %arg1: memref<1x80x128xf32, #tpu.memory_space<vmem>>, %arg2: memref<1x128xf32, #tpu.memory_space<vmem>>, %arg3: memref<1x128xf32, #tpu.memory_space<vmem>>, %arg4: memref<1x80x128xf32, #tpu.memory_space<vmem>>) attributes {dimension_semantics = [#tpu.dimension_semantics<parallel>], iteration_bounds = array<i64: 2>, scalar_prefetch = 0 : i64, scratch_operands = 0 : i64, tpu.core_type = #tpu.core_type<tc>, window_params = [{transform_indices = @transform_0, window_bounds = array<i64: 1, 80, 128>}, {pipeline_mode = #tpu.pipeline_mode<synchronous>, transform_indices = @transform_1, window_bounds = array<i64: 1, 128>}, {pipeline_mode = #tpu.pipeline_mode<synchronous>, transform_indices = @transform_2, window_bounds = array<i64: 1, 128>}, {transform_indices = @transform_3, window_bounds = array<i64: 1, 80, 128>}]} {
    %c0 = arith.constant 0 : index
    %c0_0 = arith.constant 0 : index
    %c0_1 = arith.constant 0 : index
    %0 = vector.load %arg1[%c0, %c0_0, %c0_1] : memref<1x80x128xf32, #tpu.memory_space<vmem>>, vector<1x80x128xf32>
    %1 = vector.shape_cast %0 : vector<1x80x128xf32> to vector<80x128xf32>
    %c0_2 = arith.constant 0 : index
    %c0_3 = arith.constant 0 : index
    %2 = vector.load %arg2[%c0_2, %c0_3] : memref<1x128xf32, #tpu.memory_space<vmem>>, vector<1x128xf32>
    %3 = vector.broadcast %2 : vector<1x128xf32> to vector<80x128xf32>
    %4 = arith.mulf %1, %3 : vector<80x128xf32>
    %c0_4 = arith.constant 0 : index
    %c0_5 = arith.constant 0 : index
    %5 = vector.load %arg3[%c0_4, %c0_5] : memref<1x128xf32, #tpu.memory_space<vmem>>, vector<1x128xf32>
    %6 = vector.broadcast %5 : vector<1x128xf32> to vector<80x128xf32>
    %7 = arith.addf %4, %6 : vector<80x128xf32>
    %cst = arith.constant 0.000000e+00 : f32
    %8 = vector.broadcast %cst : f32 to vector<80x128xf32>
    %9 = arith.maximumf %7, %8 : vector<80x128xf32>
    %c0_6 = arith.constant 0 : index
    %c0_7 = arith.constant 0 : index
    %c0_8 = arith.constant 0 : index
    %10 = vector.load %arg4[%c0_6, %c0_7, %c0_8] : memref<1x80x128xf32, #tpu.memory_space<vmem>>, vector<1x80x128xf32>
    %11 = vector.shape_cast %10 : vector<1x80x128xf32> to vector<80x128xf32>
    %12 = vector.shape_cast %9 : vector<80x128xf32> to vector<1x80x128xf32>
    tpu.vector_store %arg4[%c0_6, %c0_7, %c0_8], %12 {strides = array<i32>} : memref<1x80x128xf32, #tpu.memory_space<vmem>>, vector<1x80x128xf32>,
    return
  }
  func.func @transform_0(%arg0: i32) -> (i32, i32, i32) {
    %c0_i32 = arith.constant 0 : i32
    %c0_i32_0 = arith.constant 0 : i32
    %c0_i32_1 = arith.constant 0 : i32
    return %arg0, %c0_i32, %c0_i32_0 : i32, i32, i32
  }
  func.func @transform_1(%arg0: i32) -> (i32, i32) {
    %c0_i32 = arith.constant 0 : i32
    %c0_i32_0 = arith.constant 0 : i32
    %c0_i32_1 = arith.constant 0 : i32
    return %c0_i32, %c0_i32_0 : i32, i32
  }
  func.func @transform_2(%arg0: i32) -> (i32, i32) {
    %c0_i32 = arith.constant 0 : i32
    %c0_i32_0 = arith.constant 0 : i32
    %c0_i32_1 = arith.constant 0 : i32
    return %c0_i32, %c0_i32_0 : i32, i32
  }
  func.func @transform_3(%arg0: i32) -> (i32, i32, i32) {
    %c0_i32 = arith.constant 0 : i32
    %c0_i32_0 = arith.constant 0 : i32
    %c0_i32_1 = arith.constant 0 : i32
    return %arg0, %c0_i32, %c0_i32_0 : i32, i32, i32
  }
}

module attributes {stable_mosaic.version = 11 : i64} {
  func.func @kernel(%arg0: i32, %arg1: memref<1x8x2x8x2x4xf32, #tpu.memory_space<vmem>>, %arg2: memref<9x8x128xbf16, #tpu.memory_space<vmem>>, %arg3: memref<1x128xf32, #tpu.memory_space<vmem>>, %arg4: memref<80x1xf32, #tpu.memory_space<vmem>>, %arg5: memref<1x80x128xf32, #tpu.memory_space<vmem>>, %arg6: memref<1x1x128xf32, #tpu.memory_space<vmem>>, %arg7: memref<1x1x128xf32, #tpu.memory_space<vmem>>, %arg8: memref<110x8xf32, #tpu.memory_space<vmem>>) attributes {dimension_semantics = [#tpu.dimension_semantics<parallel>], iteration_bounds = array<i64: 2>, scalar_prefetch = 0 : i64, scratch_operands = 1 : i64, tpu.core_type = #tpu.core_type<tc>, window_params = [{transform_indices = @transform_0, window_bounds = array<i64: 1, 8, 2, 8, 2, 4>}, {pipeline_mode = #tpu.pipeline_mode<synchronous>, transform_indices = @transform_1, window_bounds = array<i64: 9, 8, 128>}, {pipeline_mode = #tpu.pipeline_mode<synchronous>, transform_indices = @transform_2, window_bounds = array<i64: 1, 128>}, {pipeline_mode = #tpu.pipeline_mode<synchronous>, transform_indices = @transform_3, window_bounds = array<i64: 80, 1>}, {transform_indices = @transform_4, window_bounds = array<i64: 1, 80, 128>}, {transform_indices = @transform_5, window_bounds = array<i64: 1, 1, 128>}, {transform_indices = @transform_6, window_bounds = array<i64: 1, 1, 128>}]} {
    %c0 = arith.constant 0 : index
    %c0_0 = arith.constant 0 : index
    %c0_1 = arith.constant 0 : index
    %c0_2 = arith.constant 0 : index
    %c0_3 = arith.constant 0 : index
    %c0_4 = arith.constant 0 : index
    %0 = vector.load %arg1[%c0, %c0_0, %c0_1, %c0_2, %c0_3, %c0_4] : memref<1x8x2x8x2x4xf32, #tpu.memory_space<vmem>>, vector<1x8x2x8x2x4xf32>
    %1 = vector.shape_cast %0 : vector<1x8x2x8x2x4xf32> to vector<8x2x8x2x4xf32>
    %2 = vector.extract_strided_slice %1 {offsets = [0, 0, 0, 0, 0], sizes = [8, 1, 8, 2, 4], strides = [1, 1, 1, 1, 1]} : vector<8x2x8x2x4xf32> to vector<8x1x8x2x4xf32>
    %3 = vector.shape_cast %2 : vector<8x1x8x2x4xf32> to vector<8x8x2x4xf32>
    %4 = vector.extract_strided_slice %1 {offsets = [0, 1, 0, 0, 0], sizes = [8, 1, 8, 2, 4], strides = [1, 1, 1, 1, 1]} : vector<8x2x8x2x4xf32> to vector<8x1x8x2x4xf32>
    %5 = vector.shape_cast %4 : vector<8x1x8x2x4xf32> to vector<8x8x2x4xf32>
    %6 = arith.maximumf %3, %5 : vector<8x8x2x4xf32>
    %cst = arith.constant dense<0xFF800000> : vector<8x8x4xf32>
    %7 = vector.multi_reduction <maximumf>, %6, %cst [2] : vector<8x8x2x4xf32> to vector<8x8x4xf32>
    %cst_5 = arith.constant 0.000000e+00 : f32
    %8 = vector.broadcast %cst_5 : f32 to vector<110x8xf32>
    %c0_6 = arith.constant 0 : index
    %c0_7 = arith.constant 0 : index
    %9 = vector.load %arg8[%c0_6, %c0_7] : memref<110x8xf32, #tpu.memory_space<vmem>>, vector<110x8xf32>
    tpu.vector_store %arg8[%c0_6, %c0_7], %8 {strides = array<i32>} : memref<110x8xf32, #tpu.memory_space<vmem>>, vector<110x8xf32>,
    %10 = vector.extract_strided_slice %7 {offsets = [0, 0, 0], sizes = [1, 8, 4], strides = [1, 1, 1]} : vector<8x8x4xf32> to vector<1x8x4xf32>
    %11 = vector.shape_cast %10 : vector<1x8x4xf32> to vector<8x4xf32>
    %c11 = arith.constant 11 : index
    %c0_8 = arith.constant 0 : index
    %12 = vector.load %arg8[%c11, %c0_8] : memref<110x8xf32, #tpu.memory_space<vmem>>, vector<8x4xf32>
    tpu.vector_store %arg8[%c11, %c0_8], %11 {strides = array<i32>} : memref<110x8xf32, #tpu.memory_space<vmem>>, vector<8x4xf32>,
    %13 = vector.extract_strided_slice %7 {offsets = [1, 0, 0], sizes = [1, 8, 4], strides = [1, 1, 1]} : vector<8x8x4xf32> to vector<1x8x4xf32>
    %14 = vector.shape_cast %13 : vector<1x8x4xf32> to vector<8x4xf32>
    %c21 = arith.constant 21 : index
    %c0_9 = arith.constant 0 : index
    %15 = vector.load %arg8[%c21, %c0_9] : memref<110x8xf32, #tpu.memory_space<vmem>>, vector<8x4xf32>
    tpu.vector_store %arg8[%c21, %c0_9], %14 {strides = array<i32>} : memref<110x8xf32, #tpu.memory_space<vmem>>, vector<8x4xf32>,
    %16 = vector.extract_strided_slice %7 {offsets = [2, 0, 0], sizes = [1, 8, 4], strides = [1, 1, 1]} : vector<8x8x4xf32> to vector<1x8x4xf32>
    %17 = vector.shape_cast %16 : vector<1x8x4xf32> to vector<8x4xf32>
    %c31 = arith.constant 31 : index
    %c0_10 = arith.constant 0 : index
    %18 = vector.load %arg8[%c31, %c0_10] : memref<110x8xf32, #tpu.memory_space<vmem>>, vector<8x4xf32>
    tpu.vector_store %arg8[%c31, %c0_10], %17 {strides = array<i32>} : memref<110x8xf32, #tpu.memory_space<vmem>>, vector<8x4xf32>,
    %19 = vector.extract_strided_slice %7 {offsets = [3, 0, 0], sizes = [1, 8, 4], strides = [1, 1, 1]} : vector<8x8x4xf32> to vector<1x8x4xf32>
    %20 = vector.shape_cast %19 : vector<1x8x4xf32> to vector<8x4xf32>
    %c41 = arith.constant 41 : index
    %c0_11 = arith.constant 0 : index
    %21 = vector.load %arg8[%c41, %c0_11] : memref<110x8xf32, #tpu.memory_space<vmem>>, vector<8x4xf32>
    tpu.vector_store %arg8[%c41, %c0_11], %20 {strides = array<i32>} : memref<110x8xf32, #tpu.memory_space<vmem>>, vector<8x4xf32>,
    %22 = vector.extract_strided_slice %7 {offsets = [4, 0, 0], sizes = [1, 8, 4], strides = [1, 1, 1]} : vector<8x8x4xf32> to vector<1x8x4xf32>
    %23 = vector.shape_cast %22 : vector<1x8x4xf32> to vector<8x4xf32>
    %c51 = arith.constant 51 : index
    %c0_12 = arith.constant 0 : index
    %24 = vector.load %arg8[%c51, %c0_12] : memref<110x8xf32, #tpu.memory_space<vmem>>, vector<8x4xf32>
    tpu.vector_store %arg8[%c51, %c0_12], %23 {strides = array<i32>} : memref<110x8xf32, #tpu.memory_space<vmem>>, vector<8x4xf32>,
    %25 = vector.extract_strided_slice %7 {offsets = [5, 0, 0], sizes = [1, 8, 4], strides = [1, 1, 1]} : vector<8x8x4xf32> to vector<1x8x4xf32>
    %26 = vector.shape_cast %25 : vector<1x8x4xf32> to vector<8x4xf32>
    %c61 = arith.constant 61 : index
    %c0_13 = arith.constant 0 : index
    %27 = vector.load %arg8[%c61, %c0_13] : memref<110x8xf32, #tpu.memory_space<vmem>>, vector<8x4xf32>
    tpu.vector_store %arg8[%c61, %c0_13], %26 {strides = array<i32>} : memref<110x8xf32, #tpu.memory_space<vmem>>, vector<8x4xf32>,
    %28 = vector.extract_strided_slice %7 {offsets = [6, 0, 0], sizes = [1, 8, 4], strides = [1, 1, 1]} : vector<8x8x4xf32> to vector<1x8x4xf32>
    %29 = vector.shape_cast %28 : vector<1x8x4xf32> to vector<8x4xf32>
    %c71 = arith.constant 71 : index
    %c0_14 = arith.constant 0 : index
    %30 = vector.load %arg8[%c71, %c0_14] : memref<110x8xf32, #tpu.memory_space<vmem>>, vector<8x4xf32>
    tpu.vector_store %arg8[%c71, %c0_14], %29 {strides = array<i32>} : memref<110x8xf32, #tpu.memory_space<vmem>>, vector<8x4xf32>,
    %31 = vector.extract_strided_slice %7 {offsets = [7, 0, 0], sizes = [1, 8, 4], strides = [1, 1, 1]} : vector<8x8x4xf32> to vector<1x8x4xf32>
    %32 = vector.shape_cast %31 : vector<1x8x4xf32> to vector<8x4xf32>
    %c81 = arith.constant 81 : index
    %c0_15 = arith.constant 0 : index
    %33 = vector.load %arg8[%c81, %c0_15] : memref<110x8xf32, #tpu.memory_space<vmem>>, vector<8x4xf32>
    tpu.vector_store %arg8[%c81, %c0_15], %32 {strides = array<i32>} : memref<110x8xf32, #tpu.memory_space<vmem>>, vector<8x4xf32>,
    %c0_16 = arith.constant 0 : index
    %c0_17 = arith.constant 0 : index
    %34 = vector.load %arg8[%c0_16, %c0_17] : memref<110x8xf32, #tpu.memory_space<vmem>>, vector<80x8xf32>
    %35 = arith.truncf %34 : vector<80x8xf32> to vector<80x8xbf16>
    %c0_18 = arith.constant 0 : index
    %c0_19 = arith.constant 0 : index
    %c0_20 = arith.constant 0 : index
    %36 = vector.load %arg2[%c0_18, %c0_19, %c0_20] : memref<9x8x128xbf16, #tpu.memory_space<vmem>>, vector<1x8x128xbf16>
    %37 = vector.shape_cast %36 : vector<1x8x128xbf16> to vector<8x128xbf16>
    %cst_21 = arith.constant dense<0.000000e+00> : vector<80x128xf32>
    %38 = tpu.matmul %35, %37, %cst_21 {dimension_numbers = #tpu.dot_dimension_numbers<[1], [0], [0], [1], [0, 0, 1, 1], [], []>} : vector<80x8xbf16>, vector<8x128xbf16>, vector<80x128xf32> -> vector<80x128xf32>
    %c1 = arith.constant 1 : index
    %c0_22 = arith.constant 0 : index
    %39 = vector.load %arg8[%c1, %c0_22] : memref<110x8xf32, #tpu.memory_space<vmem>>, vector<80x8xf32>
    %40 = arith.truncf %39 : vector<80x8xf32> to vector<80x8xbf16>
    %c1_23 = arith.constant 1 : index
    %c0_24 = arith.constant 0 : index
    %c0_25 = arith.constant 0 : index
    %41 = vector.load %arg2[%c1_23, %c0_24, %c0_25] : memref<9x8x128xbf16, #tpu.memory_space<vmem>>, vector<1x8x128xbf16>
    %42 = vector.shape_cast %41 : vector<1x8x128xbf16> to vector<8x128xbf16>
    %cst_26 = arith.constant dense<0.000000e+00> : vector<80x128xf32>
    %43 = tpu.matmul %40, %42, %cst_26 {dimension_numbers = #tpu.dot_dimension_numbers<[1], [0], [0], [1], [0, 0, 1, 1], [], []>} : vector<80x8xbf16>, vector<8x128xbf16>, vector<80x128xf32> -> vector<80x128xf32>
    %44 = arith.addf %38, %43 : vector<80x128xf32>
    %c2 = arith.constant 2 : index
    %c0_27 = arith.constant 0 : index
    %45 = vector.load %arg8[%c2, %c0_27] : memref<110x8xf32, #tpu.memory_space<vmem>>, vector<80x8xf32>
    %46 = arith.truncf %45 : vector<80x8xf32> to vector<80x8xbf16>
    %c2_28 = arith.constant 2 : index
    %c0_29 = arith.constant 0 : index
    %c0_30 = arith.constant 0 : index
    %47 = vector.load %arg2[%c2_28, %c0_29, %c0_30] : memref<9x8x128xbf16, #tpu.memory_space<vmem>>, vector<1x8x128xbf16>
    %48 = vector.shape_cast %47 : vector<1x8x128xbf16> to vector<8x128xbf16>
    %cst_31 = arith.constant dense<0.000000e+00> : vector<80x128xf32>
    %49 = tpu.matmul %46, %48, %cst_31 {dimension_numbers = #tpu.dot_dimension_numbers<[1], [0], [0], [1], [0, 0, 1, 1], [], []>} : vector<80x8xbf16>, vector<8x128xbf16>, vector<80x128xf32> -> vector<80x128xf32>
    %50 = arith.addf %44, %49 : vector<80x128xf32>
    %c10 = arith.constant 10 : index
    %c0_32 = arith.constant 0 : index
    %51 = vector.load %arg8[%c10, %c0_32] : memref<110x8xf32, #tpu.memory_space<vmem>>, vector<80x8xf32>
    %52 = arith.truncf %51 : vector<80x8xf32> to vector<80x8xbf16>
    %c3 = arith.constant 3 : index
    %c0_33 = arith.constant 0 : index
    %c0_34 = arith.constant 0 : index
    %53 = vector.load %arg2[%c3, %c0_33, %c0_34] : memref<9x8x128xbf16, #tpu.memory_space<vmem>>, vector<1x8x128xbf16>
    %54 = vector.shape_cast %53 : vector<1x8x128xbf16> to vector<8x128xbf16>
    %cst_35 = arith.constant dense<0.000000e+00> : vector<80x128xf32>
    %55 = tpu.matmul %52, %54, %cst_35 {dimension_numbers = #tpu.dot_dimension_numbers<[1], [0], [0], [1], [0, 0, 1, 1], [], []>} : vector<80x8xbf16>, vector<8x128xbf16>, vector<80x128xf32> -> vector<80x128xf32>
    %56 = arith.addf %50, %55 : vector<80x128xf32>
    %c11_36 = arith.constant 11 : index
    %c0_37 = arith.constant 0 : index
    %57 = vector.load %arg8[%c11_36, %c0_37] : memref<110x8xf32, #tpu.memory_space<vmem>>, vector<80x8xf32>
    %58 = arith.truncf %57 : vector<80x8xf32> to vector<80x8xbf16>
    %c4 = arith.constant 4 : index
    %c0_38 = arith.constant 0 : index
    %c0_39 = arith.constant 0 : index
    %59 = vector.load %arg2[%c4, %c0_38, %c0_39] : memref<9x8x128xbf16, #tpu.memory_space<vmem>>, vector<1x8x128xbf16>
    %60 = vector.shape_cast %59 : vector<1x8x128xbf16> to vector<8x128xbf16>
    %cst_40 = arith.constant dense<0.000000e+00> : vector<80x128xf32>
    %61 = tpu.matmul %58, %60, %cst_40 {dimension_numbers = #tpu.dot_dimension_numbers<[1], [0], [0], [1], [0, 0, 1, 1], [], []>} : vector<80x8xbf16>, vector<8x128xbf16>, vector<80x128xf32> -> vector<80x128xf32>
    %62 = arith.addf %56, %61 : vector<80x128xf32>
    %c12 = arith.constant 12 : index
    %c0_41 = arith.constant 0 : index
    %63 = vector.load %arg8[%c12, %c0_41] : memref<110x8xf32, #tpu.memory_space<vmem>>, vector<80x8xf32>
    %64 = arith.truncf %63 : vector<80x8xf32> to vector<80x8xbf16>
    %c5 = arith.constant 5 : index
    %c0_42 = arith.constant 0 : index
    %c0_43 = arith.constant 0 : index
    %65 = vector.load %arg2[%c5, %c0_42, %c0_43] : memref<9x8x128xbf16, #tpu.memory_space<vmem>>, vector<1x8x128xbf16>
    %66 = vector.shape_cast %65 : vector<1x8x128xbf16> to vector<8x128xbf16>
    %cst_44 = arith.constant dense<0.000000e+00> : vector<80x128xf32>
    %67 = tpu.matmul %64, %66, %cst_44 {dimension_numbers = #tpu.dot_dimension_numbers<[1], [0], [0], [1], [0, 0, 1, 1], [], []>} : vector<80x8xbf16>, vector<8x128xbf16>, vector<80x128xf32> -> vector<80x128xf32>
    %68 = arith.addf %62, %67 : vector<80x128xf32>
    %c20 = arith.constant 20 : index
    %c0_45 = arith.constant 0 : index
    %69 = vector.load %arg8[%c20, %c0_45] : memref<110x8xf32, #tpu.memory_space<vmem>>, vector<80x8xf32>
    %70 = arith.truncf %69 : vector<80x8xf32> to vector<80x8xbf16>
    %c6 = arith.constant 6 : index
    %c0_46 = arith.constant 0 : index
    %c0_47 = arith.constant 0 : index
    %71 = vector.load %arg2[%c6, %c0_46, %c0_47] : memref<9x8x128xbf16, #tpu.memory_space<vmem>>, vector<1x8x128xbf16>
    %72 = vector.shape_cast %71 : vector<1x8x128xbf16> to vector<8x128xbf16>
    %cst_48 = arith.constant dense<0.000000e+00> : vector<80x128xf32>
    %73 = tpu.matmul %70, %72, %cst_48 {dimension_numbers = #tpu.dot_dimension_numbers<[1], [0], [0], [1], [0, 0, 1, 1], [], []>} : vector<80x8xbf16>, vector<8x128xbf16>, vector<80x128xf32> -> vector<80x128xf32>
    %74 = arith.addf %68, %73 : vector<80x128xf32>
    %c21_49 = arith.constant 21 : index
    %c0_50 = arith.constant 0 : index
    %75 = vector.load %arg8[%c21_49, %c0_50] : memref<110x8xf32, #tpu.memory_space<vmem>>, vector<80x8xf32>
    %76 = arith.truncf %75 : vector<80x8xf32> to vector<80x8xbf16>
    %c7 = arith.constant 7 : index
    %c0_51 = arith.constant 0 : index
    %c0_52 = arith.constant 0 : index
    %77 = vector.load %arg2[%c7, %c0_51, %c0_52] : memref<9x8x128xbf16, #tpu.memory_space<vmem>>, vector<1x8x128xbf16>
    %78 = vector.shape_cast %77 : vector<1x8x128xbf16> to vector<8x128xbf16>
    %cst_53 = arith.constant dense<0.000000e+00> : vector<80x128xf32>
    %79 = tpu.matmul %76, %78, %cst_53 {dimension_numbers = #tpu.dot_dimension_numbers<[1], [0], [0], [1], [0, 0, 1, 1], [], []>} : vector<80x8xbf16>, vector<8x128xbf16>, vector<80x128xf32> -> vector<80x128xf32>
    %80 = arith.addf %74, %79 : vector<80x128xf32>
    %c22 = arith.constant 22 : index
    %c0_54 = arith.constant 0 : index
    %81 = vector.load %arg8[%c22, %c0_54] : memref<110x8xf32, #tpu.memory_space<vmem>>, vector<80x8xf32>
    %82 = arith.truncf %81 : vector<80x8xf32> to vector<80x8xbf16>
    %c8 = arith.constant 8 : index
    %c0_55 = arith.constant 0 : index
    %c0_56 = arith.constant 0 : index
    %83 = vector.load %arg2[%c8, %c0_55, %c0_56] : memref<9x8x128xbf16, #tpu.memory_space<vmem>>, vector<1x8x128xbf16>
    %84 = vector.shape_cast %83 : vector<1x8x128xbf16> to vector<8x128xbf16>
    %cst_57 = arith.constant dense<0.000000e+00> : vector<80x128xf32>
    %85 = tpu.matmul %82, %84, %cst_57 {dimension_numbers = #tpu.dot_dimension_numbers<[1], [0], [0], [1], [0, 0, 1, 1], [], []>} : vector<80x8xbf16>, vector<8x128xbf16>, vector<80x128xf32> -> vector<80x128xf32>
    %86 = arith.addf %80, %85 : vector<80x128xf32>
    %c0_58 = arith.constant 0 : index
    %c0_59 = arith.constant 0 : index
    %87 = vector.load %arg3[%c0_58, %c0_59] : memref<1x128xf32, #tpu.memory_space<vmem>>, vector<1x128xf32>
    %88 = vector.broadcast %87 : vector<1x128xf32> to vector<80x128xf32>
    %89 = arith.addf %86, %88 : vector<80x128xf32>
    %c0_60 = arith.constant 0 : index
    %c0_61 = arith.constant 0 : index
    %90 = vector.load %arg4[%c0_60, %c0_61] : memref<80x1xf32, #tpu.memory_space<vmem>>, vector<80x1xf32>
    %91 = vector.broadcast %90 : vector<80x1xf32> to vector<80x128xf32>
    %92 = arith.mulf %89, %91 : vector<80x128xf32>
    %cst_62 = arith.constant dense<0.000000e+00> : vector<128xf32>
    %93 = vector.multi_reduction <add>, %92, %cst_62 [0] : vector<80x128xf32> to vector<128xf32>
    %94 = vector.shape_cast %93 : vector<128xf32> to vector<1x128xf32>
    %c0_63 = arith.constant 0 : index
    %c0_64 = arith.constant 0 : index
    %c0_65 = arith.constant 0 : index
    %95 = vector.load %arg6[%c0_63, %c0_64, %c0_65] : memref<1x1x128xf32, #tpu.memory_space<vmem>>, vector<1x1x128xf32>
    %96 = vector.shape_cast %95 : vector<1x1x128xf32> to vector<1x128xf32>
    %97 = vector.shape_cast %94 : vector<1x128xf32> to vector<1x1x128xf32>
    tpu.vector_store %arg6[%c0_63, %c0_64, %c0_65], %97 {strides = array<i32>} : memref<1x1x128xf32, #tpu.memory_space<vmem>>, vector<1x1x128xf32>,
    %98 = arith.mulf %92, %92 : vector<80x128xf32>
    %cst_66 = arith.constant dense<0.000000e+00> : vector<128xf32>
    %99 = vector.multi_reduction <add>, %98, %cst_66 [0] : vector<80x128xf32> to vector<128xf32>
    %100 = vector.shape_cast %99 : vector<128xf32> to vector<1x128xf32>
    %c0_67 = arith.constant 0 : index
    %c0_68 = arith.constant 0 : index
    %c0_69 = arith.constant 0 : index
    %101 = vector.load %arg7[%c0_67, %c0_68, %c0_69] : memref<1x1x128xf32, #tpu.memory_space<vmem>>, vector<1x1x128xf32>
    %102 = vector.shape_cast %101 : vector<1x1x128xf32> to vector<1x128xf32>
    %103 = vector.shape_cast %100 : vector<1x128xf32> to vector<1x1x128xf32>
    tpu.vector_store %arg7[%c0_67, %c0_68, %c0_69], %103 {strides = array<i32>} : memref<1x1x128xf32, #tpu.memory_space<vmem>>, vector<1x1x128xf32>,
    %c0_70 = arith.constant 0 : index
    %c0_71 = arith.constant 0 : index
    %c0_72 = arith.constant 0 : index
    %104 = vector.load %arg5[%c0_70, %c0_71, %c0_72] : memref<1x80x128xf32, #tpu.memory_space<vmem>>, vector<1x80x128xf32>
    %105 = vector.shape_cast %104 : vector<1x80x128xf32> to vector<80x128xf32>
    %106 = vector.shape_cast %92 : vector<80x128xf32> to vector<1x80x128xf32>
    tpu.vector_store %arg5[%c0_70, %c0_71, %c0_72], %106 {strides = array<i32>} : memref<1x80x128xf32, #tpu.memory_space<vmem>>, vector<1x80x128xf32>,
    return
  }
  func.func @transform_0(%arg0: i32) -> (i32, i32, i32, i32, i32, i32) {
    %c0_i32 = arith.constant 0 : i32
    %c0_i32_0 = arith.constant 0 : i32
    %c0_i32_1 = arith.constant 0 : i32
    %c0_i32_2 = arith.constant 0 : i32
    %c0_i32_3 = arith.constant 0 : i32
    %c0_i32_4 = arith.constant 0 : i32
    return %arg0, %c0_i32, %c0_i32_0, %c0_i32_1, %c0_i32_2, %c0_i32_3 : i32, i32, i32, i32, i32, i32
  }
  func.func @transform_1(%arg0: i32) -> (i32, i32, i32) {
    %c0_i32 = arith.constant 0 : i32
    %c0_i32_0 = arith.constant 0 : i32
    %c0_i32_1 = arith.constant 0 : i32
    %c0_i32_2 = arith.constant 0 : i32
    return %c0_i32, %c0_i32_0, %c0_i32_1 : i32, i32, i32
  }
  func.func @transform_2(%arg0: i32) -> (i32, i32) {
    %c0_i32 = arith.constant 0 : i32
    %c0_i32_0 = arith.constant 0 : i32
    %c0_i32_1 = arith.constant 0 : i32
    return %c0_i32, %c0_i32_0 : i32, i32
  }
  func.func @transform_3(%arg0: i32) -> (i32, i32) {
    %c0_i32 = arith.constant 0 : i32
    %c0_i32_0 = arith.constant 0 : i32
    %c0_i32_1 = arith.constant 0 : i32
    return %c0_i32, %c0_i32_0 : i32, i32
  }
  func.func @transform_4(%arg0: i32) -> (i32, i32, i32) {
    %c0_i32 = arith.constant 0 : i32
    %c0_i32_0 = arith.constant 0 : i32
    %c0_i32_1 = arith.constant 0 : i32
    return %arg0, %c0_i32, %c0_i32_0 : i32, i32, i32
  }
  func.func @transform_5(%arg0: i32) -> (i32, i32, i32) {
    %c0_i32 = arith.constant 0 : i32
    %c0_i32_0 = arith.constant 0 : i32
    %c0_i32_1 = arith.constant 0 : i32
    return %arg0, %c0_i32, %c0_i32_0 : i32, i32, i32
  }
  func.func @transform_6(%arg0: i32) -> (i32, i32, i32) {
    %c0_i32 = arith.constant 0 : i32
    %c0_i32_0 = arith.constant 0 : i32
    %c0_i32_1 = arith.constant 0 : i32
    return %arg0, %c0_i32, %c0_i32_0 : i32, i32, i32
  }
}

module attributes {stable_mosaic.version = 11 : i64} {
  func.func @kernel(%arg0: i32, %arg1: memref<1x80x128xf32, #tpu.memory_space<vmem>>, %arg2: memref<1x128xf32, #tpu.memory_space<vmem>>, %arg3: memref<1x128xf32, #tpu.memory_space<vmem>>, %arg4: memref<9x128x128xbf16, #tpu.memory_space<vmem>>, %arg5: memref<1x128xf32, #tpu.memory_space<vmem>>, %arg6: memref<80x1xf32, #tpu.memory_space<vmem>>, %arg7: memref<1x80x128xf32, #tpu.memory_space<vmem>>, %arg8: memref<1x1x128xf32, #tpu.memory_space<vmem>>, %arg9: memref<1x1x128xf32, #tpu.memory_space<vmem>>, %arg10: memref<110x128xf32, #tpu.memory_space<vmem>>) attributes {dimension_semantics = [#tpu.dimension_semantics<parallel>], iteration_bounds = array<i64: 2>, scalar_prefetch = 0 : i64, scratch_operands = 1 : i64, tpu.core_type = #tpu.core_type<tc>, window_params = [{transform_indices = @transform_0, window_bounds = array<i64: 1, 80, 128>}, {pipeline_mode = #tpu.pipeline_mode<synchronous>, transform_indices = @transform_1, window_bounds = array<i64: 1, 128>}, {pipeline_mode = #tpu.pipeline_mode<synchronous>, transform_indices = @transform_2, window_bounds = array<i64: 1, 128>}, {pipeline_mode = #tpu.pipeline_mode<synchronous>, transform_indices = @transform_3, window_bounds = array<i64: 9, 128, 128>}, {pipeline_mode = #tpu.pipeline_mode<synchronous>, transform_indices = @transform_4, window_bounds = array<i64: 1, 128>}, {pipeline_mode = #tpu.pipeline_mode<synchronous>, transform_indices = @transform_5, window_bounds = array<i64: 80, 1>}, {transform_indices = @transform_6, window_bounds = array<i64: 1, 80, 128>}, {transform_indices = @transform_7, window_bounds = array<i64: 1, 1, 128>}, {transform_indices = @transform_8, window_bounds = array<i64: 1, 1, 128>}]} {
    %c0 = arith.constant 0 : index
    %c0_0 = arith.constant 0 : index
    %0 = vector.load %arg6[%c0, %c0_0] : memref<80x1xf32, #tpu.memory_space<vmem>>, vector<80x1xf32>
    %c0_1 = arith.constant 0 : index
    %c0_2 = arith.constant 0 : index
    %c0_3 = arith.constant 0 : index
    %1 = vector.load %arg1[%c0_1, %c0_2, %c0_3] : memref<1x80x128xf32, #tpu.memory_space<vmem>>, vector<1x80x128xf32>
    %2 = vector.shape_cast %1 : vector<1x80x128xf32> to vector<80x128xf32>
    %c0_4 = arith.constant 0 : index
    %c0_5 = arith.constant 0 : index
    %3 = vector.load %arg2[%c0_4, %c0_5] : memref<1x128xf32, #tpu.memory_space<vmem>>, vector<1x128xf32>
    %4 = vector.broadcast %3 : vector<1x128xf32> to vector<80x128xf32>
    %5 = arith.mulf %2, %4 : vector<80x128xf32>
    %c0_6 = arith.constant 0 : index
    %c0_7 = arith.constant 0 : index
    %6 = vector.load %arg3[%c0_6, %c0_7] : memref<1x128xf32, #tpu.memory_space<vmem>>, vector<1x128xf32>
    %7 = vector.broadcast %6 : vector<1x128xf32> to vector<80x128xf32>
    %8 = arith.addf %5, %7 : vector<80x128xf32>
    %cst = arith.constant 0.000000e+00 : f32
    %9 = vector.broadcast %cst : f32 to vector<80x128xf32>
    %10 = arith.maximumf %8, %9 : vector<80x128xf32>
    %11 = vector.broadcast %0 : vector<80x1xf32> to vector<80x128xf32>
    %12 = arith.mulf %10, %11 : vector<80x128xf32>
    %cst_8 = arith.constant 0.000000e+00 : f32
    %13 = vector.broadcast %cst_8 : f32 to vector<110x128xf32>
    %c0_9 = arith.constant 0 : index
    %c0_10 = arith.constant 0 : index
    %14 = vector.load %arg10[%c0_9, %c0_10] : memref<110x128xf32, #tpu.memory_space<vmem>>, vector<110x128xf32>
    tpu.vector_store %arg10[%c0_9, %c0_10], %13 {strides = array<i32>} : memref<110x128xf32, #tpu.memory_space<vmem>>, vector<110x128xf32>,
    %c11 = arith.constant 11 : index
    %c0_11 = arith.constant 0 : index
    %15 = vector.load %arg10[%c11, %c0_11] : memref<110x128xf32, #tpu.memory_space<vmem>>, vector<80x128xf32>
    tpu.vector_store %arg10[%c11, %c0_11], %12 {strides = array<i32>} : memref<110x128xf32, #tpu.memory_space<vmem>>, vector<80x128xf32>,
    %c0_12 = arith.constant 0 : index
    %c0_13 = arith.constant 0 : index
    %16 = vector.load %arg10[%c0_12, %c0_13] : memref<110x128xf32, #tpu.memory_space<vmem>>, vector<80x128xf32>
    %17 = arith.truncf %16 : vector<80x128xf32> to vector<80x128xbf16>
    %c0_14 = arith.constant 0 : index
    %c0_15 = arith.constant 0 : index
    %c0_16 = arith.constant 0 : index
    %18 = vector.load %arg4[%c0_14, %c0_15, %c0_16] : memref<9x128x128xbf16, #tpu.memory_space<vmem>>, vector<1x128x128xbf16>
    %19 = vector.shape_cast %18 : vector<1x128x128xbf16> to vector<128x128xbf16>
    %cst_17 = arith.constant dense<0.000000e+00> : vector<80x128xf32>
    %20 = tpu.matmul %17, %19, %cst_17 {dimension_numbers = #tpu.dot_dimension_numbers<[1], [0], [0], [1], [0, 0, 1, 1], [], []>} : vector<80x128xbf16>, vector<128x128xbf16>, vector<80x128xf32> -> vector<80x128xf32>
    %c1 = arith.constant 1 : index
    %c0_18 = arith.constant 0 : index
    %21 = vector.load %arg10[%c1, %c0_18] : memref<110x128xf32, #tpu.memory_space<vmem>>, vector<80x128xf32>
    %22 = arith.truncf %21 : vector<80x128xf32> to vector<80x128xbf16>
    %c1_19 = arith.constant 1 : index
    %c0_20 = arith.constant 0 : index
    %c0_21 = arith.constant 0 : index
    %23 = vector.load %arg4[%c1_19, %c0_20, %c0_21] : memref<9x128x128xbf16, #tpu.memory_space<vmem>>, vector<1x128x128xbf16>
    %24 = vector.shape_cast %23 : vector<1x128x128xbf16> to vector<128x128xbf16>
    %cst_22 = arith.constant dense<0.000000e+00> : vector<80x128xf32>
    %25 = tpu.matmul %22, %24, %cst_22 {dimension_numbers = #tpu.dot_dimension_numbers<[1], [0], [0], [1], [0, 0, 1, 1], [], []>} : vector<80x128xbf16>, vector<128x128xbf16>, vector<80x128xf32> -> vector<80x128xf32>
    %26 = arith.addf %20, %25 : vector<80x128xf32>
    %c2 = arith.constant 2 : index
    %c0_23 = arith.constant 0 : index
    %27 = vector.load %arg10[%c2, %c0_23] : memref<110x128xf32, #tpu.memory_space<vmem>>, vector<80x128xf32>
    %28 = arith.truncf %27 : vector<80x128xf32> to vector<80x128xbf16>
    %c2_24 = arith.constant 2 : index
    %c0_25 = arith.constant 0 : index
    %c0_26 = arith.constant 0 : index
    %29 = vector.load %arg4[%c2_24, %c0_25, %c0_26] : memref<9x128x128xbf16, #tpu.memory_space<vmem>>, vector<1x128x128xbf16>
    %30 = vector.shape_cast %29 : vector<1x128x128xbf16> to vector<128x128xbf16>
    %cst_27 = arith.constant dense<0.000000e+00> : vector<80x128xf32>
    %31 = tpu.matmul %28, %30, %cst_27 {dimension_numbers = #tpu.dot_dimension_numbers<[1], [0], [0], [1], [0, 0, 1, 1], [], []>} : vector<80x128xbf16>, vector<128x128xbf16>, vector<80x128xf32> -> vector<80x128xf32>
    %32 = arith.addf %26, %31 : vector<80x128xf32>
    %c10 = arith.constant 10 : index
    %c0_28 = arith.constant 0 : index
    %33 = vector.load %arg10[%c10, %c0_28] : memref<110x128xf32, #tpu.memory_space<vmem>>, vector<80x128xf32>
    %34 = arith.truncf %33 : vector<80x128xf32> to vector<80x128xbf16>
    %c3 = arith.constant 3 : index
    %c0_29 = arith.constant 0 : index
    %c0_30 = arith.constant 0 : index
    %35 = vector.load %arg4[%c3, %c0_29, %c0_30] : memref<9x128x128xbf16, #tpu.memory_space<vmem>>, vector<1x128x128xbf16>
    %36 = vector.shape_cast %35 : vector<1x128x128xbf16> to vector<128x128xbf16>
    %cst_31 = arith.constant dense<0.000000e+00> : vector<80x128xf32>
    %37 = tpu.matmul %34, %36, %cst_31 {dimension_numbers = #tpu.dot_dimension_numbers<[1], [0], [0], [1], [0, 0, 1, 1], [], []>} : vector<80x128xbf16>, vector<128x128xbf16>, vector<80x128xf32> -> vector<80x128xf32>
    %38 = arith.addf %32, %37 : vector<80x128xf32>
    %c11_32 = arith.constant 11 : index
    %c0_33 = arith.constant 0 : index
    %39 = vector.load %arg10[%c11_32, %c0_33] : memref<110x128xf32, #tpu.memory_space<vmem>>, vector<80x128xf32>
    %40 = arith.truncf %39 : vector<80x128xf32> to vector<80x128xbf16>
    %c4 = arith.constant 4 : index
    %c0_34 = arith.constant 0 : index
    %c0_35 = arith.constant 0 : index
    %41 = vector.load %arg4[%c4, %c0_34, %c0_35] : memref<9x128x128xbf16, #tpu.memory_space<vmem>>, vector<1x128x128xbf16>
    %42 = vector.shape_cast %41 : vector<1x128x128xbf16> to vector<128x128xbf16>
    %cst_36 = arith.constant dense<0.000000e+00> : vector<80x128xf32>
    %43 = tpu.matmul %40, %42, %cst_36 {dimension_numbers = #tpu.dot_dimension_numbers<[1], [0], [0], [1], [0, 0, 1, 1], [], []>} : vector<80x128xbf16>, vector<128x128xbf16>, vector<80x128xf32> -> vector<80x128xf32>
    %44 = arith.addf %38, %43 : vector<80x128xf32>
    %c12 = arith.constant 12 : index
    %c0_37 = arith.constant 0 : index
    %45 = vector.load %arg10[%c12, %c0_37] : memref<110x128xf32, #tpu.memory_space<vmem>>, vector<80x128xf32>
    %46 = arith.truncf %45 : vector<80x128xf32> to vector<80x128xbf16>
    %c5 = arith.constant 5 : index
    %c0_38 = arith.constant 0 : index
    %c0_39 = arith.constant 0 : index
    %47 = vector.load %arg4[%c5, %c0_38, %c0_39] : memref<9x128x128xbf16, #tpu.memory_space<vmem>>, vector<1x128x128xbf16>
    %48 = vector.shape_cast %47 : vector<1x128x128xbf16> to vector<128x128xbf16>
    %cst_40 = arith.constant dense<0.000000e+00> : vector<80x128xf32>
    %49 = tpu.matmul %46, %48, %cst_40 {dimension_numbers = #tpu.dot_dimension_numbers<[1], [0], [0], [1], [0, 0, 1, 1], [], []>} : vector<80x128xbf16>, vector<128x128xbf16>, vector<80x128xf32> -> vector<80x128xf32>
    %50 = arith.addf %44, %49 : vector<80x128xf32>
    %c20 = arith.constant 20 : index
    %c0_41 = arith.constant 0 : index
    %51 = vector.load %arg10[%c20, %c0_41] : memref<110x128xf32, #tpu.memory_space<vmem>>, vector<80x128xf32>
    %52 = arith.truncf %51 : vector<80x128xf32> to vector<80x128xbf16>
    %c6 = arith.constant 6 : index
    %c0_42 = arith.constant 0 : index
    %c0_43 = arith.constant 0 : index
    %53 = vector.load %arg4[%c6, %c0_42, %c0_43] : memref<9x128x128xbf16, #tpu.memory_space<vmem>>, vector<1x128x128xbf16>
    %54 = vector.shape_cast %53 : vector<1x128x128xbf16> to vector<128x128xbf16>
    %cst_44 = arith.constant dense<0.000000e+00> : vector<80x128xf32>
    %55 = tpu.matmul %52, %54, %cst_44 {dimension_numbers = #tpu.dot_dimension_numbers<[1], [0], [0], [1], [0, 0, 1, 1], [], []>} : vector<80x128xbf16>, vector<128x128xbf16>, vector<80x128xf32> -> vector<80x128xf32>
    %56 = arith.addf %50, %55 : vector<80x128xf32>
    %c21 = arith.constant 21 : index
    %c0_45 = arith.constant 0 : index
    %57 = vector.load %arg10[%c21, %c0_45] : memref<110x128xf32, #tpu.memory_space<vmem>>, vector<80x128xf32>
    %58 = arith.truncf %57 : vector<80x128xf32> to vector<80x128xbf16>
    %c7 = arith.constant 7 : index
    %c0_46 = arith.constant 0 : index
    %c0_47 = arith.constant 0 : index
    %59 = vector.load %arg4[%c7, %c0_46, %c0_47] : memref<9x128x128xbf16, #tpu.memory_space<vmem>>, vector<1x128x128xbf16>
    %60 = vector.shape_cast %59 : vector<1x128x128xbf16> to vector<128x128xbf16>
    %cst_48 = arith.constant dense<0.000000e+00> : vector<80x128xf32>
    %61 = tpu.matmul %58, %60, %cst_48 {dimension_numbers = #tpu.dot_dimension_numbers<[1], [0], [0], [1], [0, 0, 1, 1], [], []>} : vector<80x128xbf16>, vector<128x128xbf16>, vector<80x128xf32> -> vector<80x128xf32>
    %62 = arith.addf %56, %61 : vector<80x128xf32>
    %c22 = arith.constant 22 : index
    %c0_49 = arith.constant 0 : index
    %63 = vector.load %arg10[%c22, %c0_49] : memref<110x128xf32, #tpu.memory_space<vmem>>, vector<80x128xf32>
    %64 = arith.truncf %63 : vector<80x128xf32> to vector<80x128xbf16>
    %c8 = arith.constant 8 : index
    %c0_50 = arith.constant 0 : index
    %c0_51 = arith.constant 0 : index
    %65 = vector.load %arg4[%c8, %c0_50, %c0_51] : memref<9x128x128xbf16, #tpu.memory_space<vmem>>, vector<1x128x128xbf16>
    %66 = vector.shape_cast %65 : vector<1x128x128xbf16> to vector<128x128xbf16>
    %cst_52 = arith.constant dense<0.000000e+00> : vector<80x128xf32>
    %67 = tpu.matmul %64, %66, %cst_52 {dimension_numbers = #tpu.dot_dimension_numbers<[1], [0], [0], [1], [0, 0, 1, 1], [], []>} : vector<80x128xbf16>, vector<128x128xbf16>, vector<80x128xf32> -> vector<80x128xf32>
    %68 = arith.addf %62, %67 : vector<80x128xf32>
    %c0_53 = arith.constant 0 : index
    %c0_54 = arith.constant 0 : index
    %69 = vector.load %arg5[%c0_53, %c0_54] : memref<1x128xf32, #tpu.memory_space<vmem>>, vector<1x128xf32>
    %70 = vector.broadcast %69 : vector<1x128xf32> to vector<80x128xf32>
    %71 = arith.addf %68, %70 : vector<80x128xf32>
    %72 = vector.broadcast %0 : vector<80x1xf32> to vector<80x128xf32>
    %73 = arith.mulf %71, %72 : vector<80x128xf32>
    %cst_55 = arith.constant dense<0.000000e+00> : vector<128xf32>
    %74 = vector.multi_reduction <add>, %73, %cst_55 [0] : vector<80x128xf32> to vector<128xf32>
    %75 = vector.shape_cast %74 : vector<128xf32> to vector<1x128xf32>
    %c0_56 = arith.constant 0 : index
    %c0_57 = arith.constant 0 : index
    %c0_58 = arith.constant 0 : index
    %76 = vector.load %arg8[%c0_56, %c0_57, %c0_58] : memref<1x1x128xf32, #tpu.memory_space<vmem>>, vector<1x1x128xf32>
    %77 = vector.shape_cast %76 : vector<1x1x128xf32> to vector<1x128xf32>
    %78 = vector.shape_cast %75 : vector<1x128xf32> to vector<1x1x128xf32>
    tpu.vector_store %arg8[%c0_56, %c0_57, %c0_58], %78 {strides = array<i32>} : memref<1x1x128xf32, #tpu.memory_space<vmem>>, vector<1x1x128xf32>,
    %79 = arith.mulf %73, %73 : vector<80x128xf32>
    %cst_59 = arith.constant dense<0.000000e+00> : vector<128xf32>
    %80 = vector.multi_reduction <add>, %79, %cst_59 [0] : vector<80x128xf32> to vector<128xf32>
    %81 = vector.shape_cast %80 : vector<128xf32> to vector<1x128xf32>
    %c0_60 = arith.constant 0 : index
    %c0_61 = arith.constant 0 : index
    %c0_62 = arith.constant 0 : index
    %82 = vector.load %arg9[%c0_60, %c0_61, %c0_62] : memref<1x1x128xf32, #tpu.memory_space<vmem>>, vector<1x1x128xf32>
    %83 = vector.shape_cast %82 : vector<1x1x128xf32> to vector<1x128xf32>
    %84 = vector.shape_cast %81 : vector<1x128xf32> to vector<1x1x128xf32>
    tpu.vector_store %arg9[%c0_60, %c0_61, %c0_62], %84 {strides = array<i32>} : memref<1x1x128xf32, #tpu.memory_space<vmem>>, vector<1x1x128xf32>,
    %c0_63 = arith.constant 0 : index
    %c0_64 = arith.constant 0 : index
    %c0_65 = arith.constant 0 : index
    %85 = vector.load %arg7[%c0_63, %c0_64, %c0_65] : memref<1x80x128xf32, #tpu.memory_space<vmem>>, vector<1x80x128xf32>
    %86 = vector.shape_cast %85 : vector<1x80x128xf32> to vector<80x128xf32>
    %87 = vector.shape_cast %73 : vector<80x128xf32> to vector<1x80x128xf32>
    tpu.vector_store %arg7[%c0_63, %c0_64, %c0_65], %87 {strides = array<i32>} : memref<1x80x128xf32, #tpu.memory_space<vmem>>, vector<1x80x128xf32>,
    return
  }
  func.func @transform_0(%arg0: i32) -> (i32, i32, i32) {
    %c0_i32 = arith.constant 0 : i32
    %c0_i32_0 = arith.constant 0 : i32
    %c0_i32_1 = arith.constant 0 : i32
    return %arg0, %c0_i32, %c0_i32_0 : i32, i32, i32
  }
  func.func @transform_1(%arg0: i32) -> (i32, i32) {
    %c0_i32 = arith.constant 0 : i32
    %c0_i32_0 = arith.constant 0 : i32
    %c0_i32_1 = arith.constant 0 : i32
    return %c0_i32, %c0_i32_0 : i32, i32
  }
  func.func @transform_2(%arg0: i32) -> (i32, i32) {
    %c0_i32 = arith.constant 0 : i32
    %c0_i32_0 = arith.constant 0 : i32
    %c0_i32_1 = arith.constant 0 : i32
    return %c0_i32, %c0_i32_0 : i32, i32
  }
  func.func @transform_3(%arg0: i32) -> (i32, i32, i32) {
    %c0_i32 = arith.constant 0 : i32
    %c0_i32_0 = arith.constant 0 : i32
    %c0_i32_1 = arith.constant 0 : i32
    %c0_i32_2 = arith.constant 0 : i32
    return %c0_i32, %c0_i32_0, %c0_i32_1 : i32, i32, i32
  }
  func.func @transform_4(%arg0: i32) -> (i32, i32) {
    %c0_i32 = arith.constant 0 : i32
    %c0_i32_0 = arith.constant 0 : i32
    %c0_i32_1 = arith.constant 0 : i32
    return %c0_i32, %c0_i32_0 : i32, i32
  }
  func.func @transform_5(%arg0: i32) -> (i32, i32) {
    %c0_i32 = arith.constant 0 : i32
    %c0_i32_0 = arith.constant 0 : i32
    %c0_i32_1 = arith.constant 0 : i32
    return %c0_i32, %c0_i32_0 : i32, i32
  }
  func.func @transform_6(%arg0: i32) -> (i32, i32, i32) {
    %c0_i32 = arith.constant 0 : i32
    %c0_i32_0 = arith.constant 0 : i32
    %c0_i32_1 = arith.constant 0 : i32
    return %arg0, %c0_i32, %c0_i32_0 : i32, i32, i32
  }
  func.func @transform_7(%arg0: i32) -> (i32, i32, i32) {
    %c0_i32 = arith.constant 0 : i32
    %c0_i32_0 = arith.constant 0 : i32
    %c0_i32_1 = arith.constant 0 : i32
    return %arg0, %c0_i32, %c0_i32_0 : i32, i32, i32
  }
  func.func @transform_8(%arg0: i32) -> (i32, i32, i32) {
    %c0_i32 = arith.constant 0 : i32
    %c0_i32_0 = arith.constant 0 : i32
    %c0_i32_1 = arith.constant 0 : i32
    return %arg0, %c0_i32, %c0_i32_0 : i32, i32, i32
  }
}

</mosaic_0001>

<bundles_post_ra>
// kernel: down_forward.5
= control target key start
LH: loop header
LB: loop body
LE: loop exit
PB: predicated region body
PF: predicated region fallthrough
CT: control target
= control target key end

     0   :  { %s338_s12 = smov 0   ;;  %s373_s0 = inlined_call_operand.vmem [shape: f32[2,80,128], index: 0, kind: input, shape index: {}]   ;;  %s374_s1 = inlined_call_operand.vmem [shape: f32[1,128], index: 1, kind: input, shape index: {}]   ;;  %s375_s2 = inlined_call_operand.vmem [shape: f32[1,128], index: 2, kind: input, shape index: {}]   ;;  %s376_s3 = inlined_call_operand.vmem [shape: f32[2,80,128], index: 3, kind: output, shape index: {}]  }
   0x1 LB: > { %s290_s13 = sadd.s32 4294967295, %s316_s12   ;;  %p294_p0 = scmp.ge.s32.totalorder %s316_s12, 1  ;;  %s316_s12 = sphi %s338_s12, %s13_s12  }
   0x2   : > { %p137_p1 = scmp.lt.s32.totalorder %s316_s12, 3 }
   0x4   : > { %p138_p2 = pnand %p294_p0, %p137_p1 }
   0x5   : > { %p161_p3 = scmp.lt.s32.totalorder (!%p138_p2), %s290_s13, 1  ;;  %v297_v0 = vld [vmem:[%s374_s1] ss:$0 sm:$0xff] (!%p138_p2) }
   0x6   : > { %141 = sbr.rel (%p138_p2) target bundleno = 31 (0x1f), region = 32  ;;  %v298_v1 = vld [vmem:[%s375_s2] ss:$0 sm:$0xff] (!%p138_p2) }
   0xd   : > { %s378_s13 = smov (!%p161_p3, %s290_s13), 1 }
   0xe   : > { %s301_s14 = smul.u32 80, %s378_s13 }
  0x10   : > { %s165_s19 = scalar_lea.vmem %s373_s0, %s301_s14  ;;  %s358_s24 = scalar_lea.vmem %s376_s3, %s301_s14 }
  0x11   : > { %v171_v2 = vld [vmem:[%s165_s19] sm:$0xff]  ;;  %v172_v3 = vld [vmem:[%s165_s19 + $0x8] sm:$0xff]  ;;  %v173_v4 = vld [vmem:[%s165_s19 + $0x10] sm:$0xff] }
  0x12   : > { %v188_v5 = vmul.f32 %v297_v0, %v171_v2  ;;  %v189_v6 = vmul.f32 %v297_v0, %v172_v3  ;;  %v190_v7 = vmul.f32 %v297_v0, %v173_v4  ;;  %v174_v8 = vld [vmem:[%s165_s19 + $0x18] sm:$0xff]  ;;  %v175_v9 = vld [vmem:[%s165_s19 + $0x20] sm:$0xff]  ;;  %v176_v10 = vld [vmem:[%s165_s19 + $0x28] sm:$0xff] }
  0x13   : > { %v191_v11 = vmul.f32 %v297_v0, %v174_v8  ;;  %v192_v12 = vmul.f32 %v297_v0, %v175_v9  ;;  %v193_v13 = vmul.f32 %v297_v0, %v176_v10  ;;  %v177_v14 = vld [vmem:[%s165_s19 + $0x30] sm:$0xff]  ;;  %v178_v15 = vld [vmem:[%s165_s19 + $0x38] sm:$0xff]  ;;  %v179_v24 = vld [vmem:[%s165_s19 + $0x40] sm:$0xff] }
  0x14   : > { %v205_v16 = vadd.f32 %v298_v1, %v188_v5  ;;  %v206_v17 = vadd.f32 %v298_v1, %v189_v6  ;;  %v207_v18 = vadd.f32 %v298_v1, %v190_v7  ;;  %v194_v19 = vmul.f32 %v297_v0, %v177_v14  ;;  %v180_v25 = vld [vmem:[%s165_s19 + $0x48] sm:$0xff] }
  0x15   : > { %v208_v20 = vadd.f32 %v298_v1, %v191_v11  ;;  %v209_v21 = vadd.f32 %v298_v1, %v192_v12  ;;  %v210_v22 = vadd.f32 %v298_v1, %v193_v13  ;;  %v195_v23 = vmul.f32 %v297_v0, %v178_v15 }
  0x16   : > { %v215_v26 = vmax.f32 %v205_v16, 0.0  ;;  %v216_v27 = vmax.f32 %v206_v17, 0.0  ;;  %v217_v28 = vmax.f32 %v207_v18, 0.0  ;;  %v211_v29 = vadd.f32 %v298_v1, %v194_v19 }
  0x17   : > { %v218_v30 = vmax.f32 %v208_v20, 0.0  ;;  %v219_v31 = vmax.f32 %v209_v21, 0.0  ;;  %v220_v32 = vmax.f32 %v210_v22, 0.0  ;;  %v212_v33 = vadd.f32 %v298_v1, %v195_v23 }
  0x18   : > { %225 = vst [vmem:[%s358_s24] sm:$0xff] %v215_v26  ;;  %226 = vst [vmem:[%s358_s24 + $0x8] sm:$0xff] %v216_v27  ;;  %v221_v34 = vmax.f32 %v211_v29, 0.0  ;;  %v196_v35 = vmul.f32 %v297_v0, %v179_v24  ;;  %v197_v36 = vmul.f32 %v297_v0, %v180_v25 }
  0x19   : > { %227 = vst [vmem:[%s358_s24 + $0x10] sm:$0xff] %v217_v28  ;;  %228 = vst [vmem:[%s358_s24 + $0x18] sm:$0xff] %v218_v30  ;;  %v222_v37 = vmax.f32 %v212_v33, 0.0 }
  0x1a   : > { %229 = vst [vmem:[%s358_s24 + $0x20] sm:$0xff] %v219_v31  ;;  %230 = vst [vmem:[%s358_s24 + $0x28] sm:$0xff] %v220_v32  ;;  %v213_v38 = vadd.f32 %v298_v1, %v196_v35  ;;  %v214_v39 = vadd.f32 %v298_v1, %v197_v36 }
  0x1b   : > { %231 = vst [vmem:[%s358_s24 + $0x30] sm:$0xff] %v221_v34  ;;  %232 = vst [vmem:[%s358_s24 + $0x38] sm:$0xff] %v222_v37 }
  0x1c   : > { %v223_v40 = vmax.f32 %v213_v38, 0.0  ;;  %v224_v41 = vmax.f32 %v214_v39, 0.0 }
  0x1e   : > { %233 = vst [vmem:[%s358_s24 + $0x40] sm:$0xff] %v223_v40  ;;  %234 = vst [vmem:[%s358_s24 + $0x48] sm:$0xff] %v224_v41 }
  0x1f PF: > { %s13_s12 = sadd.s32 1, %s316_s12  }
  0x20   : > { %p10_p4 = scmp.ge.s32.totalorder %s13_s12, 4  }
  0x22   :  { %12 = sbr.rel (!%p10_p4) target bundleno = 1 (0x1), region = 62 }

// kernel: down_forward.4
= control target key start
LH: loop header
LB: loop body
LE: loop exit
PB: predicated region body
PF: predicated region fallthrough
CT: control target
= control target key end

     0   :  { %s2914_s27 = smov 0   ;;  %s3570_s0 = inlined_call_operand.vmem [shape: f32[2,80,128], index: 0, kind: input, shape index: {}]   ;;  %s3571_s1 = inlined_call_operand.vmem [shape: f32[1,128], index: 1, kind: input, shape index: {}]   ;;  %s3572_s2 = inlined_call_operand.vmem [shape: f32[1,128], index: 2, kind: input, shape index: {}]   ;;  %s3573_s3 = inlined_call_operand.vmem [shape: bf16[9,128,128], index: 3, kind: input, shape index: {}]   ;;  %s3574_s4 = inlined_call_operand.vmem [shape: f32[1,128], index: 4, kind: input, shape index: {}]   ;;  %s3575_s5 = inlined_call_operand.vmem [shape: f32[80,1], index: 5, kind: input, shape index: {}]   ;;  %s3576_s6 = inlined_call_operand.vmem [shape: f32[2,80,128], index: 6, kind: output, shape index: {0}]   ;;  %s3577_s7 = inlined_call_operand.vmem [shape: f32[2,1,128], index: 7, kind: output, shape index: {1}]   ;;  %s3578_s8 = inlined_call_operand.vmem [shape: f32[2,1,128], index: 8, kind: output, shape index: {2}]  }
   0x1 LB: > { %s2102_s28 = sadd.s32 4294967295, %s2864_s27   ;;  %p2106_p0 = scmp.ge.s32.totalorder %s2864_s27, 1  ;;  %s2864_s27 = sphi %s2914_s27, %s19_s27  }
   0x2   : > { %p267_p1 = scmp.lt.s32.totalorder %s2864_s27, 3 }
   0x4   : > { %p268_p2 = pnand %p2106_p0, %p267_p1 }
   0x5   : > { %v326_v0 = vld [vmem:[%s3575_s5 + $0x10] sm:$0xff] (!%p268_p2)  ;;  %v324_v1 = vld [vmem:[%s3575_s5] sm:$0xff] (!%p268_p2)  ;;  %v2866_v2 = vmov (!%p268_p2), 0   ;;  %v2867_v3 = vmov (!%p268_p2), 0.0   ;;  %v327_v4 = vld [vmem:[%s3575_s5 + $0x18] sm:$0xff] (!%p268_p2)  ;;  %vm2868_vm0 = vmmov (!%p268_p2), 0  }
   0x6   : > { %271 = sbr.rel (%p268_p2) target bundleno = 568 (0x238), region = 44  ;;  %2784 = vset.pattern.permute.xlu1 (!%p268_p2), %v2866_v2  ;;  %2783 = vset.pattern.permute.xlu0 (!%p268_p2), %v2866_v2  ;;  %448 = vst [vmem:[#allocation2] sm:$0xff] (!%p268_p2), %v2867_v3  ;;  %449 = vst [vmem:[#allocation2 + $0x8] sm:$0xff] (!%p268_p2), %v2867_v3  ;;  %v325_v5 = vld [vmem:[%s3575_s5 + $0x8] sm:$0xff] (!%p268_p2)  ;;  %v2785_v6 = vld [vmem:[%s3573_s3 + $0x40] sm:$0xff] (!%p268_p2)   ;;  %p307_p3 = scmp.lt.s32.totalorder (!%p268_p2), %s2102_s28, 1 }
   0x7   : > { %450 = vst [vmem:[#allocation2 + $0x10] sm:$0xff] (!%p268_p2), %v2867_v3  ;;  %451 = vst [vmem:[#allocation2 + $0x18] sm:$0xff] (!%p268_p2), %v2867_v3  ;;  %400 = vperm.xlu1 (!%p268_p2), %2784, %v326_v0   ;;  %390 = vperm.xlu0 (!%p268_p2), %2783, %v324_v1   ;;  %v329_v7 = vld [vmem:[%s3575_s5 + $0x28] sm:$0xff] (!%p268_p2)  ;;  %v328_v8 = vld [vmem:[%s3575_s5 + $0x20] sm:$0xff] (!%p268_p2) }
   0x8   : > { %452 = vst [vmem:[#allocation2 + $0x20] sm:$0xff] (!%p268_p2), %v2867_v3  ;;  %453 = vst [vmem:[#allocation2 + $0x28] sm:$0xff] (!%p268_p2), %v2867_v3  ;;  %2431 = vmatprep.subr.bf16.mxu0 (!%p268_p2), %v2867_v3  ;;  %2467 = vmatprep.subr.bf16.mxu1 (!%p268_p2), %v2867_v3  ;;  %v2786_v9 = vld [vmem:[%s3573_s3] sm:$0xff] (!%p268_p2)   ;;  %v2787_v10 = vld [vmem:[%s3573_s3 + $0x48] sm:$0xff] (!%p268_p2)  }
   0x9   : > { %454 = vst [vmem:[#allocation2 + $0x30] sm:$0xff] (!%p268_p2), %v2867_v3  ;;  %455 = vst [vmem:[#allocation2 + $0x38] sm:$0xff] (!%p268_p2), %v2867_v3  ;;  %2432 = vmatpush3.bf16.msra.mxu0 (!%p268_p2), %v2785_v6  ;;  %2468 = vmatpush3.bf16.msra.mxu1 (!%p268_p2), %v2786_v9  ;;  %v2788_v11 = vld [vmem:[%s3573_s3 + $0x8] sm:$0xff] (!%p268_p2)   ;;  %v331_v12 = vld [vmem:[%s3575_s5 + $0x38] sm:$0xff] (!%p268_p2) }
   0xa   : > { %456 = vst [vmem:[#allocation2 + $0x40] sm:$0xff] (!%p268_p2), %v2867_v3  ;;  %457 = vst [vmem:[#allocation2 + $0x48] sm:$0xff] (!%p268_p2), %v2867_v3  ;;  %2433 = vmatprep.subr.bf16.mxu0 (!%p268_p2), %v2867_v3  ;;  %2469 = vmatprep.subr.bf16.mxu1 (!%p268_p2), %v2867_v3  ;;  %v330_v13 = vld [vmem:[%s3575_s5 + $0x30] sm:$0xff] (!%p268_p2)  ;;  %v333_v16 = vld [vmem:[%s3575_s5 + $0x48] sm:$0xff] (!%p268_p2) }
   0xb   : > { %458 = vst [vmem:[#allocation2 + $0x50] sm:$0xff] (!%p268_p2), %v2867_v3  ;;  %459 = vst [vmem:[#allocation2 + $0x58] sm:$0xff] (!%p268_p2), %v2867_v3  ;;  %405 = vperm.xlu1 (!%p268_p2), %2784, %v327_v4   ;;  %395 = vperm.xlu0 (!%p268_p2), %2783, %v325_v5   ;;  %v2789_v14 = vld [vmem:[%s3573_s3 + $0x50] sm:$0xff] (!%p268_p2)   ;;  %v332_v17 = vld [vmem:[%s3575_s5 + $0x40] sm:$0xff] (!%p268_p2) }
   0xc   : > { %460 = vst [vmem:[#allocation2 + $0x60] sm:$0xff] (!%p268_p2), %v2867_v3  ;;  %v2790_v15 = vld [vmem:[%s3573_s3 + $0x10] sm:$0xff] (!%p268_p2)   ;;  %2447 = vmatprep.mubr.msk.bf16.mxu0 (!%p268_p2), %vm2868_vm0, %v2867_v3  ;;  %2483 = vmatprep.mubr.msk.bf16.mxu1 (!%p268_p2), %vm2868_vm0, %v2867_v3  ;;  %v2791_v18 = vld [vmem:[%s3573_s3 + $0x58] sm:$0xff] (!%p268_p2)   ;;  %v2793_v20 = vld [vmem:[%s3573_s3 + $0x60] sm:$0xff] (!%p268_p2)  }
   0xd   : > { %2434 = vmatpush3.bf16.msra.mxu0 %v2787_v10  ;;  %2470 = vmatpush3.bf16.msra.mxu1 %v2788_v11  ;;  %v2792_v19 = vld [vmem:[%s3573_s3 + $0x18] sm:$0xff]   ;;  %v2794_v21 = vld [vmem:[%s3573_s3 + $0x20] sm:$0xff]   ;;  %v2795_v22 = vld [vmem:[%s3573_s3 + $0x68] sm:$0xff]   ;;  %s3580_s28 = smov (!%p307_p3, %s2102_s28), 1 }
   0xe   : > { %2435 = vmatprep.subr.bf16.mxu0 %v2867_v3  ;;  %2471 = vmatprep.subr.bf16.mxu1 %v2867_v3  ;;  %v2796_v23 = vld [vmem:[%s3573_s3 + $0x28] sm:$0xff]   ;;  %v2797_v24 = vld [vmem:[%s3573_s3 + $0x70] sm:$0xff]   ;;  %v2799_v26 = vld [vmem:[%s3573_s3 + $0x78] sm:$0xff]   ;;  %s2771_s19 = smul.u32 80, %s3580_s28  ;;  %s319_s11 = scalar_lea.vmem %s3577_s7, %s3580_s28 }
   0xf   : > { %415 = vperm.xlu1 %2784, %v329_v7   ;;  %410 = vperm.xlu0 %2783, %v328_v8   ;;  %v2798_v25 = vld [vmem:[%s3573_s3 + $0x30] sm:$0xff]   ;;  %v2800_v27 = vld [vmem:[%s3573_s3 + $0x38] sm:$0xff]   ;;  %v2109_v28 = vld [vmem:[%s3571_s1] ss:$0 sm:$0xff]  ;;  %s322_s14 = scalar_lea.vmem %s3578_s8, %s3580_s28 }
  0x10   : > { %s3047_s22 = scalar_lea.vmem %s3570_s0, %s2771_s19  ;;  %v2110_v33 = vld [vmem:[%s3572_s2] ss:$0 sm:$0xff]  ;;  %s3525_s9 = scalar_lea.vmem %s3576_s6, %s2771_s19 }
  0x11   : > { %2436 = vmatpush3.bf16.msra.mxu0 %v2789_v14  ;;  %2472 = vmatpush3.bf16.msra.mxu1 %v2790_v15  ;;  %v336_v29 = vld [vmem:[%s3047_s22 + $0x10] sm:$0xff]  ;;  %v334_v30 = vld [vmem:[%s3047_s22] sm:$0xff]  ;;  %v337_v34 = vld [vmem:[%s3047_s22 + $0x18] sm:$0xff] }
  0x12   : > { %2437 = vmatprep.subr.bf16.mxu0 %v2867_v3  ;;  %2473 = vmatprep.subr.bf16.mxu1 %v2867_v3  ;;  %v353_v31 = vmul.f32 %v2109_v28, %v336_v29  ;;  %v351_v32 = vmul.f32 %v2109_v28, %v334_v30  ;;  %v335_v35 = vld [vmem:[%s3047_s22 + $0x8] sm:$0xff]  ;;  %v354_v38 = vmul.f32 %v2109_v28, %v337_v34  ;;  %v338_v41 = vld [vmem:[%s3047_s22 + $0x20] sm:$0xff]  ;;  %v341_v48 = vld [vmem:[%s3047_s22 + $0x38] sm:$0xff] }
  0x13   : > { %425 = vperm.xlu1 %2784, %v331_v12   ;;  %420 = vperm.xlu0 %2783, %v330_v13   ;;  %v352_v39 = vmul.f32 %v2109_v28, %v335_v35  ;;  %v339_v40 = vld [vmem:[%s3047_s22 + $0x28] sm:$0xff]  ;;  %v355_v43 = vmul.f32 %v2109_v28, %v338_v41  ;;  %v340_v49 = vld [vmem:[%s3047_s22 + $0x30] sm:$0xff]  ;;  %v358_v54 = vmul.f32 %v2109_v28, %v341_v48  ;;  %v342_v61 = vld [vmem:[%s3047_s22 + $0x40] sm:$0xff] }
  0x14   : > { %v370_v36 = vadd.f32 %v2110_v33, %v353_v31  ;;  %v368_v37 = vadd.f32 %v2110_v33, %v351_v32  ;;  %v356_v42 = vmul.f32 %v2109_v28, %v339_v40  ;;  %v371_v46 = vadd.f32 %v2110_v33, %v354_v38  ;;  %v343_v60 = vld [vmem:[%s3047_s22 + $0x48] sm:$0xff]  ;;  %v2807_v48 = vld [vmem:[%s3573_s3 + $0xd0] sm:$0xff]  }
  0x15   : > { %2438 = vmatpush3.bf16.msra.mxu0 %v2791_v18  ;;  %2474 = vmatpush3.bf16.msra.mxu1 %v2792_v19  ;;  %v369_v47 = vadd.f32 %v2110_v33, %v352_v39  ;;  %v372_v53 = vadd.f32 %v2110_v33, %v355_v43  ;;  %v357_v55 = vmul.f32 %v2109_v28, %v340_v49  ;;  %v503_v15 = vld [vmem:[#allocation2 + $0x1] sm:$0xff]  ;;  %v2806_v49 = vld [vmem:[%s3573_s3 + $0x98] sm:$0xff]  }
  0x16   : > { %2439 = vmatprep.subr.bf16.mxu0 %v2867_v3  ;;  %2475 = vmatprep.subr.bf16.mxu1 %v2867_v3  ;;  %v380_v44 = vmax.f32 %v370_v36, 0.0  ;;  %v378_v45 = vmax.f32 %v368_v37, 0.0  ;;  %v373_v52 = vadd.f32 %v2110_v33, %v356_v42  ;;  %v381_v58 = vmax.f32 %v371_v46, 0.0  ;;  %v2805_v35 = vld [vmem:[%s3573_s3 + $0xc8] sm:$0xff]  }
  0x17   : > { %435 = vperm.xlu1 %2784, %v333_v16   ;;  %430 = vperm.xlu0 %2783, %v332_v17   ;;  %v379_v59 = vmax.f32 %v369_v47, 0.0  ;;  %v382_v1 = vmax.f32 %v372_v53, 0.0  ;;  %v375_v2 = vadd.f32 %v2110_v33, %v358_v54  ;;  %v374_v4 = vadd.f32 %v2110_v33, %v357_v55 }
  0x18   : > { %v383_v0 = vmax.f32 %v373_v52, 0.0  ;;  %v360_v7 = vmul.f32 %v2109_v28, %v343_v60  ;;  %v359_v8 = vmul.f32 %v2109_v28, %v342_v61  ;;  %v2803_v28 = vld [vmem:[%s3573_s3 + $0xc0] sm:$0xff]  }
  0x19   : > { %2440 = vmatpush3.bf16.msra.mxu0 %v2793_v20  ;;  %2476 = vmatpush3.bf16.msra.mxu1 %v2794_v21  ;;  %v385_v13 = vmax.f32 %v375_v2, 0.0  ;;  %v384_v14 = vmax.f32 %v374_v4, 0.0 }
  0x1a   : > { %2441 = vmatprep.subr.bf16.mxu0 %v2867_v3  ;;  %2477 = vmatprep.subr.bf16.mxu1 %v2867_v3  ;;  %v377_v18 = vadd.f32 %v2110_v33, %v360_v7  ;;  %v376_v19 = vadd.f32 %v2110_v33, %v359_v8  ;;  %v2802_v33 = vld [vmem:[%s3573_s3 + $0x88] sm:$0xff]  }
  0x1b   : > { %v2812_v7 = vld [vmem:[%s3573_s3 + $0xe8] sm:$0xff]  }
  0x1c   : > { %v387_v31 = vmax.f32 %v377_v18, 0.0  ;;  %v386_v32 = vmax.f32 %v376_v19, 0.0  ;;  %v2814_v19 = vld [vmem:[%s3573_s3 + $0xf0] sm:$0xff]  }
  0x1d   : > { %2442 = vmatpush3.bf16.msra.mxu0 %v2795_v22  ;;  %2478 = vmatpush3.bf16.msra.mxu1 %v2796_v23  ;;  %v2801_v22 = vld [vmem:[%s3573_s3 + $0x80] sm:$0xff]  }
  0x1e   : > { %2443 = vmatprep.subr.bf16.mxu0 %v2867_v3  ;;  %2479 = vmatprep.subr.bf16.mxu1 %v2867_v3 }
  0x21   : > { %2444 = vmatpush3.bf16.msra.mxu0 %v2797_v24  ;;  %2480 = vmatpush3.bf16.msra.mxu1 %v2798_v25 }
  0x22   : > { %2445 = vmatprep.subr.bf16.mxu0 %v2867_v3  ;;  %2481 = vmatprep.subr.bf16.mxu1 %v2867_v3 }
  0x25   : > { %2446 = vmatpush3.bf16.msra.mxu0 %v2799_v26  ;;  %2482 = vmatpush3.bf16.msra.mxu1 %v2800_v27 }
  0x26   : > { %2503 = vmatprep.subr.bf16.mxu0 %v2867_v3  ;;  %2539 = vmatprep.subr.bf16.mxu1 %v2867_v3 }
  0x86   : > { %v3063_v50 = vpop.permute.xlu1 %400  ;;  %v3065_v51 = vpop.permute.xlu0 %390 }
  0x87   : > { %v3068_v56 = vmul.f32 %v3063_v50, %v380_v44  ;;  %v3071_v57 = vmul.f32 %v3065_v51, %v378_v45  ;;  %v2804_v44 = vld [vmem:[%s3573_s3 + $0x90] sm:$0xff]  }
  0x89   : > { %464 = vst [vmem:[#allocation2 + $0x1b] sm:$0xff] %v3068_v56  ;;  %462 = vst [vmem:[#allocation2 + $0xb] sm:$0xff] %v3071_v57 }
  0x8a   : > { %v3077_v62 = vpop.permute.xlu1 %405  ;;  %v3079_v63 = vpop.permute.xlu0 %395 }
  0x8b   : > { %v3082_v5 = vmul.f32 %v3077_v62, %v381_v58  ;;  %v3085_v6 = vmul.f32 %v3079_v63, %v379_v59  ;;  %v2808_v58 = vld [vmem:[%s3573_s3 + $0xa0] sm:$0xff]   ;;  %v2809_v59 = vld [vmem:[%s3573_s3 + $0xd8] sm:$0xff]  }
  0x8d   : > { %465 = vst [vmem:[#allocation2 + $0x23] sm:$0xff] %v3082_v5  ;;  %463 = vst [vmem:[#allocation2 + $0x13] sm:$0xff] %v3085_v6  ;;  %v1113_v9 = vpack.c.bf16 %v3085_v6, %v3071_v57  ;;  %v1114_v10 = vpack.c.bf16 %v3082_v5, %v3068_v56  ;;  %v2837_v57 = vld [vmem:[%s3573_s3 + $0x1c8] sm:$0xff]  }
  0x8e   : > { %v3093_v11 = vpop.permute.xlu1 %415  ;;  %v3095_v12 = vpop.permute.xlu0 %410 }
  0x8f   : > { %v3098_v16 = vmul.f32 %v3093_v11, %v383_v0  ;;  %v3101_v17 = vmul.f32 %v3095_v12, %v382_v1  ;;  %v2810_v0 = vld [vmem:[%s3573_s3 + $0xa8] sm:$0xff]   ;;  %v2811_v1 = vld [vmem:[%s3573_s3 + $0xe0] sm:$0xff]  }
  0x90   : > { %v504_v20 = vld [vmem:[#allocation2 + $0x9] sm:$0xff] }
  0x91   : > { %v473_v21 = vld [vmem:[#allocation2 + $0x8] sm:$0xff]  ;;  %467 = vst [vmem:[#allocation2 + $0x33] sm:$0xff] %v3098_v16  ;;  %466 = vst [vmem:[#allocation2 + $0x2b] sm:$0xff] %v3101_v17  ;;  %v513_v23 = vpack.c.bf16 %v504_v20, %v503_v15  ;;  %v1115_v25 = vpack.c.bf16 %v3098_v16, %v3101_v17  ;;  %v2815_v20 = vld [vmem:[%s3573_s3 + $0xb8] sm:$0xff]  }
  0x92   : > { %v482_v24 = vpack.c.bf16 %v473_v21, %v2867_v3  ;;  %v3111_v26 = vpop.permute.xlu1 %425  ;;  %v3113_v27 = vpop.permute.xlu0 %420  ;;  %v2844_v17 = vld [vmem:[%s3573_s3 + $0x1e8] sm:$0xff]  }
  0x93   : > { %v3119_v29 = vmul.f32 %v3111_v26, %v385_v13  ;;  %v3122_v30 = vmul.f32 %v3113_v27, %v384_v14  ;;  %2448 = vmatmul.mubr.bf16.vlgmr.msra.gmra.mrb[0].mxu0 %v513_v23  ;;  %v2813_v14 = vld [vmem:[%s3573_s3 + $0xb0] sm:$0xff]  }
  0x94   : > { %2484 = vmatmul.mubr.bf16.vlgmr.msra.gmra.mrb[0].mxu1 %v482_v24  ;;  %2504 = vmatpush3.bf16.msra.mxu0 %v2801_v22  ;;  %v505_v34 = vld [vmem:[#allocation2 + $0x11] sm:$0xff]  ;;  %v506_v39 = vld [vmem:[#allocation2 + $0x19] sm:$0xff]  ;;  %v507_v52 = vld [vmem:[#allocation2 + $0x21] sm:$0xff] }
  0x95   : > { %2451 = vmatprep.mubr.msk.bf16.mxu0 %vm2868_vm0, %v2867_v3  ;;  %469 = vst [vmem:[#allocation2 + $0x43] sm:$0xff] %v3119_v29  ;;  %468 = vst [vmem:[#allocation2 + $0x3b] sm:$0xff] %v3122_v30  ;;  %2505 = vmatprep.subr.bf16.mxu0 %v2867_v3  ;;  %v1116_v36 = vpack.c.bf16 %v3119_v29, %v3122_v30  ;;  %v474_v40 = vld [vmem:[#allocation2 + $0x10] sm:$0xff]  ;;  %v475_v41 = vld [vmem:[#allocation2 + $0x18] sm:$0xff]  ;;  %v514_v45 = vpack.c.bf16 %v506_v39, %v505_v34 }
  0x96   : > { %2487 = vmatprep.mubr.msk.bf16.mxu1 %vm2868_vm0, %v2867_v3  ;;  %v3139_v37 = vpop.permute.xlu1 %435  ;;  %v3141_v38 = vpop.permute.xlu0 %430  ;;  %2540 = vmatpush3.bf16.msra.mxu1 %v2803_v28  ;;  %v483_v46 = vpack.c.bf16 %v475_v41, %v474_v40  ;;  %v476_v54 = vld [vmem:[#allocation2 + $0x20] sm:$0xff]  ;;  %v2816_v28 = vld [vmem:[%s3573_s3 + $0xf8] sm:$0xff]   ;;  %v778_v34 = vld [vmem:[#allocation2 + $0xa] sm:$0xff] }
  0x97   : > { %v3144_v42 = vmul.f32 %v3139_v37, %v387_v31  ;;  %v3147_v43 = vmul.f32 %v3141_v38, %v386_v32  ;;  %2541 = vmatprep.subr.bf16.mxu1 %v2867_v3  ;;  %v2817_v39 = vld [vmem:[%s3573_s3 + $0x100] sm:$0xff]   ;;  %v2848_v30 = vld [vmem:[%s3573_s3 + $0x1f8] sm:$0xff]  }
  0x98   : > { %2506 = vmatpush3.bf16.msra.mxu0 %v2802_v33  ;;  %v508_v53 = vld [vmem:[#allocation2 + $0x29] sm:$0xff]  ;;  %v509_v8 = vld [vmem:[#allocation2 + $0x31] sm:$0xff]  ;;  %v3330_v6 = vld [vmem:[#allocation2 + $0x1c] sm:$0xff] }
  0x99   : > { %471 = vst [vmem:[#allocation2 + $0x53] sm:$0xff] %v3144_v42  ;;  %470 = vst [vmem:[#allocation2 + $0x4b] sm:$0xff] %v3147_v43  ;;  %2507 = vmatprep.subr.bf16.mxu0 %v2867_v3  ;;  %v1117_v47 = vpack.c.bf16 %v3144_v42, %v3147_v43  ;;  %v477_v55 = vld [vmem:[#allocation2 + $0x28] sm:$0xff]  ;;  %v515_v60 = vpack.c.bf16 %v508_v53, %v507_v52  ;;  %v478_v13 = vld [vmem:[#allocation2 + $0x30] sm:$0xff] }
  0x9a   : > { %2542 = vmatpush3.bf16.msra.mxu1 %v2805_v35  ;;  %v484_v61 = vpack.c.bf16 %v477_v55, %v476_v54  ;;  %v777_v33 = vld [vmem:[#allocation2 + $0x2] sm:$0xff]  ;;  %v941_v35 = vld [vmem:[#allocation2 + $0x12] sm:$0xff] }
  0x9b   : > { %2452 = vmatmul.mubr.bf16.gmra.mrb[4].mxu0 %v514_v45  ;;  %2543 = vmatprep.subr.bf16.mxu1 %v2867_v3  ;;  %v787_v40 = vpack.c.bf16 %v778_v34, %v777_v33  ;;  %v950_v41 = vpack.c.bf16 %v941_v35, %v778_v34  ;;  %v2818_v45 = vld [vmem:[%s3573_s3 + $0x108] sm:$0xff]   ;;  %v2820_v52 = vld [vmem:[%s3573_s3 + $0x110] sm:$0xff]   ;;  %v2833_v34 = vld [vmem:[%s3573_s3 + $0x180] sm:$0xff]  }
  0x9c   : > { %2488 = vmatmul.mubr.bf16.gmra.mrb[4].mxu1 %v483_v46  ;;  %2508 = vmatpush3.bf16.msra.mxu0 %v2804_v44  ;;  %v510_v2 = vld [vmem:[#allocation2 + $0x39] sm:$0xff]  ;;  %v511_v23 = vld [vmem:[#allocation2 + $0x41] sm:$0xff]  ;;  %v2823_v55 = vld [vmem:[%s3573_s3 + $0x150] sm:$0xff]  }
  0x9d   : > { %2455 = vmatprep.mubr.msk.bf16.mxu0 %vm2868_vm0, %v2867_v3  ;;  %2509 = vmatprep.subr.bf16.mxu0 %v2867_v3  ;;  %v479_v4 = vld [vmem:[#allocation2 + $0x38] sm:$0xff]  ;;  %v516_v15 = vpack.c.bf16 %v510_v2, %v509_v8  ;;  %v480_v24 = vld [vmem:[#allocation2 + $0x40] sm:$0xff]  ;;  %v3357_v5 = vld [vmem:[#allocation2 + $0x2c] sm:$0xff] }
  0x9e   : > { %2491 = vmatprep.mubr.msk.bf16.mxu1 %vm2868_vm0, %v2867_v3  ;;  %2544 = vmatpush3.bf16.msra.mxu1 %v2807_v48  ;;  %v485_v18 = vpack.c.bf16 %v479_v4, %v478_v13  ;;  %v2819_v44 = vld [vmem:[%s3573_s3 + $0x140] sm:$0xff]   ;;  %v2826_v4 = vld [vmem:[%s3573_s3 + $0x128] sm:$0xff]   ;;  %v3304_v33 = vld [vmem:[#allocation2 + $0x14] sm:$0xff] }
  0x9f   : > { %2545 = vmatprep.subr.bf16.mxu1 %v2867_v3  ;;  %v780_v46 = vld [vmem:[#allocation2 + $0x1a] sm:$0xff]  ;;  %v943_v48 = vld [vmem:[#allocation2 + $0x22] sm:$0xff]  ;;  %v1439_v42 = vpack.c.bf16 %v3330_v6, %v3304_v33 }
  0xa0   : > { %2510 = vmatpush3.bf16.msra.mxu0 %v2806_v49  ;;  %v512_v21 = vld [vmem:[#allocation2 + $0x49] sm:$0xff]  ;;  %v788_v53 = vpack.c.bf16 %v780_v46, %v941_v35  ;;  %v951_v54 = vpack.c.bf16 %v943_v48, %v780_v46  ;;  %v784_v8 = vld [vmem:[#allocation2 + $0x3a] sm:$0xff] }
  0xa1   : > { %2511 = vmatprep.subr.bf16.mxu0 %v2867_v3  ;;  %v481_v22 = vld [vmem:[#allocation2 + $0x48] sm:$0xff]  ;;  %v517_v31 = vpack.c.bf16 %v512_v21, %v511_v23  ;;  %v2831_v21 = vld [vmem:[%s3573_s3 + $0x138] sm:$0xff]  }
  0xa2   : > { %2546 = vmatpush3.bf16.msra.mxu1 %v2809_v59  ;;  %v486_v32 = vpack.c.bf16 %v481_v22, %v480_v24  ;;  %v2821_v49 = vld [vmem:[%s3573_s3 + $0x148] sm:$0xff]   ;;  %v949_v23 = vld [vmem:[#allocation2 + $0x52] sm:$0xff]  ;;  %v3386_v16 = vld [vmem:[#allocation2 + $0x3c] sm:$0xff] }
  0xa3   : > { %2456 = vmatmul.mubr.bf16.gmra.mrb[8].mxu0 %v515_v60  ;;  %2547 = vmatprep.subr.bf16.mxu1 %v2867_v3  ;;  %v782_v59 = vld [vmem:[#allocation2 + $0x2a] sm:$0xff]  ;;  %v945_v60 = vld [vmem:[#allocation2 + $0x32] sm:$0xff]  ;;  %v947_v13 = vld [vmem:[#allocation2 + $0x42] sm:$0xff] }
  0xa4   : > { %2492 = vmatmul.mubr.bf16.gmra.mrb[8].mxu1 %v484_v61  ;;  %2512 = vmatpush3.bf16.msra.mxu0 %v2808_v58  ;;  %v2822_v58 = vld [vmem:[%s3573_s3 + $0x118] sm:$0xff]   ;;  %v2824_v61 = vld [vmem:[%s3573_s3 + $0x120] sm:$0xff]   ;;  %v952_v2 = vpack.c.bf16 %v945_v60, %v782_v59  ;;  %v786_v22 = vld [vmem:[#allocation2 + $0x4a] sm:$0xff] }
  0xa5   : > { %2459 = vmatprep.mubr.msk.bf16.mxu0 %vm2868_vm0, %v2867_v3  ;;  %2495 = vmatprep.mubr.msk.bf16.mxu1 %vm2868_vm0, %v2867_v3  ;;  %v2832_v24 = vld [vmem:[%s3573_s3 + $0x178] sm:$0xff]  }
  0xa6   : > { %2513 = vmatprep.subr.bf16.mxu0 %v2867_v3  ;;  %2548 = vmatpush3.bf16.msra.mxu1 %v2811_v1  ;;  %v789_v1 = vpack.c.bf16 %v782_v59, %v943_v48  ;;  %v2838_v46 = vld [vmem:[%s3573_s3 + $0x198] sm:$0xff]  }
  0xa7   : > { %2549 = vmatprep.subr.bf16.mxu1 %v2867_v3  ;;  %v3354_v56 = vld [vmem:[#allocation2 + $0x34] sm:$0xff] }
  0xa8   : > { %2514 = vmatpush3.bf16.msra.mxu0 %v2810_v0  ;;  %v2825_v0 = vld [vmem:[%s3573_s3 + $0x158] sm:$0xff]  }
  0xa9   : > { %2515 = vmatprep.subr.bf16.mxu0 %v2867_v3  ;;  %v2841_v48 = vld [vmem:[%s3573_s3 + $0x1d8] sm:$0xff]  }
  0xaa   : > { %2550 = vmatpush3.bf16.msra.mxu1 %v2812_v7  ;;  %v2827_v7 = vld [vmem:[%s3573_s3 + $0x160] sm:$0xff]   ;;  %v2847_v59 = vld [vmem:[%s3573_s3 + $0x1b8] sm:$0xff]  }
  0xab   : > { %2460 = vmatmul.mubr.bf16.gmra.mrb[12].mxu0 %v516_v15  ;;  %2551 = vmatprep.subr.bf16.mxu1 %v2867_v3  ;;  %v2829_v15 = vld [vmem:[%s3573_s3 + $0x130] sm:$0xff]  }
  0xac   : > { %2496 = vmatmul.mubr.bf16.gmra.mrb[12].mxu1 %v485_v18  ;;  %2516 = vmatpush3.bf16.msra.mxu0 %v2813_v14  ;;  %v2828_v14 = vld [vmem:[%s3573_s3 + $0x168] sm:$0xff]   ;;  %v790_v18 = vpack.c.bf16 %v784_v8, %v945_v60  ;;  %v3413_v29 = vld [vmem:[#allocation2 + $0x54] sm:$0xff] }
  0xad   : > { %2463 = vmatprep.mubr.msk.bf16.mxu0 %vm2868_vm0, %v2867_v3  ;;  %2499 = vmatprep.mubr.msk.bf16.mxu1 %vm2868_vm0, %v2867_v3  ;;  %v3411_v60 = vld [vmem:[#allocation2 + $0x4c] sm:$0xff] }
  0xae   : > { %2517 = vmatprep.subr.bf16.mxu0 %v2867_v3  ;;  %2552 = vmatpush3.bf16.msra.mxu1 %v2814_v19  ;;  %v953_v19 = vpack.c.bf16 %v947_v13, %v784_v8 }
  0xaf   : > { %2553 = vmatprep.subr.bf16.mxu1 %v2867_v3 }
  0xb0   : > { %2518 = vmatpush3.bf16.msra.mxu0 %v2815_v20  ;;  %v2830_v20 = vld [vmem:[%s3573_s3 + $0x170] sm:$0xff]  }
  0xb1   : > { %2575 = vmatprep.subr.bf16.mxu0 %v2867_v3 }
  0xb2   : > { %2554 = vmatpush3.bf16.msra.mxu1 %v2816_v28  ;;  %v791_v28 = vpack.c.bf16 %v786_v22, %v947_v13 }
  0xb3   : > { %2464 = vmatmul.mubr.bf16.gmra.mrb[16].mxu0 %v517_v31  ;;  %2611 = vmatprep.subr.bf16.mxu1 %v2867_v3  ;;  %v954_v31 = vpack.c.bf16 %v949_v23, %v786_v22  ;;  %v2854_v22 = vld [vmem:[%s3573_s3 + $0x228] sm:$0xff]  }
  0xb4   : > { %2500 = vmatmul.mubr.bf16.gmra.mrb[16].mxu1 %v486_v32  ;;  %2519 = vmatprep.mubr.msk.bf16.mxu0 %vm2868_vm0, %v2867_v3  ;;  %v1266_v32 = vld [vmem:[#allocation2 + $0xc] sm:$0xff] }
  0xb5   : > { %2555 = vmatprep.mubr.msk.bf16.mxu1 %vm2868_vm0, %v2867_v3  ;;  %v1276_v35 = vpack.c.bf16 %v3304_v33, %v1266_v32  ;;  %v1598_v23 = vld [vmem:[#allocation2 + $0x45] sm:$0xff]  ;;  %v2856_v33 = vld [vmem:[%s3573_s3 + $0x238] sm:$0xff]  }
  0xbb   : > { %2520 = vmatmul.mubr.bf16.vlgmr.msra.gmra.mrb[20].mxu0 %v787_v40  ;;  %v2834_v40 = vld [vmem:[%s3573_s3 + $0x188] sm:$0xff]  }
  0xbc   : > { %2556 = vmatmul.mubr.bf16.vlgmr.msra.gmra.mrb[20].mxu1 %v950_v41  ;;  %2576 = vmatpush3.bf16.msra.mxu0 %v2817_v39  ;;  %v2835_v39 = vld [vmem:[%s3573_s3 + $0x1c0] sm:$0xff]  }
  0xbd   : > { %2523 = vmatprep.mubr.msk.bf16.mxu0 %vm2868_vm0, %v2867_v3  ;;  %2577 = vmatprep.subr.bf16.mxu0 %v2867_v3  ;;  %v3324_v41 = vld [vmem:[#allocation2 + $0x24] sm:$0xff] }
  0xbe   : > { %2559 = vmatprep.mubr.msk.bf16.mxu1 %vm2868_vm0, %v2867_v3  ;;  %2612 = vmatpush3.bf16.msra.mxu1 %v2819_v44  ;;  %v1277_v44 = vpack.c.bf16 %v3324_v41, %v3330_v6  ;;  %v1440_v8 = vpack.c.bf16 %v3357_v5, %v3324_v41  ;;  %v1756_v6 = vld [vmem:[#allocation2 + $0x1e] sm:$0xff] }
  0xbf   : > { %2613 = vmatprep.subr.bf16.mxu1 %v2867_v3 }
  0xc0   : > { %2578 = vmatpush3.bf16.msra.mxu0 %v2818_v45  ;;  %v3337_v45 = vld [vmem:[#allocation2] sm:$0xff] }
  0xc1   : > { %2579 = vmatprep.subr.bf16.mxu0 %v2867_v3 }
  0xc2   : > { %2614 = vmatpush3.bf16.msra.mxu1 %v2821_v49  ;;  %v1278_v49 = vpack.c.bf16 %v3354_v56, %v3357_v5  ;;  %v1757_v5 = vld [vmem:[#allocation2 + $0x26] sm:$0xff] }
  0xc3   : > { %2524 = vmatmul.mubr.bf16.gmra.mrb[24].mxu0 %v788_v53  ;;  %2615 = vmatprep.subr.bf16.mxu1 %v2867_v3  ;;  %v2843_v53 = vld [vmem:[%s3573_s3 + $0x1e0] sm:$0xff]  }
  0xc4   : > { %2560 = vmatmul.mubr.bf16.gmra.mrb[24].mxu1 %v951_v54  ;;  %2580 = vmatpush3.bf16.msra.mxu0 %v2820_v52  ;;  %v2842_v52 = vld [vmem:[%s3573_s3 + $0x1a8] sm:$0xff]  }
  0xc5   : > { %2527 = vmatprep.mubr.msk.bf16.mxu0 %vm2868_vm0, %v2867_v3  ;;  %2581 = vmatprep.subr.bf16.mxu0 %v2867_v3  ;;  %v3382_v54 = vld [vmem:[#allocation2 + $0x44] sm:$0xff] }
  0xc6   : > { %2563 = vmatprep.mubr.msk.bf16.mxu1 %vm2868_vm0, %v2867_v3  ;;  %2616 = vmatpush3.bf16.msra.mxu1 %v2823_v55  ;;  %v1279_v55 = vpack.c.bf16 %v3382_v54, %v3386_v16 }
  0xc7   : > { %2617 = vmatprep.subr.bf16.mxu1 %v2867_v3 }
  0xc8   : > { %2582 = vmatpush3.bf16.msra.mxu0 %v2822_v58  ;;  %v2846_v58 = vld [vmem:[%s3573_s3 + $0x1f0] sm:$0xff]  }
  0xc9   : > { %2583 = vmatprep.subr.bf16.mxu0 %v2867_v3 }
  0xca   : > { %2618 = vmatpush3.bf16.msra.mxu1 %v2825_v0  ;;  %v1593_v0 = vld [vmem:[#allocation2 + $0x1d] sm:$0xff] }
  0xcb   : > { %2528 = vmatmul.mubr.bf16.gmra.mrb[28].mxu0 %v789_v1  ;;  %2619 = vmatprep.subr.bf16.mxu1 %v2867_v3  ;;  %v2849_v1 = vld [vmem:[%s3573_s3 + $0x200] sm:$0xff]  }
  0xcc   : > { %2564 = vmatmul.mubr.bf16.gmra.mrb[28].mxu1 %v952_v2  ;;  %2584 = vmatpush3.bf16.msra.mxu0 %v2824_v61  ;;  %v1592_v61 = vld [vmem:[#allocation2 + $0x15] sm:$0xff]  ;;  %v1594_v2 = vld [vmem:[#allocation2 + $0x25] sm:$0xff] }
  0xcd   : > { %2531 = vmatprep.mubr.msk.bf16.mxu0 %vm2868_vm0, %v2867_v3  ;;  %2567 = vmatprep.mubr.msk.bf16.mxu1 %vm2868_vm0, %v2867_v3  ;;  %v1602_v43 = vpack.c.bf16 %v1593_v0, %v1592_v61 }
  0xce   : > { %2585 = vmatprep.subr.bf16.mxu0 %v2867_v3  ;;  %2620 = vmatpush3.bf16.msra.mxu1 %v2827_v7  ;;  %v2851_v7 = vld [vmem:[%s3573_s3 + $0x210] sm:$0xff]  }
  0xcf   : > { %2621 = vmatprep.subr.bf16.mxu1 %v2867_v3 }
  0xd0   : > { %2586 = vmatpush3.bf16.msra.mxu0 %v2826_v4  ;;  %v1595_v4 = vld [vmem:[#allocation2 + $0x2d] sm:$0xff] }
  0xd1   : > { %2587 = vmatprep.subr.bf16.mxu0 %v2867_v3  ;;  %v1603_v13 = vpack.c.bf16 %v1595_v4, %v1594_v2 }
  0xd2   : > { %2622 = vmatpush3.bf16.msra.mxu1 %v2828_v14  ;;  %v2852_v14 = vld [vmem:[%s3573_s3 + $0x218] sm:$0xff]  }
  0xd3   : > { %2532 = vmatmul.mubr.bf16.gmra.mrb[32].mxu0 %v790_v18  ;;  %2623 = vmatprep.subr.bf16.mxu1 %v2867_v3  ;;  %v1597_v18 = vld [vmem:[#allocation2 + $0x3d] sm:$0xff] }
  0xd4   : > { %2568 = vmatmul.mubr.bf16.gmra.mrb[32].mxu1 %v953_v19  ;;  %2588 = vmatpush3.bf16.msra.mxu0 %v2829_v15  ;;  %v1596_v15 = vld [vmem:[#allocation2 + $0x35] sm:$0xff]  ;;  %v2853_v19 = vld [vmem:[%s3573_s3 + $0x220] sm:$0xff]  }
  0xd5   : > { %2535 = vmatprep.mubr.msk.bf16.mxu0 %vm2868_vm0, %v2867_v3  ;;  %2571 = vmatprep.mubr.msk.bf16.mxu1 %vm2868_vm0, %v2867_v3 }
  0xd6   : > { %2589 = vmatprep.subr.bf16.mxu0 %v2867_v3  ;;  %2624 = vmatpush3.bf16.msra.mxu1 %v2830_v20  ;;  %v1441_v20 = vpack.c.bf16 %v3386_v16, %v3354_v56  ;;  %v1764_v56 = vld [vmem:[#allocation2 + $0x5e] sm:$0xff] }
  0xd7   : > { %2625 = vmatprep.subr.bf16.mxu1 %v2867_v3 }
  0xd8   : > { %2590 = vmatpush3.bf16.msra.mxu0 %v2831_v21  ;;  %v1604_v21 = vpack.c.bf16 %v1597_v18, %v1596_v15 }
  0xd9   : > { %2647 = vmatprep.subr.bf16.mxu0 %v2867_v3 }
  0xda   : > { %2626 = vmatpush3.bf16.msra.mxu1 %v2832_v24  ;;  %v1599_v24 = vld [vmem:[#allocation2 + $0x4d] sm:$0xff] }
  0xdb   : > { %2536 = vmatmul.mubr.bf16.gmra.mrb[36].mxu0 %v791_v28  ;;  %2683 = vmatprep.subr.bf16.mxu1 %v2867_v3  ;;  %v2855_v28 = vld [vmem:[%s3573_s3 + $0x230] sm:$0xff]   ;;  %v1605_v32 = vpack.c.bf16 %v1599_v24, %v1598_v23 }
  0xdc   : > { %2572 = vmatmul.mubr.bf16.gmra.mrb[36].mxu1 %v954_v31  ;;  %2591 = vmatprep.mubr.msk.bf16.mxu0 %vm2868_vm0, %v2867_v3  ;;  %v1442_v31 = vpack.c.bf16 %v3411_v60, %v3382_v54  ;;  %v1760_v54 = vld [vmem:[#allocation2 + $0x3e] sm:$0xff] }
  0xdd   : > { %2627 = vmatprep.mubr.msk.bf16.mxu1 %vm2868_vm0, %v2867_v3 }
  0xe3   : > { %2592 = vmatmul.mubr.bf16.vlgmr.msra.gmra.mrb[40].mxu0 %v1113_v9  ;;  %v2836_v9 = vld [vmem:[%s3573_s3 + $0x190] sm:$0xff]  }
  0xe4   : > { %2628 = vmatmul.mubr.bf16.vlgmr.msra.gmra.mrb[40].mxu1 %v1276_v35  ;;  %2648 = vmatpush3.bf16.msra.mxu0 %v2833_v34  ;;  %v1438_v34 = vld [vmem:[#allocation2 + $0x5c] sm:$0xff] }
  0xe5   : > { %2595 = vmatprep.mubr.msk.bf16.mxu0 %vm2868_vm0, %v2867_v3  ;;  %2649 = vmatprep.subr.bf16.mxu0 %v2867_v3  ;;  %v1600_v35 = vld [vmem:[#allocation2 + $0x55] sm:$0xff] }
  0xe6   : > { %2631 = vmatprep.mubr.msk.bf16.mxu1 %vm2868_vm0, %v2867_v3  ;;  %2684 = vmatpush3.bf16.msra.mxu1 %v2835_v39  ;;  %v1601_v39 = vld [vmem:[#allocation2 + $0x5d] sm:$0xff] }
  0xe7   : > { %2685 = vmatprep.subr.bf16.mxu1 %v2867_v3  ;;  %v2839_v3 = vld [vmem:[%s3573_s3 + $0x1d0] sm:$0xff]   ;;  %v1606_v41 = vpack.c.bf16 %v1601_v39, %v1600_v35 }
  0xe8   : > { %2650 = vmatpush3.bf16.msra.mxu0 %v2834_v40  ;;  %v1443_v40 = vpack.c.bf16 %v1438_v34, %v3413_v29 }
  0xe9   : > { %2651 = vmatprep.subr.bf16.mxu0 %v3337_v45 }
  0xea   : > { %2686 = vmatpush3.bf16.msra.mxu1 %v2837_v57  ;;  %v1755_v57 = vld [vmem:[#allocation2 + $0x16] sm:$0xff] }
  0xeb   : > { %2596 = vmatmul.mubr.bf16.gmra.mrb[44].mxu0 %v1114_v10  ;;  %2687 = vmatprep.subr.bf16.mxu1 %v3337_v45  ;;  %v2840_v10 = vld [vmem:[%s3573_s3 + $0x1a0] sm:$0xff]  }
  0xec   : > { %2632 = vmatmul.mubr.bf16.gmra.mrb[44].mxu1 %v1277_v44  ;;  %2652 = vmatpush3.bf16.msra.mxu0 %v2836_v9  ;;  %v1761_v9 = vld [vmem:[#allocation2 + $0x46] sm:$0xff]  ;;  %v1762_v44 = vld [vmem:[#allocation2 + $0x4e] sm:$0xff] }
  0xed   : > { %2599 = vmatprep.mubr.msk.bf16.mxu0 %vm2868_vm0, %v3337_v45  ;;  %2653 = vmatprep.subr.bf16.mxu0 %v3337_v45 }
  0xee   : > { %2635 = vmatprep.mubr.msk.bf16.mxu1 %vm2868_vm0, %v3337_v45  ;;  %2688 = vmatpush3.bf16.msra.mxu1 %v2839_v3  ;;  %v1765_v3 = vpack.c.bf16 %v1756_v6, %v1755_v57 }
  0xef   : > { %2689 = vmatprep.subr.bf16.mxu1 %v3337_v45 }
  0xf0   : > { %2654 = vmatpush3.bf16.msra.mxu0 %v2838_v46  ;;  %v1768_v46 = vpack.c.bf16 %v1762_v44, %v1761_v9 }
  0xf1   : > { %2655 = vmatprep.subr.bf16.mxu0 %v3337_v45 }
  0xf2   : > { %2690 = vmatpush3.bf16.msra.mxu1 %v2841_v48  ;;  %v1763_v48 = vld [vmem:[#allocation2 + $0x56] sm:$0xff] }
  0xf3   : > { %2600 = vmatmul.mubr.bf16.gmra.mrb[48].mxu0 %v1115_v25  ;;  %2691 = vmatprep.subr.bf16.mxu1 %v3337_v45  ;;  %v2845_v25 = vld [vmem:[%s3573_s3 + $0x1b0] sm:$0xff]  }
  0xf4   : > { %2636 = vmatmul.mubr.bf16.gmra.mrb[48].mxu1 %v1278_v49  ;;  %2656 = vmatpush3.bf16.msra.mxu0 %v2840_v10  ;;  %v1758_v10 = vld [vmem:[#allocation2 + $0x2e] sm:$0xff] }
  0xf5   : > { %2603 = vmatprep.mubr.msk.bf16.mxu0 %vm2868_vm0, %v3337_v45  ;;  %2639 = vmatprep.mubr.msk.bf16.mxu1 %vm2868_vm0, %v3337_v45  ;;  %v1766_v49 = vpack.c.bf16 %v1758_v10, %v1757_v5 }
  0xf6   : > { %2657 = vmatprep.subr.bf16.mxu0 %v3337_v45  ;;  %2692 = vmatpush3.bf16.msra.mxu1 %v2843_v53  ;;  %v1759_v53 = vld [vmem:[#allocation2 + $0x36] sm:$0xff] }
  0xf7   : > { %2693 = vmatprep.subr.bf16.mxu1 %v3337_v45  ;;  %v1767_v16 = vpack.c.bf16 %v1760_v54, %v1759_v53 }
  0xf8   : > { %2658 = vmatpush3.bf16.msra.mxu0 %v2842_v52  ;;  %v1769_v52 = vpack.c.bf16 %v1764_v56, %v1763_v48 }
  0xf9   : > { %2659 = vmatprep.subr.bf16.mxu0 %v3337_v45 }
  0xfa   : > { %2694 = vmatpush3.bf16.msra.mxu1 %v2844_v17 }
  0xfb   : > { %2604 = vmatmul.mubr.bf16.gmra.mrb[52].mxu0 %v1116_v36  ;;  %2695 = vmatprep.subr.bf16.mxu1 %v3337_v45  ;;  %v1280_v36 = vpack.c.bf16 %v3413_v29, %v3411_v60 }
  0xfc   : > { %2640 = vmatmul.mubr.bf16.gmra.mrb[52].mxu1 %v1279_v55  ;;  %2660 = vmatpush3.bf16.msra.mxu0 %v2845_v25 }
  0xfd   : > { %2607 = vmatprep.mubr.msk.bf16.mxu0 %vm2868_vm0, %v3337_v45  ;;  %2643 = vmatprep.mubr.msk.bf16.mxu1 %vm2868_vm0, %v3337_v45 }
  0xfe   : > { %2661 = vmatprep.subr.bf16.mxu0 %v3337_v45  ;;  %2696 = vmatpush3.bf16.msra.mxu1 %v2846_v58 }
  0xff   : > { %2697 = vmatprep.subr.bf16.mxu1 %v3337_v45 }
 0x100   : > { %2662 = vmatpush3.bf16.msra.mxu0 %v2847_v59 }
 0x101   : > { %2719 = vmatprep.subr.bf16.mxu0 %v3337_v45 }
 0x102   : > { %2698 = vmatpush3.bf16.msra.mxu1 %v2848_v30 }
 0x103   : > { %2608 = vmatmul.mubr.bf16.gmra.mrb[56].mxu0 %v1117_v47  ;;  %2755 = vmatprep.subr.bf16.mxu1 %v3337_v45  ;;  %v2850_v47 = vld [vmem:[%s3573_s3 + $0x208] sm:$0xff]  }
 0x104   : > { %2644 = vmatmul.mubr.bf16.gmra.mrb[56].mxu1 %v1280_v36  ;;  %2663 = vmatprep.mubr.msk.bf16.mxu0 %vm2868_vm0, %v3337_v45 }
 0x105   : > { %2699 = vmatprep.mubr.msk.bf16.mxu1 %vm2868_vm0, %v3337_v45 }
 0x10b   : > { %2664 = vmatmul.mubr.bf16.vlgmr.msra.gmra.mrb[60].mxu0 %v1439_v42 }
 0x10c   : > { %2700 = vmatmul.mubr.bf16.vlgmr.msra.gmra.mrb[60].mxu1 %v1602_v43  ;;  %2720 = vmatpush3.bf16.msra.mxu0 %v2849_v1 }
 0x10d   : > { %2667 = vmatprep.mubr.msk.bf16.mxu0 %vm2868_vm0, %v3337_v45  ;;  %2721 = vmatprep.subr.bf16.mxu0 %v3337_v45 }
 0x10e   : > { %2703 = vmatprep.mubr.msk.bf16.mxu1 %vm2868_vm0, %v3337_v45  ;;  %2763 = vmatpush3.bf16.msra.mxu1 %v2849_v1 }
 0x10f   : > { %2756 = vmatprep.subr.bf16.mxu1 %v3337_v45 }
 0x110   : > { %2722 = vmatpush3.bf16.msra.mxu0 %v2850_v47 }
 0x111   : > { %2723 = vmatprep.subr.bf16.mxu0 %v3337_v45 }
 0x112   : > { %2764 = vmatpush3.bf16.msra.mxu1 %v2850_v47 }
 0x113   : > { %2668 = vmatmul.mubr.bf16.gmra.mrb[64].mxu0 %v1440_v8  ;;  %2757 = vmatprep.subr.bf16.mxu1 %v3337_v45 }
 0x114   : > { %2704 = vmatmul.mubr.bf16.gmra.mrb[64].mxu1 %v1603_v13  ;;  %2724 = vmatpush3.bf16.msra.mxu0 %v2851_v7 }
 0x115   : > { %2671 = vmatprep.mubr.msk.bf16.mxu0 %vm2868_vm0, %v3337_v45  ;;  %2725 = vmatprep.subr.bf16.mxu0 %v3337_v45 }
 0x116   : > { %2707 = vmatprep.mubr.msk.bf16.mxu1 %vm2868_vm0, %v3337_v45  ;;  %2765 = vmatpush3.bf16.msra.mxu1 %v2851_v7 }
 0x117   : > { %2758 = vmatprep.subr.bf16.mxu1 %v3337_v45 }
 0x118   : > { %2726 = vmatpush3.bf16.msra.mxu0 %v2852_v14 }
 0x119   : > { %2727 = vmatprep.subr.bf16.mxu0 %v3337_v45 }
 0x11a   : > { %2766 = vmatpush3.bf16.msra.mxu1 %v2852_v14 }
 0x11b   : > { %2672 = vmatmul.mubr.bf16.gmra.mrb[68].mxu0 %v1441_v20  ;;  %2759 = vmatprep.subr.bf16.mxu1 %v3337_v45 }
 0x11c   : > { %2708 = vmatmul.mubr.bf16.gmra.mrb[68].mxu1 %v1604_v21  ;;  %2728 = vmatpush3.bf16.msra.mxu0 %v2853_v19 }
 0x11d   : > { %2675 = vmatprep.mubr.msk.bf16.mxu0 %vm2868_vm0, %v3337_v45  ;;  %2711 = vmatprep.mubr.msk.bf16.mxu1 %vm2868_vm0, %v3337_v45 }
 0x11e   : > { %2729 = vmatprep.subr.bf16.mxu0 %v3337_v45  ;;  %2767 = vmatpush3.bf16.msra.mxu1 %v2853_v19 }
 0x11f   : > { %2760 = vmatprep.subr.bf16.mxu1 %v3337_v45 }
 0x120   : > { %2730 = vmatpush3.bf16.msra.mxu0 %v2854_v22 }
 0x121   : > { %2731 = vmatprep.subr.bf16.mxu0 %v3337_v45 }
 0x122   : > { %2768 = vmatpush3.bf16.msra.mxu1 %v2854_v22 }
 0x123   : > { %2676 = vmatmul.mubr.bf16.gmra.mrb[72].mxu0 %v1442_v31  ;;  %2761 = vmatprep.subr.bf16.mxu1 %v3337_v45 }
 0x124   : > { %2712 = vmatmul.mubr.bf16.gmra.mrb[72].mxu1 %v1605_v32  ;;  %2732 = vmatpush3.bf16.msra.mxu0 %v2855_v28 }
 0x125   : > { %2679 = vmatprep.mubr.msk.bf16.mxu0 %vm2868_vm0, %v3337_v45  ;;  %2715 = vmatprep.mubr.msk.bf16.mxu1 %vm2868_vm0, %v3337_v45 }
 0x126   : > { %2733 = vmatprep.subr.bf16.mxu0 %v3337_v45  ;;  %2769 = vmatpush3.bf16.msra.mxu1 %v2855_v28 }
 0x127   : > { %2762 = vmatprep.subr.bf16.mxu1 %v3337_v45 }
 0x128   : > { %2734 = vmatpush3.bf16.msra.mxu0 %v2856_v33 }
 0x12a   : > { %2770 = vmatpush3.bf16.msra.mxu1 %v2856_v33 }
 0x12b   : > { %2680 = vmatmul.mubr.bf16.gmra.mrb[76].mxu0 %v1443_v40 }
 0x12c   : > { %2716 = vmatmul.mubr.bf16.gmra.mrb[76].mxu1 %v1606_v41  ;;  %2735 = vmatprep.mubr.msk.bf16.mxu0 %vm2868_vm0, %v3337_v45 }
 0x12d   : > { %2747 = vmatprep.mubr.msk.bf16.mxu1 %vm2868_vm0, %v3337_v45 }
 0x133   : > { %2736 = vmatmul.mubr.bf16.vlgmr.msra.gmra.mrb[80].mxu0 %v1765_v3 }
 0x134   : > { %2748 = vmatmul.mubr.bf16.vlgmr.msra.gmra.mrb[80].mxu1 %v1768_v46  ;;  %2739 = vmatprep.mubr.msk.bf16.mxu0 %vm2868_vm0, %v3337_v45 }
 0x135   : > { %2751 = vmatprep.mubr.msk.bf16.mxu1 %vm2868_vm0, %v3337_v45 }
 0x13b   : > { %2740 = vmatmul.mubr.bf16.gmra.mrb[84].mxu0 %v1766_v49 }
 0x13c   : > { %2752 = vmatmul.mubr.bf16.gmra.mrb[84].mxu1 %v1769_v52  ;;  %2743 = vmatprep.mubr.msk.bf16.mxu0 %vm2868_vm0, %v3337_v45 }
 0x143   : > { %2744 = vmatmul.mubr.bf16.gmra.mrb[88].mxu0 %v1767_v16 }
 0x166   : > { %v617_v17 = vpop.f32.mrb[0].mxu0 }
 0x167   : > { %v738_v25 = vpop.f32.mrb[0].mxu1  ;;  %v2449_v58 = vpop.f32.mrb[1].mxu0 }
 0x168   : > { %v739_v55 = vadd.f32 %v738_v25, %v617_v17  ;;  %v2485_v59 = vpop.f32.mrb[1].mxu1  ;;  %v620_v60 = vpop.f32.mrb[2].mxu0 }
 0x169   : > { %v741_v29 = vpop.f32.mrb[2].mxu1  ;;  %v2450_v36 = vpop.f32.mrb[3].mxu0 }
 0x16a   : > { %v742_v30 = vadd.f32 %v741_v29, %v620_v60  ;;  %v2486_v61 = vpop.f32.mrb[3].mxu1 }
 0x16e   : > { %v625_v0 = vpop.f32.mrb[4].mxu0 }
 0x16f   : > { %v746_v1 = vpop.f32.mrb[4].mxu1  ;;  %v2453_v43 = vpop.f32.mrb[5].mxu0 }
 0x170   : > { %v747_v42 = vadd.f32 %v746_v1, %v625_v0  ;;  %v2489_v47 = vpop.f32.mrb[5].mxu1  ;;  %v628_v45 = vpop.f32.mrb[6].mxu0 }
 0x171   : > { %v749_v2 = vpop.f32.mrb[6].mxu1  ;;  %v2454_v7 = vpop.f32.mrb[7].mxu0 }
 0x172   : > { %v750_v4 = vadd.f32 %v749_v2, %v628_v45  ;;  %v2490_v8 = vpop.f32.mrb[7].mxu1 }
 0x176   : > { %v633_v13 = vpop.f32.mrb[8].mxu0 }
 0x177   : > { %v754_v14 = vpop.f32.mrb[8].mxu1  ;;  %v2457_v18 = vpop.f32.mrb[9].mxu0 }
 0x178   : > { %v755_v15 = vadd.f32 %v754_v14, %v633_v13  ;;  %v2493_v19 = vpop.f32.mrb[9].mxu1  ;;  %v636_v20 = vpop.f32.mrb[10].mxu0 }
 0x179   : > { %v757_v21 = vpop.f32.mrb[10].mxu1  ;;  %v2458_v23 = vpop.f32.mrb[11].mxu0 }
 0x17a   : > { %v758_v22 = vadd.f32 %v757_v21, %v636_v20  ;;  %v2494_v24 = vpop.f32.mrb[11].mxu1 }
 0x17e   : > { %v641_v28 = vpop.f32.mrb[12].mxu0 }
 0x17f   : > { %v762_v31 = vpop.f32.mrb[12].mxu1  ;;  %v2461_v33 = vpop.f32.mrb[13].mxu0 }
 0x180   : > { %v763_v32 = vadd.f32 %v762_v31, %v641_v28  ;;  %v2497_v34 = vpop.f32.mrb[13].mxu1  ;;  %v644_v35 = vpop.f32.mrb[14].mxu0 }
 0x181   : > { %v765_v39 = vpop.f32.mrb[14].mxu1  ;;  %v2462_v41 = vpop.f32.mrb[15].mxu0 }
 0x182   : > { %v766_v40 = vadd.f32 %v765_v39, %v644_v35  ;;  %v2498_v57 = vpop.f32.mrb[15].mxu1 }
 0x186   : > { %v649_v6 = vpop.f32.mrb[16].mxu0 }
 0x187   : > { %v770_v9 = vpop.f32.mrb[16].mxu1  ;;  %v2465_v3 = vpop.f32.mrb[17].mxu0 }
 0x188   : > { %v771_v44 = vadd.f32 %v770_v9, %v649_v6  ;;  %v2501_v46 = vpop.f32.mrb[17].mxu1  ;;  %v652_v56 = vpop.f32.mrb[18].mxu0 }
 0x189   : > { %v773_v5 = vpop.f32.mrb[18].mxu1  ;;  %v2466_v48 = vpop.f32.mrb[19].mxu0 }
 0x18a   : > { %v774_v10 = vadd.f32 %v773_v5, %v652_v56  ;;  %v2502_v49 = vpop.f32.mrb[19].mxu1 }
 0x18e   : > { %v891_v52 = vpop.f32.mrb[20].mxu0 }
 0x18f   : > { %v1054_v53 = vpop.f32.mrb[20].mxu1  ;;  %v930_v54 = vadd.f32 %v891_v52, %v739_v55  ;;  %v2521_v16 = vpop.f32.mrb[21].mxu0 }
 0x190   : > { %v2557_v17 = vpop.f32.mrb[21].mxu1  ;;  %v894_v25 = vpop.f32.mrb[22].mxu0 }
 0x191   : > { %v1057_v58 = vpop.f32.mrb[22].mxu1  ;;  %v1093_v59 = vadd.f32 %v1054_v53, %v930_v54  ;;  %v931_v60 = vadd.f32 %v894_v25, %v742_v30  ;;  %v2522_v29 = vpop.f32.mrb[23].mxu0 }
 0x192   : > { %v2558_v36 = vpop.f32.mrb[23].mxu1 }
 0x193   : > { %v1094_v61 = vadd.f32 %v1057_v58, %v931_v60 }
 0x196   : > { %v899_v0 = vpop.f32.mrb[24].mxu0 }
 0x197   : > { %v1062_v1 = vpop.f32.mrb[24].mxu1  ;;  %v932_v43 = vadd.f32 %v899_v0, %v747_v42  ;;  %v2525_v47 = vpop.f32.mrb[25].mxu0 }
 0x198   : > { %v2561_v45 = vpop.f32.mrb[25].mxu1  ;;  %v902_v2 = vpop.f32.mrb[26].mxu0 }
 0x199   : > { %v1065_v7 = vpop.f32.mrb[26].mxu1  ;;  %v1095_v8 = vadd.f32 %v1062_v1, %v932_v43  ;;  %v933_v13 = vadd.f32 %v902_v2, %v750_v4  ;;  %v2526_v14 = vpop.f32.mrb[27].mxu0 }
 0x19a   : > { %v2562_v55 = vpop.f32.mrb[27].mxu1 }
 0x19b   : > { %v1096_v18 = vadd.f32 %v1065_v7, %v933_v13 }
 0x19e   : > { %v907_v19 = vpop.f32.mrb[28].mxu0 }
 0x19f   : > { %v1070_v20 = vpop.f32.mrb[28].mxu1  ;;  %v934_v21 = vadd.f32 %v907_v19, %v755_v15  ;;  %v2529_v23 = vpop.f32.mrb[29].mxu0 }
 0x1a0   : > { %v2565_v30 = vpop.f32.mrb[29].mxu1  ;;  %v910_v24 = vpop.f32.mrb[30].mxu0 }
 0x1a1   : > { %v1073_v28 = vpop.f32.mrb[30].mxu1  ;;  %v1097_v31 = vadd.f32 %v1070_v20, %v934_v21  ;;  %v935_v33 = vadd.f32 %v910_v24, %v758_v22  ;;  %v2530_v34 = vpop.f32.mrb[31].mxu0 }
 0x1a2   : > { %v2566_v42 = vpop.f32.mrb[31].mxu1 }
 0x1a3   : > { %v1098_v35 = vadd.f32 %v1073_v28, %v935_v33 }
 0x1a6   : > { %v915_v39 = vpop.f32.mrb[32].mxu0 }
 0x1a7   : > { %v1078_v41 = vpop.f32.mrb[32].mxu1  ;;  %v936_v57 = vadd.f32 %v915_v39, %v763_v32  ;;  %v2533_v6 = vpop.f32.mrb[33].mxu0 }
 0x1a8   : > { %v2569_v4 = vpop.f32.mrb[33].mxu1  ;;  %v918_v9 = vpop.f32.mrb[34].mxu0 }
 0x1a9   : > { %v1081_v3 = vpop.f32.mrb[34].mxu1  ;;  %v1099_v46 = vadd.f32 %v1078_v41, %v936_v57  ;;  %v937_v56 = vadd.f32 %v918_v9, %v766_v40  ;;  %v2534_v5 = vpop.f32.mrb[35].mxu0 }
 0x1aa   : > { %v2570_v15 = vpop.f32.mrb[35].mxu1 }
 0x1ab   : > { %v1100_v48 = vadd.f32 %v1081_v3, %v937_v56 }
 0x1ae   : > { %v923_v49 = vpop.f32.mrb[36].mxu0 }
 0x1af   : > { %v1086_v52 = vpop.f32.mrb[36].mxu1  ;;  %v938_v53 = vadd.f32 %v923_v49, %v771_v44  ;;  %v2537_v54 = vpop.f32.mrb[37].mxu0 }
 0x1b0   : > { %v2573_v22 = vpop.f32.mrb[37].mxu1  ;;  %v926_v16 = vpop.f32.mrb[38].mxu0 }
 0x1b1   : > { %v1089_v17 = vpop.f32.mrb[38].mxu1  ;;  %v1101_v25 = vadd.f32 %v1086_v52, %v938_v53  ;;  %v939_v58 = vadd.f32 %v926_v16, %v774_v10  ;;  %v2538_v60 = vpop.f32.mrb[39].mxu0 }
 0x1b2   : > { %v2574_v32 = vpop.f32.mrb[39].mxu1 }
 0x1b3   : > { %v1102_v29 = vadd.f32 %v1089_v17, %v939_v58 }
 0x1b6   : > { %v1217_v36 = vpop.f32.mrb[40].mxu0 }
 0x1b7   : > { %v1380_v0 = vpop.f32.mrb[40].mxu1  ;;  %v1256_v1 = vadd.f32 %v1217_v36, %v1093_v59  ;;  %v2593_v43 = vpop.f32.mrb[41].mxu0 }
 0x1b8   : > { %v2629_v40 = vpop.f32.mrb[41].mxu1  ;;  %v1220_v47 = vpop.f32.mrb[42].mxu0 }
 0x1b9   : > { %v1383_v45 = vpop.f32.mrb[42].mxu1  ;;  %v1419_v2 = vadd.f32 %v1380_v0, %v1256_v1  ;;  %v1257_v7 = vadd.f32 %v1220_v47, %v1094_v61  ;;  %v2594_v13 = vpop.f32.mrb[43].mxu0 }
 0x1ba   : > { %v2630_v44 = vpop.f32.mrb[43].mxu1 }
 0x1bb   : > { %v1420_v14 = vadd.f32 %v1383_v45, %v1257_v7 }
 0x1be   : > { %v1225_v55 = vpop.f32.mrb[44].mxu0 }
 0x1bf   : > { %v1388_v19 = vpop.f32.mrb[44].mxu1  ;;  %v1258_v20 = vadd.f32 %v1225_v55, %v1095_v8  ;;  %v2597_v21 = vpop.f32.mrb[45].mxu0 }
 0x1c0   : > { %v2633_v10 = vpop.f32.mrb[45].mxu1  ;;  %v1228_v23 = vpop.f32.mrb[46].mxu0 }
 0x1c1   : > { %v1391_v30 = vpop.f32.mrb[46].mxu1  ;;  %v1421_v24 = vadd.f32 %v1388_v19, %v1258_v20  ;;  %v1259_v28 = vadd.f32 %v1228_v23, %v1096_v18  ;;  %v2598_v33 = vpop.f32.mrb[47].mxu0 }
 0x1c2   : > { %v2634_v59 = vpop.f32.mrb[47].mxu1 }
 0x1c3   : > { %v1422_v34 = vadd.f32 %v1391_v30, %v1259_v28 }
 0x1c6   : > { %v1233_v42 = vpop.f32.mrb[48].mxu0 }
 0x1c7   : > { %v1396_v39 = vpop.f32.mrb[48].mxu1  ;;  %v1260_v41 = vadd.f32 %v1233_v42, %v1097_v31  ;;  %v2601_v57 = vpop.f32.mrb[49].mxu0 }
 0x1c8   : > { %v2637_v61 = vpop.f32.mrb[49].mxu1  ;;  %v1236_v6 = vpop.f32.mrb[50].mxu0 }
 0x1c9   : > { %v1399_v4 = vpop.f32.mrb[50].mxu1  ;;  %v1423_v9 = vadd.f32 %v1396_v39, %v1260_v41  ;;  %v1261_v3 = vadd.f32 %v1236_v6, %v1098_v35  ;;  %v2602_v56 = vpop.f32.mrb[51].mxu0 }
 0x1ca   : > { %v2638_v8 = vpop.f32.mrb[51].mxu1 }
 0x1cb   : > { %v1424_v5 = vadd.f32 %v1399_v4, %v1261_v3 }
 0x1ce   : > { %v1241_v15 = vpop.f32.mrb[52].mxu0 }
 0x1cf   : > { %v1404_v49 = vpop.f32.mrb[52].mxu1  ;;  %v1262_v52 = vadd.f32 %v1241_v15, %v1099_v46  ;;  %v2605_v53 = vpop.f32.mrb[53].mxu0 }
 0x1d0   : > { %v2641_v18 = vpop.f32.mrb[53].mxu1  ;;  %v1244_v54 = vpop.f32.mrb[54].mxu0 }
 0x1d1   : > { %v1407_v22 = vpop.f32.mrb[54].mxu1  ;;  %v1425_v16 = vadd.f32 %v1404_v49, %v1262_v52  ;;  %v1263_v17 = vadd.f32 %v1244_v54, %v1100_v48  ;;  %v2606_v58 = vpop.f32.mrb[55].mxu0 }
 0x1d2   : > { %v2642_v31 = vpop.f32.mrb[55].mxu1 }
 0x1d3   : > { %v1426_v60 = vadd.f32 %v1407_v22, %v1263_v17 }
 0x1d6   : > { %v1249_v32 = vpop.f32.mrb[56].mxu0 }
 0x1d7   : > { %v1412_v36 = vpop.f32.mrb[56].mxu1  ;;  %v1264_v0 = vadd.f32 %v1249_v32, %v1101_v25  ;;  %v2609_v1 = vpop.f32.mrb[57].mxu0 }
 0x1d8   : > { %v2645_v35 = vpop.f32.mrb[57].mxu1  ;;  %v1252_v43 = vpop.f32.mrb[58].mxu0 }
 0x1d9   : > { %v1415_v40 = vpop.f32.mrb[58].mxu1  ;;  %v1427_v47 = vadd.f32 %v1412_v36, %v1264_v0  ;;  %v1265_v45 = vadd.f32 %v1252_v43, %v1102_v29  ;;  %v2610_v7 = vpop.f32.mrb[59].mxu0 }
 0x1da   : > { %v2646_v46 = vpop.f32.mrb[59].mxu1 }
 0x1db   : > { %v1428_v13 = vadd.f32 %v1415_v40, %v1265_v45 }
 0x1de   : > { %v1543_v44 = vpop.f32.mrb[60].mxu0 }
 0x1df   : > { %v1706_v55 = vpop.f32.mrb[60].mxu1  ;;  %v1582_v19 = vadd.f32 %v1543_v44, %v1419_v2  ;;  %v2665_v20 = vpop.f32.mrb[61].mxu0 }
 0x1e0   : > { %v2701_v48 = vpop.f32.mrb[61].mxu1  ;;  %v1546_v21 = vpop.f32.mrb[62].mxu0 }
 0x1e1   : > { %v1709_v10 = vpop.f32.mrb[62].mxu1  ;;  %v1745_v23 = vadd.f32 %v1706_v55, %v1582_v19  ;;  %v1583_v30 = vadd.f32 %v1546_v21, %v1420_v14  ;;  %v2666_v28 = vpop.f32.mrb[63].mxu0 }
 0x1e2   : > { %v2702_v25 = vpop.f32.mrb[63].mxu1 }
 0x1e3   : > { %v1746_v33 = vadd.f32 %v1709_v10, %v1583_v30 }
 0x1e6   : > { %v1551_v59 = vpop.f32.mrb[64].mxu0 }
 0x1e7   : > { %v1714_v42 = vpop.f32.mrb[64].mxu1  ;;  %v1584_v39 = vadd.f32 %v1551_v59, %v1421_v24  ;;  %v2669_v41 = vpop.f32.mrb[65].mxu0 }
 0x1e8   : > { %v2705_v29 = vpop.f32.mrb[65].mxu1  ;;  %v1554_v57 = vpop.f32.mrb[66].mxu0 }
 0x1e9   : > { %v1717_v61 = vpop.f32.mrb[66].mxu1  ;;  %v3505_v6 = vadd.f32 %v1714_v42, %v1584_v39  ;;  %v1585_v4 = vadd.f32 %v1554_v57, %v1422_v34  ;;  %v2670_v2 = vpop.f32.mrb[67].mxu0 }
 0x1ea   : > { %v2706_v3 = vpop.f32.mrb[67].mxu1 }
 0x1eb   : > { %v3507_v56 = vadd.f32 %v1717_v61, %v1585_v4 }
 0x1ee   : > { %v1559_v8 = vpop.f32.mrb[68].mxu0 }
 0x1ef   : > { %v1722_v15 = vpop.f32.mrb[68].mxu1  ;;  %v1586_v14 = vadd.f32 %v1559_v8, %v1423_v9  ;;  %v2673_v49 = vpop.f32.mrb[69].mxu0 }
 0x1f0   : > { %v2709_v52 = vpop.f32.mrb[69].mxu1  ;;  %v1562_v53 = vpop.f32.mrb[70].mxu0 }
 0x1f1   : > { %v1725_v18 = vpop.f32.mrb[70].mxu1  ;;  %v3509_v54 = vadd.f32 %v1722_v15, %v1586_v14  ;;  %v1587_v24 = vadd.f32 %v1562_v53, %v1424_v5  ;;  %v2674_v22 = vpop.f32.mrb[71].mxu0 }
 0x1f2   : > { %v2710_v17 = vpop.f32.mrb[71].mxu1 }
 0x1f3   : > { %v3511_v58 = vadd.f32 %v1725_v18, %v1587_v24 }
 0x1f6   : > { %v1567_v31 = vpop.f32.mrb[72].mxu0 }
 0x1f7   : > { %v1730_v34 = vpop.f32.mrb[72].mxu1  ;;  %v1588_v32 = vadd.f32 %v1567_v31, %v1425_v16  ;;  %v2677_v36 = vpop.f32.mrb[73].mxu0 }
 0x1f8   : > { %v2713_v0 = vpop.f32.mrb[73].mxu1  ;;  %v1570_v1 = vpop.f32.mrb[74].mxu0 }
 0x1f9   : > { %v1733_v35 = vpop.f32.mrb[74].mxu1  ;;  %v1751_v43 = vadd.f32 %v1730_v34, %v1588_v32  ;;  %v1589_v9 = vadd.f32 %v1570_v1, %v1426_v60  ;;  %v2678_v40 = vpop.f32.mrb[75].mxu0  ;;  %v3516_v60 = vld [vmem:[%s3574_s4] ss:$0 sm:$0xff] }
 0x1fa   : > { %v2714_v45 = vpop.f32.mrb[75].mxu1 }
 0x1fb   : > { %v1752_v7 = vadd.f32 %v1733_v35, %v1589_v9 }
 0x1fe   : > { %v1575_v46 = vpop.f32.mrb[76].mxu0 }
 0x1ff   : > { %v1738_v44 = vpop.f32.mrb[76].mxu1  ;;  %v1590_v55 = vadd.f32 %v1575_v46, %v1427_v47  ;;  %v2681_v5 = vpop.f32.mrb[77].mxu0 }
 0x200   : > { %v2717_v19 = vpop.f32.mrb[77].mxu1  ;;  %v1578_v20 = vpop.f32.mrb[78].mxu0 }
 0x201   : > { %v1741_v48 = vpop.f32.mrb[78].mxu1  ;;  %v1753_v21 = vadd.f32 %v1738_v44, %v1590_v55  ;;  %v1591_v10 = vadd.f32 %v1578_v20, %v1428_v13  ;;  %v2682_v30 = vpop.f32.mrb[79].mxu0 }
 0x202   : > { %v2718_v16 = vpop.f32.mrb[79].mxu1 }
 0x203   : > { %v1754_v28 = vadd.f32 %v1741_v48, %v1591_v10 }
 0x206   : > { %v1869_v25 = vpop.f32.mrb[80].mxu0 }
 0x207   : > { %v1893_v59 = vpop.f32.mrb[80].mxu1  ;;  %v1908_v42 = vadd.f32 %v1869_v25, %v1745_v23  ;;  %v2737_v47 = vpop.f32.mrb[81].mxu0 }
 0x208   : > { %v1914_v39 = vadd.f32 %v1893_v59, %v1751_v43  ;;  %v2749_v41 = vpop.f32.mrb[81].mxu1  ;;  %v1872_v29 = vpop.f32.mrb[82].mxu0 }
 0x209   : > { %v1896_v57 = vpop.f32.mrb[82].mxu1  ;;  %v1925_v61 = vadd.f32 %v3516_v60, %v1908_v42  ;;  %v1909_v4 = vadd.f32 %v1872_v29, %v1746_v33  ;;  %v2738_v3 = vpop.f32.mrb[83].mxu0 }
 0x20a   : > { %v1931_v13 = vadd.f32 %v3516_v60, %v1914_v39  ;;  %v1915_v2 = vadd.f32 %v1896_v57, %v1752_v7  ;;  %v2750_v8 = vpop.f32.mrb[83].mxu1 }
 0x20b   : > { %v1935_v23 = vmul.f32 %v1925_v61, %v3065_v51  ;;  %v1926_v14 = vadd.f32 %v3516_v60, %v1909_v4 }
 0x20c   : > { %v1941_v15 = vmul.f32 %v1931_v13, %v3113_v27  ;;  %v1932_v33 = vadd.f32 %v3516_v60, %v1915_v2 }
 0x20d   : > { %1987 = vst [vmem:[%s3525_s9] sm:$0xff] %v1935_v23  ;;  %v1936_v49 = vmul.f32 %v1926_v14, %v3079_v63  ;;  %v1961_v24 = vmul.f32 %v1935_v23, %v1935_v23 }
 0x20e   : > { %1993 = vst [vmem:[%s3525_s9 + $0x30] sm:$0xff] %v1941_v15  ;;  %v1942_v52 = vmul.f32 %v1932_v33, %v3111_v26  ;;  %v1877_v53 = vpop.f32.mrb[84].mxu0  ;;  %v1967_v41 = vmul.f32 %v1941_v15, %v1941_v15 }
 0x20f   : > { %v1901_v18 = vpop.f32.mrb[84].mxu1  ;;  %v1945_v22 = vadd.f32 %v1936_v49, %v1935_v23  ;;  %v1962_v17 = vmul.f32 %v1936_v49, %v1936_v49  ;;  %1988 = vst [vmem:[%s3525_s9 + $0x8] sm:$0xff] %v1936_v49  ;;  %v1910_v51 = vadd.f32 %v1877_v53, %v3505_v6  ;;  %v2741_v27 = vpop.f32.mrb[85].mxu0 }
 0x210   : > { %1994 = vst [vmem:[%s3525_s9 + $0x38] sm:$0xff] %v1942_v52  ;;  %v2753_v31 = vpop.f32.mrb[85].mxu1  ;;  %v1916_v34 = vadd.f32 %v1901_v18, %v1753_v21  ;;  %v1880_v32 = vpop.f32.mrb[86].mxu0 }
 0x211   : > { %v1904_v36 = vpop.f32.mrb[86].mxu1  ;;  %v1971_v0 = vadd.f32 %v1962_v17, %v1961_v24  ;;  %v1927_v63 = vadd.f32 %v3516_v60, %v1910_v51  ;;  %v1911_v26 = vadd.f32 %v1880_v32, %v3507_v56  ;;  %v2742_v35 = vpop.f32.mrb[87].mxu0 }
 0x212   : > { %v1917_v1 = vadd.f32 %v1904_v36, %v1754_v28  ;;  %v2754_v43 = vpop.f32.mrb[87].mxu1  ;;  %v1933_v9 = vadd.f32 %v3516_v60, %v1916_v34 }
 0x213   : > { %v1937_v6 = vmul.f32 %v1927_v63, %v3063_v50  ;;  %v1928_v40 = vadd.f32 %v3516_v60, %v1911_v26 }
 0x214   : > { %v1934_v45 = vadd.f32 %v3516_v60, %v1917_v1  ;;  %v1943_v7 = vmul.f32 %v1933_v9, %v3141_v38 }
 0x215   : > { %v1946_v46 = vadd.f32 %v1945_v22, %v1937_v6  ;;  %v1963_v44 = vmul.f32 %v1937_v6, %v1937_v6  ;;  %1989 = vst [vmem:[%s3525_s9 + $0x10] sm:$0xff] %v1937_v6  ;;  %v1938_v56 = vmul.f32 %v1928_v40, %v3077_v62 }
 0x216   : > { %v1944_v55 = vmul.f32 %v1934_v45, %v3139_v37  ;;  %1995 = vst [vmem:[%s3525_s9 + $0x40] sm:$0xff] %v1943_v7  ;;  %v1885_v5 = vpop.f32.mrb[88].mxu0  ;;  %v1969_v4 = vmul.f32 %v1943_v7, %v1943_v7 }
 0x217   : > { %v1972_v19 = vadd.f32 %v1971_v0, %v1963_v44  ;;  %v1947_v20 = vadd.f32 %v1946_v46, %v1938_v56  ;;  %v1964_v48 = vmul.f32 %v1938_v56, %v1938_v56  ;;  %1990 = vst [vmem:[%s3525_s9 + $0x18] sm:$0xff] %v1938_v56  ;;  %v2745_v50 = vpop.f32.mrb[89].mxu0  ;;  %v1912_v21 = vadd.f32 %v1885_v5, %v3509_v54 }
 0x218   : > { %1996 = vst [vmem:[%s3525_s9 + $0x48] sm:$0xff] %v1944_v55  ;;  %v1888_v38 = vpop.f32.mrb[90].mxu0 }
 0x219   : > { %v1973_v10 = vadd.f32 %v1972_v19, %v1964_v48  ;;  %v1913_v30 = vadd.f32 %v1888_v38, %v3511_v58  ;;  %v2746_v16 = vpop.f32.mrb[91].mxu0  ;;  %v1929_v62 = vadd.f32 %v3516_v60, %v1912_v21  ;;  %v1968_v58 = vmul.f32 %v1942_v52, %v1942_v52 }
 0x21b   : > { %v1930_v37 = vadd.f32 %v3516_v60, %v1913_v30  ;;  %v1939_v28 = vmul.f32 %v1929_v62, %v3095_v12  ;;  %v1970_v12 = vmul.f32 %v1944_v55, %v1944_v55 }
 0x21d   : > { %v1940_v25 = vmul.f32 %v1930_v37, %v3093_v11  ;;  %v1948_v59 = vadd.f32 %v1947_v20, %v1939_v28  ;;  %v1965_v42 = vmul.f32 %v1939_v28, %v1939_v28  ;;  %1991 = vst [vmem:[%s3525_s9 + $0x20] sm:$0xff] %v1939_v28 }
 0x21f   : > { %v1966_v39 = vmul.f32 %v1940_v25, %v1940_v25  ;;  %1992 = vst [vmem:[%s3525_s9 + $0x28] sm:$0xff] %v1940_v25  ;;  %v1974_v47 = vadd.f32 %v1973_v10, %v1965_v42  ;;  %v1949_v54 = vadd.f32 %v1948_v59, %v1940_v25 }
 0x221   : > { %v1950_v29 = vadd.f32 %v1949_v54, %v1941_v15  ;;  %v1975_v57 = vadd.f32 %v1974_v47, %v1966_v39 }
 0x223   : > { %v1951_v61 = vadd.f32 %v1950_v29, %v1942_v52  ;;  %v1976_v13 = vadd.f32 %v1975_v57, %v1967_v41 }
 0x225   : > { %v1952_v60 = vadd.f32 %v1951_v61, %v1943_v7  ;;  %v1977_v2 = vadd.f32 %v1976_v13, %v1968_v58 }
 0x227   : > { %v1953_v11 = vadd.f32 %v1952_v60, %v1944_v55  ;;  %v1978_v3 = vadd.f32 %v1977_v2, %v1969_v4 }
 0x229   : > { %v1954_v8 = vrot.slane %v1953_v11, 4  ;;  %v1979_v23 = vadd.f32 %v1978_v3, %v1970_v12 }
 0x22b   : > { %v1955_v14 = vadd.f32 %v1954_v8, %v1953_v11  ;;  %v1980_v33 = vrot.slane %v1979_v23, 4 }
 0x22d   : > { %v1956_v49 = vrot.slane %v1955_v14, 2  ;;  %v1981_v53 = vadd.f32 %v1980_v33, %v1979_v23 }
 0x22f   : > { %v1957_v18 = vadd.f32 %v1956_v49, %v1955_v14  ;;  %v1982_v15 = vrot.slane %v1981_v53, 2 }
 0x231   : > { %v1958_v24 = vrot.slane %v1957_v18, 1  ;;  %v1983_v22 = vadd.f32 %v1982_v15, %v1981_v53 }
 0x233   : > { %v1959_v52 = vadd.f32 %v1958_v24, %v1957_v18  ;;  %v1984_v17 = vrot.slane %v1983_v22, 1 }
 0x235   : > { %1960 = vst [vmem:[%s319_s11] sm:$0x1] %v1959_v52  ;;  %v1985_v51 = vadd.f32 %v1984_v17, %v1983_v22 }
 0x237   : > { %1986 = vst [vmem:[%s322_s14] sm:$0x1] %v1985_v51 }
 0x238 PF: > { %s19_s27 = sadd.s32 1, %s2864_s27  }
 0x239   : > { %p16_p4 = scmp.ge.s32.totalorder %s19_s27, 4  }
 0x23b   :  { %18 = sbr.rel (!%p16_p4) target bundleno = 1 (0x1), region = 106 }

// kernel: down_forward.3
= control target key start
LH: loop header
LB: loop body
LE: loop exit
PB: predicated region body
PF: predicated region fallthrough
CT: control target
= control target key end

     0   :  { %s2736_s21 = smov 0   ;;  %s3604_s0 = inlined_call_operand.vmem [shape: f32[2,8,2,8,2,4], index: 0, kind: input, shape index: {}]   ;;  %s3605_s1 = inlined_call_operand.vmem [shape: bf16[9,8,128], index: 1, kind: input, shape index: {}]   ;;  %s3606_s2 = inlined_call_operand.vmem [shape: f32[1,128], index: 2, kind: input, shape index: {}]   ;;  %s3607_s3 = inlined_call_operand.vmem [shape: f32[80,1], index: 3, kind: input, shape index: {}]   ;;  %s3608_s4 = inlined_call_operand.vmem [shape: f32[2,80,128], index: 4, kind: output, shape index: {0}]   ;;  %s3609_s5 = inlined_call_operand.vmem [shape: f32[2,1,128], index: 5, kind: output, shape index: {1}]   ;;  %s3610_s6 = inlined_call_operand.vmem [shape: f32[2,1,128], index: 6, kind: output, shape index: {2}]  }
   0x1 LB: > { %s2357_s22 = sadd.s32 4294967295, %s2696_s21   ;;  %p2361_p0 = scmp.ge.s32.totalorder %s2696_s21, 1  ;;  %s2696_s21 = sphi %s2736_s21, %s17_s21  }
   0x2   : > { %p217_p1 = scmp.lt.s32.totalorder %s2696_s21, 3 }
   0x4   : > { %p218_p2 = pnand %p2361_p0, %p217_p1 }
   0x5   : > { %v2365_v0 = vld [vmem:[%s3605_s1 + $0x4] sm:$0xf] (!%p218_p2)  ;;  %vm1119_vm0 = vcmask (!%p218_p2), 1043456   ;;  %v2698_v1 = vmov (!%p218_p2), 0.0   ;;  %p2752_p3 = scmp.lt.s32.totalorder (!%p218_p2), %s2357_s22, 1  ;;  %vm911_vm1 = vcmask (!%p218_p2), 64512  }
   0x6   : > { %221 = sbr.rel (%p218_p2) target bundleno = 557 (0x22d), region = 36  ;;  %2476 = vmatprep.subr.bf16.mxu0 (!%p218_p2), %v2698_v1  ;;  %2674 = vmatprep.subr.bf16.mxu1 (!%p218_p2), %v2698_v1  ;;  %v1121_v2 = vsel (!%p218_p2), %vm1119_vm0, %v2365_v0, 0  ;;  %912 = vst.msk [vmem:[#allocation2] sm:$0xff] (!%p218_p2), %vm911_vm1, %v2698_v1  ;;  %913 = vst.msk [vmem:[#allocation2 + $0x8] sm:$0xff] (!%p218_p2), %vm911_vm1, %v2698_v1  ;;  %vm2699_vm2 = vmmov (!%p218_p2), 0   ;;  %vm462_vm3 = vcmask (!%p218_p2), 25600  }
   0x7   : > { %2477 = vmatpush3.bf16.msra.mxu0 (!%p218_p2), %v1121_v2  ;;  %2675 = vmatpush3.bf16.msra.mxu1 (!%p218_p2), %v1121_v2  ;;  %914 = vst.msk [vmem:[#allocation2 + $0x10] sm:$0xff] (!%p218_p2), %vm911_vm1, %v2698_v1  ;;  %915 = vst.msk [vmem:[#allocation2 + $0x18] sm:$0xff] (!%p218_p2), %vm911_vm1, %v2698_v1  ;;  %v2376_v3 = vld [vmem:[%s3605_s1 + $0x8] sm:$0xf] (!%p218_p2)  ;;  %v1086_v4 = vld [vmem:[%s3605_s1] sm:$0xf] (!%p218_p2) }
   0x8   : > { %916 = vst.msk [vmem:[#allocation2 + $0x20] sm:$0xff] (!%p218_p2), %vm911_vm1, %v2698_v1  ;;  %917 = vst.msk [vmem:[#allocation2 + $0x28] sm:$0xff] (!%p218_p2), %vm911_vm1, %v2698_v1  ;;  %2478 = vmatprep.mubr.msk.bf16.mxu0 (!%p218_p2), %vm2699_vm2, %v2698_v1  ;;  %2490 = vmatprep.mubr.msk.bf16.mxu1 (!%p218_p2), %vm2699_vm2, %v2698_v1  ;;  %v2807_v5 = vsel (!%p218_p2), %vm1119_vm0, %v2376_v3, 0  ;;  %v2810_v6 = vsel (!%p218_p2), %vm1119_vm0, %v1086_v4, 0  ;;  %vm935_vm4 = vcmask (!%p218_p2), 1041409   ;;  %vm937_vm5 = vcmask (!%p218_p2), 1042434  }
   0x9   : > { %918 = vst.msk [vmem:[#allocation2 + $0x30] sm:$0xff] (!%p218_p2), %vm911_vm1, %v2698_v1  ;;  %919 = vst.msk [vmem:[#allocation2 + $0x38] sm:$0xff] (!%p218_p2), %vm911_vm1, %v2698_v1  ;;  %2520 = vmatprep.subr.bf16.mxu0 (!%p218_p2), %v2698_v1  ;;  %2498 = vmatprep.subr.bf16.mxu1 (!%p218_p2), %v2698_v1  ;;  %vm939_vm6 = vcmask (!%p218_p2), 1043459   ;;  %vm941_vm7 = vcmask (!%p218_p2), 1044484   ;;  %vm943_vm8 = vcmask (!%p218_p2), 1045509   ;;  %vm945_vm9 = vcmask (!%p218_p2), 1046534  }
   0xa   : > { %920 = vst.msk [vmem:[#allocation2 + $0x40] sm:$0xff] (!%p218_p2), %vm911_vm1, %v2698_v1  ;;  %921 = vst.msk [vmem:[#allocation2 + $0x48] sm:$0xff] (!%p218_p2), %vm911_vm1, %v2698_v1  ;;  %vm947_vm10 = vcmask (!%p218_p2), 1047559   ;;  %vm950_vm11 = vcmask (!%p218_p2), 31744  }
   0xb   : > { %922 = vst.msk [vmem:[#allocation2 + $0x50] sm:$0xff] (!%p218_p2), %vm911_vm1, %v2698_v1  ;;  %923 = vst.msk [vmem:[#allocation2 + $0x58] sm:$0xff] (!%p218_p2), %vm911_vm1, %v2698_v1 }
   0xc   : > { %924 = vst.msk [vmem:[#allocation2 + $0x60] sm:$0xff] (!%p218_p2), %vm911_vm1, %v2698_v1 }
   0xd   : > { %s3613_s22 = smov (!%p2752_p3, %s2357_s22), 1 }
   0xe   : > { %s2421_s30 = sshll.u32 %s3613_s22, 8  ;;  %s2676_s20 = smul.u32 80, %s3613_s22 }
   0xf   : > { %s2804_s9 = scalar_lea.vmem %s3604_s0, %s2421_s30  ;;  %s265_s30 = scalar_lea.vmem %s3609_s5, %s3613_s22 }
  0x10   : > { %v270_v7 = vld [vmem:[%s2804_s9] sm:$0x3]  ;;  %v271_v8 = vld [vmem:[%s2804_s9 + $0x2] sm:$0x3]  ;;  %v272_v9 = vld [vmem:[%s2804_s9 + $0x4] sm:$0x3]  ;;  %s3572_s27 = scalar_lea.vmem %s3608_s4, %s2676_s20 }
  0x11   : > { %v273_v10 = vld [vmem:[%s2804_s9 + $0x6] sm:$0x3]  ;;  %v274_v11 = vld [vmem:[%s2804_s9 + $0x8] sm:$0x3]  ;;  %v275_v12 = vld [vmem:[%s2804_s9 + $0xa] sm:$0x3] }
  0x12   : > { %v276_v13 = vld [vmem:[%s2804_s9 + $0xc] sm:$0x3]  ;;  %v277_v14 = vld [vmem:[%s2804_s9 + $0xe] sm:$0x3]  ;;  %v278_v15 = vld [vmem:[%s2804_s9 + $0x10] sm:$0x3] }
  0x13   : > { %v279_v16 = vld [vmem:[%s2804_s9 + $0x12] sm:$0x3]  ;;  %v280_v17 = vld [vmem:[%s2804_s9 + $0x14] sm:$0x3]  ;;  %v281_v18 = vld [vmem:[%s2804_s9 + $0x16] sm:$0x3]  ;;  %v398_v19 = vmax.f32 %v270_v7, %v278_v15 }
  0x14   : > { %v282_v20 = vld [vmem:[%s2804_s9 + $0x18] sm:$0x3]  ;;  %v283_v21 = vld [vmem:[%s2804_s9 + $0x1a] sm:$0x3]  ;;  %v284_v22 = vld [vmem:[%s2804_s9 + $0x1c] sm:$0x3]  ;;  %v399_v23 = vmax.f32 %v271_v8, %v279_v16  ;;  %v400_v24 = vmax.f32 %v272_v9, %v280_v17  ;;  %v401_v25 = vmax.f32 %v273_v10, %v281_v18 }
  0x15   : > { %v285_v26 = vld [vmem:[%s2804_s9 + $0x1e] sm:$0x3]  ;;  %v402_v27 = vmax.f32 %v274_v11, %v282_v20  ;;  %v403_v28 = vmax.f32 %v275_v12, %v283_v21  ;;  %v404_v29 = vmax.f32 %v276_v13, %v284_v22  ;;  %v463_v30 = vsel %vm462_vm3, %v398_v19, -inf  ;;  %v2837_v63 = vld [vmem:[%s2804_s9 + $0x80] sm:$0x3] }
  0x16   : > { %v405_v31 = vmax.f32 %v277_v14, %v285_v26  ;;  %v464_v32 = vrot.slane %v463_v30, 4  ;;  %v470_v33 = vsel %vm462_vm3, %v399_v23, -inf  ;;  %v477_v34 = vsel %vm462_vm3, %v400_v24, -inf  ;;  %v2840_v7 = vld [vmem:[%s2804_s9 + $0x82] sm:$0x3] }
  0x17   : > { %v471_v35 = vrot.slane %v470_v33, 4  ;;  %v478_v36 = vrot.slane %v477_v34, 4  ;;  %v484_v37 = vsel %vm462_vm3, %v401_v25, -inf  ;;  %v491_v38 = vsel %vm462_vm3, %v402_v27, -inf  ;;  %v2843_v8 = vld [vmem:[%s2804_s9 + $0x90] sm:$0x3] }
  0x18   : > { %v465_v39 = vmax.f32 %v463_v30, %v464_v32  ;;  %v485_v40 = vrot.slane %v484_v37, 4  ;;  %v492_v41 = vrot.slane %v491_v38, 4  ;;  %v498_v42 = vsel %vm462_vm3, %v403_v28, -inf  ;;  %v2846_v9 = vld [vmem:[%s2804_s9 + $0x92] sm:$0x3] }
  0x19   : > { %v472_v43 = vmax.f32 %v470_v33, %v471_v35  ;;  %v479_v44 = vmax.f32 %v477_v34, %v478_v36  ;;  %v499_v45 = vrot.slane %v498_v42, 4  ;;  %v505_v46 = vsel %vm462_vm3, %v404_v29, -inf  ;;  %v2849_v14 = vld [vmem:[%s2804_s9 + $0x84] sm:$0x3]  ;;  %v2852_v15 = vld [vmem:[%s2804_s9 + $0x86] sm:$0x3] }
  0x1a   : > { %v466_v47 = vrot.slane %v465_v39, 2  ;;  %v486_v48 = vmax.f32 %v484_v37, %v485_v40  ;;  %v493_v49 = vmax.f32 %v491_v38, %v492_v41  ;;  %v506_v50 = vrot.slane %v505_v46, 4  ;;  %v2855_v16 = vld [vmem:[%s2804_s9 + $0x94] sm:$0x3]  ;;  %v2858_v17 = vld [vmem:[%s2804_s9 + $0x96] sm:$0x3] }
  0x1b   : > { %v473_v51 = vrot.slane %v472_v43, 2  ;;  %v480_v52 = vrot.slane %v479_v44, 2  ;;  %v500_v53 = vmax.f32 %v498_v42, %v499_v45  ;;  %v512_v54 = vsel %vm462_vm3, %v405_v31, -inf  ;;  %v2861_v22 = vld [vmem:[%s2804_s9 + $0x88] sm:$0x3] }
  0x1c   : > { %v467_v55 = vmax.f32 %v465_v39, %v466_v47  ;;  %v487_v56 = vrot.slane %v486_v48, 2  ;;  %v494_v57 = vrot.slane %v493_v49, 2  ;;  %v507_v58 = vmax.f32 %v505_v46, %v506_v50  ;;  %v2864_v23 = vld [vmem:[%s2804_s9 + $0x8a] sm:$0x3]  ;;  %v2867_v24 = vld [vmem:[%s2804_s9 + $0x98] sm:$0x3] }
  0x1d   : > { %v474_v59 = vmax.f32 %v472_v43, %v473_v51  ;;  %v481_v60 = vmax.f32 %v479_v44, %v480_v52  ;;  %v501_v61 = vrot.slane %v500_v53, 2  ;;  %v513_v62 = vrot.slane %v512_v54, 4  ;;  %v2870_v25 = vld [vmem:[%s2804_s9 + $0x9a] sm:$0x3]  ;;  %v2873_v30 = vld [vmem:[%s2804_s9 + $0x8c] sm:$0x3] }
  0x1e   : > { %v468_v0 = vrot.slane %v467_v55, 1  ;;  %v488_v2 = vmax.f32 %v486_v48, %v487_v56  ;;  %v495_v3 = vmax.f32 %v493_v49, %v494_v57  ;;  %v508_v4 = vrot.slane %v507_v58, 2  ;;  %v2876_v31 = vld [vmem:[%s2804_s9 + $0x8e] sm:$0x3]  ;;  %v2879_v32 = vld [vmem:[%s2804_s9 + $0x9c] sm:$0x3] }
  0x1f   : > { %v475_v10 = vrot.slane %v474_v59, 1  ;;  %v482_v11 = vrot.slane %v481_v60, 1  ;;  %v502_v12 = vmax.f32 %v500_v53, %v501_v61  ;;  %v514_v13 = vmax.f32 %v512_v54, %v513_v62  ;;  %v2882_v33 = vld [vmem:[%s2804_s9 + $0x9e] sm:$0x3]  ;;  %v2885_v34 = vld [vmem:[%s2804_s9 + $0xa0] sm:$0x3] }
  0x20   : > { %v469_v18 = vmax.f32 %v467_v55, %v468_v0  ;;  %v489_v19 = vrot.slane %v488_v2, 1  ;;  %v496_v20 = vrot.slane %v495_v3, 1  ;;  %v509_v21 = vmax.f32 %v507_v58, %v508_v4  ;;  %v2888_v38 = vld [vmem:[%s2804_s9 + $0xa2] sm:$0x3]  ;;  %v2891_v39 = vld [vmem:[%s2804_s9 + $0xa4] sm:$0x3] }
  0x21   : > { %v476_v26 = vmax.f32 %v474_v59, %v475_v10  ;;  %v483_v27 = vmax.f32 %v481_v60, %v482_v11  ;;  %v503_v28 = vrot.slane %v502_v12, 1  ;;  %v515_v29 = vrot.slane %v514_v13, 2  ;;  %v2897_v44 = vld [vmem:[%s2804_s9 + $0xa6] sm:$0x3]  ;;  %v2900_v45 = vld [vmem:[%s2804_s9 + $0xa8] sm:$0x3] }
  0x22   : > { %v490_v35 = vmax.f32 %v488_v2, %v489_v19  ;;  %v497_v36 = vmax.f32 %v495_v3, %v496_v20  ;;  %v510_v37 = vrot.slane %v509_v21, 1  ;;  %v430_v40 = vmax.f32 %v2837_v63, %v2843_v8  ;;  %v2903_v46 = vld [vmem:[%s2804_s9 + $0xaa] sm:$0x3]  ;;  %v2906_v47 = vld [vmem:[%s2804_s9 + $0xb0] sm:$0x3] }
  0x23   : > { %v504_v41 = vmax.f32 %v502_v12, %v503_v28  ;;  %v516_v42 = vmax.f32 %v514_v13, %v515_v29  ;;  %v936_v43 = vsel %vm935_vm4, %v476_v26, %v469_v18  ;;  %v431_v48 = vmax.f32 %v2840_v7, %v2846_v9  ;;  %v2912_v51 = vld [vmem:[%s2804_s9 + $0xac] sm:$0x3]  ;;  %v2915_v52 = vld [vmem:[%s2804_s9 + $0xb2] sm:$0x3]  ;;  %v2918_v53 = vld [vmem:[%s2804_s9 + $0xb4] sm:$0x3] }
  0x24   : > { %v511_v49 = vmax.f32 %v509_v21, %v510_v37  ;;  %v938_v50 = vsel %vm937_vm5, %v483_v27, %v936_v43  ;;  %v2921_v54 = vld [vmem:[%s2804_s9 + $0xb6] sm:$0x3]  ;;  %v432_v55 = vmax.f32 %v2849_v14, %v2855_v16  ;;  %v433_v56 = vmax.f32 %v2852_v15, %v2858_v17  ;;  %v2929_v59 = vld [vmem:[%s2804_s9 + $0xb8] sm:$0x3]  ;;  %v2932_v60 = vld [vmem:[%s2804_s9 + $0xba] sm:$0x3] }
  0x25   : > { %v517_v57 = vrot.slane %v516_v42, 1  ;;  %v940_v58 = vsel %vm939_vm6, %v490_v35, %v938_v50  ;;  %v434_v61 = vmax.f32 %v2861_v22, %v2867_v24  ;;  %v435_v62 = vmax.f32 %v2864_v23, %v2870_v25  ;;  %v2940_v0 = vld [vmem:[%s2804_s9 + $0xae] sm:$0x3]  ;;  %v2943_v2 = vld [vmem:[%s2804_s9 + $0xbc] sm:$0x3] }
  0x26   : > { %v942_v63 = vsel %vm941_vm7, %v497_v36, %v940_v58  ;;  %v2946_v3 = vld [vmem:[%s2804_s9 + $0xbe] sm:$0x3]  ;;  %v436_v4 = vmax.f32 %v2873_v30, %v2879_v32  ;;  %v437_v7 = vmax.f32 %v2876_v31, %v2882_v33  ;;  %v438_v8 = vmax.f32 %v2885_v34, %v2906_v47 }
  0x27   : > { %v518_v9 = vmax.f32 %v516_v42, %v517_v57  ;;  %v944_v10 = vsel %vm943_vm8, %v504_v41, %v942_v63  ;;  %v439_v11 = vmax.f32 %v2888_v38, %v2915_v52  ;;  %v440_v12 = vmax.f32 %v2891_v39, %v2918_v53 }
  0x28   : > { %v946_v13 = vsel %vm945_vm9, %v511_v49, %v944_v10  ;;  %v441_v14 = vmax.f32 %v2897_v44, %v2921_v54  ;;  %v442_v15 = vmax.f32 %v2900_v45, %v2929_v59  ;;  %v443_v16 = vmax.f32 %v2903_v46, %v2932_v60 }
  0x29   : > { %v948_v17 = vsel %vm947_vm10, %v518_v9, %v946_v13  ;;  %v444_v18 = vmax.f32 %v2912_v51, %v2943_v2  ;;  %v445_v19 = vmax.f32 %v2940_v0, %v2946_v3  ;;  %v687_v20 = vsel %vm462_vm3, %v430_v40, -inf  ;;  %v3034_v0 = vld [vmem:[%s2804_s9 + $0x20] sm:$0x3] }
  0x2a   : > { %951 = vst.msk [vmem:[#allocation2 + $0xb] sm:$0xff] %vm950_vm11, %v948_v17  ;;  %v688_v21 = vrot.slane %v687_v20, 4  ;;  %v694_v22 = vsel %vm462_vm3, %v431_v48, -inf  ;;  %v701_v23 = vsel %vm462_vm3, %v432_v55, -inf  ;;  %v708_v24 = vsel %vm462_vm3, %v433_v56, -inf  ;;  %v1087_v48 = vld [vmem:[#allocation2 + $0x1] sm:$0xff] }
  0x2b   : > { %v695_v25 = vrot.slane %v694_v22, 4  ;;  %v702_v26 = vrot.slane %v701_v23, 4  ;;  %v709_v27 = vrot.slane %v708_v24, 4  ;;  %v715_v28 = vsel %vm462_vm3, %v434_v61, -inf }
  0x2c   : > { %v689_v29 = vmax.f32 %v687_v20, %v688_v21  ;;  %v716_v30 = vrot.slane %v715_v28, 4  ;;  %v722_v31 = vsel %vm462_vm3, %v435_v62, -inf  ;;  %v729_v32 = vsel %vm462_vm3, %v436_v4, -inf }
  0x2d   : > { %v696_v33 = vmax.f32 %v694_v22, %v695_v25  ;;  %v703_v35 = vmax.f32 %v701_v23, %v702_v26  ;;  %v710_v36 = vmax.f32 %v708_v24, %v709_v27  ;;  %v723_v37 = vrot.slane %v722_v31, 4 }
  0x2e   : > { %v690_v40 = vrot.slane %v689_v29, 2  ;;  %v717_v41 = vmax.f32 %v715_v28, %v716_v30  ;;  %v730_v42 = vrot.slane %v729_v32, 4  ;;  %v736_v43 = vsel %vm462_vm3, %v437_v7, -inf }
  0x2f   : > { %v697_v49 = vrot.slane %v696_v33, 2  ;;  %v704_v50 = vrot.slane %v703_v35, 2  ;;  %v711_v55 = vrot.slane %v710_v36, 2  ;;  %v724_v56 = vmax.f32 %v722_v31, %v723_v37 }
  0x30   : > { %v691_v57 = vmax.f32 %v689_v29, %v690_v40  ;;  %v718_v58 = vrot.slane %v717_v41, 2  ;;  %v731_v61 = vmax.f32 %v729_v32, %v730_v42  ;;  %v737_v62 = vrot.slane %v736_v43, 4 }
  0x31   : > { %v1088_v63 = vld [vmem:[#allocation2 + $0x9] sm:$0xff]  ;;  %v698_v4 = vmax.f32 %v696_v33, %v697_v49  ;;  %v705_v9 = vmax.f32 %v703_v35, %v704_v50  ;;  %v712_v10 = vmax.f32 %v710_v36, %v711_v55  ;;  %v725_v13 = vrot.slane %v724_v56, 2 }
  0x32   : > { %v1097_v17 = vpack.c.bf16 %v1088_v63, %v1087_v48  ;;  %v692_v20 = vrot.slane %v691_v57, 1  ;;  %v719_v21 = vmax.f32 %v717_v41, %v718_v58  ;;  %v732_v22 = vrot.slane %v731_v61, 2 }
  0x33   : > { %v699_v23 = vrot.slane %v698_v4, 1  ;;  %v706_v7 = vrot.slane %v705_v9, 1  ;;  %v713_v24 = vrot.slane %v712_v10, 1  ;;  %v726_v25 = vmax.f32 %v724_v56, %v725_v13 }
  0x34   : > { %2479 = vmatmul.mubr.msk.bf16.vlgmr.msra.gmra.mrb[0].mxu0 %vm911_vm1, %v1097_v17  ;;  %v2981_v26 = vmax.f32 %v691_v57, %v692_v20  ;;  %v720_v27 = vrot.slane %v719_v21, 1  ;;  %v733_v28 = vmax.f32 %v731_v61, %v732_v22  ;;  %v738_v29 = vmax.f32 %v736_v43, %v737_v62 }
  0x35   : > { %v2983_v30 = vmax.f32 %v698_v4, %v699_v23  ;;  %v2985_v31 = vmax.f32 %v705_v9, %v706_v7  ;;  %v2987_v32 = vmax.f32 %v712_v10, %v713_v24  ;;  %v727_v33 = vrot.slane %v726_v25, 1  ;;  %2521 = vmatpush3.bf16.msra.mxu0 %v2807_v5  ;;  %2482 = vmatprep.mubr.msk.bf16.mxu0 %vm2699_vm2, %v2698_v1 }
  0x36   : > { %v2992_v35 = vmax.f32 %v719_v21, %v720_v27  ;;  %v734_v36 = vrot.slane %v733_v28, 1  ;;  %v739_v37 = vrot.slane %v738_v29, 2  ;;  %v743_v40 = vsel %vm462_vm3, %v438_v8, -inf  ;;  %2564 = vmatprep.subr.bf16.mxu0 %v2698_v1  ;;  %v3040_v27 = vld [vmem:[%s2804_s9 + $0x30] sm:$0x3] }
  0x37   : > { %v2999_v41 = vmax.f32 %v726_v25, %v727_v33  ;;  %v744_v42 = vrot.slane %v743_v40, 4  ;;  %v750_v5 = vsel %vm462_vm3, %v439_v11, -inf  ;;  %v757_v43 = vsel %vm462_vm3, %v440_v12, -inf  ;;  %v3037_v25 = vld [vmem:[%s2804_s9 + $0x22] sm:$0x3] }
  0x38   : > { %v3009_v48 = vmax.f32 %v733_v28, %v734_v36  ;;  %v740_v34 = vmax.f32 %v738_v29, %v739_v37  ;;  %v751_v47 = vrot.slane %v750_v5, 4  ;;  %v758_v8 = vrot.slane %v757_v43, 4  ;;  %v3046_v37 = vld [vmem:[%s2804_s9 + $0x24] sm:$0x3] }
  0x39   : > { %v745_v49 = vmax.f32 %v743_v40, %v744_v42  ;;  %v764_v50 = vsel %vm462_vm3, %v441_v14, -inf  ;;  %v771_v38 = vsel %vm462_vm3, %v442_v15, -inf  ;;  %v778_v39 = vsel %vm462_vm3, %v443_v16, -inf  ;;  %v3049_v40 = vld [vmem:[%s2804_s9 + $0x32] sm:$0x3] }
  0x3a   : > { %v741_v52 = vrot.slane %v740_v34, 1  ;;  %v752_v53 = vmax.f32 %v750_v5, %v751_v47  ;;  %v759_v11 = vmax.f32 %v757_v43, %v758_v8  ;;  %v765_v12 = vrot.slane %v764_v50, 4  ;;  %v3052_v42 = vld [vmem:[%s2804_s9 + $0x34] sm:$0x3]  ;;  %v3058_v8 = vld [vmem:[%s2804_s9 + $0x26] sm:$0x3] }
  0x3b   : > { %v746_v55 = vrot.slane %v745_v49, 2  ;;  %v772_v56 = vrot.slane %v771_v38, 4  ;;  %v779_v57 = vrot.slane %v778_v39, 4  ;;  %v785_v44 = vsel %vm462_vm3, %v444_v18, -inf }
  0x3c   : > { %v3027_v45 = vmax.f32 %v740_v34, %v741_v52  ;;  %v753_v54 = vrot.slane %v752_v53, 2  ;;  %v760_v59 = vrot.slane %v759_v11, 2  ;;  %v766_v14 = vmax.f32 %v764_v50, %v765_v12  ;;  %v3072_v52 = vld [vmem:[%s2804_s9 + $0x2a] sm:$0x3]  ;;  %v3079_v12 = vld [vmem:[%s2804_s9 + $0x3c] sm:$0x3] }
  0x3d   : > { %v747_v46 = vmax.f32 %v745_v49, %v746_v55  ;;  %v773_v60 = vmax.f32 %v771_v38, %v772_v56  ;;  %v780_v15 = vmax.f32 %v778_v39, %v779_v57  ;;  %v786_v16 = vrot.slane %v785_v44, 4  ;;  %v3067_v49 = vld [vmem:[%s2804_s9 + $0x38] sm:$0x3] }
  0x3e   : > { %v754_v58 = vmax.f32 %v752_v53, %v753_v54  ;;  %v761_v61 = vmax.f32 %v759_v11, %v760_v59  ;;  %v767_v62 = vrot.slane %v766_v14, 2  ;;  %v792_v51 = vsel %vm462_vm3, %v445_v19, -inf  ;;  %v3075_v53 = vld [vmem:[%s2804_s9 + $0x2c] sm:$0x3]  ;;  %v299_v11 = vld [vmem:[%s2804_s9 + $0x3a] sm:$0x3] }
  0x3f   : > { %v748_v2 = vrot.slane %v747_v46, 1  ;;  %v774_v18 = vrot.slane %v773_v60, 2  ;;  %v781_v63 = vrot.slane %v780_v15, 2  ;;  %v787_v4 = vmax.f32 %v785_v44, %v786_v16  ;;  %v3085_v44 = vld [vmem:[%s2804_s9 + $0x2e] sm:$0x3] }
  0x40   : > { %v755_v9 = vrot.slane %v754_v58, 1  ;;  %v762_v10 = vrot.slane %v761_v61, 1  ;;  %v768_v13 = vmax.f32 %v766_v14, %v767_v62  ;;  %v793_v17 = vrot.slane %v792_v51, 4  ;;  %v3091_v54 = vld [vmem:[%s2804_s9 + $0x40] sm:$0x3] }
  0x41   : > { %v749_v20 = vmax.f32 %v747_v46, %v748_v2  ;;  %v775_v21 = vmax.f32 %v773_v60, %v774_v18  ;;  %v782_v22 = vmax.f32 %v780_v15, %v781_v63  ;;  %v788_v23 = vrot.slane %v787_v4, 2  ;;  %v3094_v59 = vld [vmem:[%s2804_s9 + $0x42] sm:$0x3]  ;;  %v3097_v14 = vld [vmem:[%s2804_s9 + $0x44] sm:$0x3] }
  0x42   : > { %v756_v3 = vmax.f32 %v754_v58, %v755_v9  ;;  %v763_v19 = vmax.f32 %v761_v61, %v762_v10  ;;  %v769_v7 = vrot.slane %v768_v13, 1  ;;  %v794_v24 = vmax.f32 %v792_v51, %v793_v17  ;;  %v3105_v16 = vld [vmem:[%s2804_s9 + $0x46] sm:$0x3]  ;;  %v3108_v58 = vld [vmem:[%s2804_s9 + $0x48] sm:$0x3] }
  0x43   : > { %v776_v28 = vrot.slane %v775_v21, 1  ;;  %v783_v29 = vrot.slane %v782_v22, 1  ;;  %v789_v33 = vmax.f32 %v787_v4, %v788_v23  ;;  %v1011_v36 = vsel %vm935_vm4, %v2983_v30, %v2981_v26  ;;  %v3061_v26 = vld [vmem:[%s2804_s9 + $0x28] sm:$0x3]  ;;  %v3064_v30 = vld [vmem:[%s2804_s9 + $0x36] sm:$0x3] }
  0x44   : > { %v770_v5 = vmax.f32 %v768_v13, %v769_v7  ;;  %v795_v43 = vrot.slane %v794_v24, 2  ;;  %v1012_v34 = vsel %vm937_vm5, %v2985_v31, %v1011_v36  ;;  %v1028_v47 = vsel %vm935_vm4, %v756_v3, %v749_v20  ;;  %v3111_v61 = vld [vmem:[%s2804_s9 + $0x4a] sm:$0x3]  ;;  %v3114_v62 = vld [vmem:[%s2804_s9 + $0x50] sm:$0x3] }
  0x45   : > { %v777_v50 = vmax.f32 %v775_v21, %v776_v28  ;;  %v784_v38 = vmax.f32 %v782_v22, %v783_v29  ;;  %v790_v39 = vrot.slane %v789_v33, 1  ;;  %v1013_v31 = vsel %vm939_vm6, %v2987_v32, %v1012_v34  ;;  %v3088_v32 = vld [vmem:[%s2804_s9 + $0x3e] sm:$0x3]  ;;  %v3122_v63 = vld [vmem:[%s2804_s9 + $0x4c] sm:$0x3] }
  0x46   : > { %v796_v55 = vmax.f32 %v794_v24, %v795_v43  ;;  %v1014_v56 = vsel %vm941_vm7, %v2992_v35, %v1013_v31  ;;  %v1029_v57 = vsel %vm937_vm5, %v763_v19, %v1028_v47  ;;  %v406_v46 = vmax.f32 %v3034_v0, %v3040_v27  ;;  %v3125_v4 = vld [vmem:[%s2804_s9 + $0x52] sm:$0x3]  ;;  %v3128_v9 = vld [vmem:[%s2804_s9 + $0x54] sm:$0x3]  ;;  %v3139_v20 = vld [vmem:[%s2804_s9 + $0x58] sm:$0x3] }
  0x47   : > { %v791_v60 = vmax.f32 %v789_v33, %v790_v39  ;;  %v1015_v35 = vsel %vm943_vm8, %v2999_v41, %v1014_v56  ;;  %v1030_v15 = vsel %vm939_vm6, %v770_v5, %v1029_v57  ;;  %v407_v51 = vmax.f32 %v3037_v25, %v3049_v40  ;;  %v3142_v21 = vld [vmem:[%s2804_s9 + $0x5a] sm:$0x3]  ;;  %v3154_v19 = vld [vmem:[%s2804_s9 + $0x5c] sm:$0x3]  ;;  %v3157_v7 = vld [vmem:[%s2804_s9 + $0x5e] sm:$0x3] }
  0x48   : > { %v797_v2 = vrot.slane %v796_v55, 1  ;;  %v1016_v41 = vsel %vm945_vm9, %v3009_v48, %v1015_v35  ;;  %v1031_v18 = vsel %vm941_vm7, %v777_v50, %v1030_v15  ;;  %v408_v10 = vmax.f32 %v3046_v37, %v3052_v42  ;;  %v3136_v48 = vld [vmem:[%s2804_s9 + $0x56] sm:$0x3] }
  0x49   : > { %v1017_v13 = vsel %vm947_vm10, %v3027_v45, %v1016_v41  ;;  %v1032_v17 = vsel %vm943_vm8, %v784_v38, %v1031_v18  ;;  %v409_v22 = vmax.f32 %v3058_v8, %v3064_v30  ;;  %v410_v23 = vmax.f32 %v3061_v26, %v3067_v49  ;;  %v3151_v45 = vld [vmem:[%s2804_s9 + $0x4e] sm:$0x3] }
  0x4a   : > { %v798_v0 = vmax.f32 %v796_v55, %v797_v2  ;;  %1019 = vst.msk [vmem:[#allocation2 + $0x33] sm:$0xff] %vm950_vm11, %v1017_v13  ;;  %v1033_v3 = vsel %vm945_vm9, %v791_v60, %v1032_v17  ;;  %v411_v24 = vmax.f32 %v3072_v52, %v299_v11  ;;  %v412_v25 = vmax.f32 %v3075_v53, %v3079_v12 }
  0x4b   : > { %v413_v27 = vmax.f32 %v3085_v44, %v3088_v32  ;;  %v414_v28 = vmax.f32 %v3091_v54, %v3114_v62  ;;  %v415_v29 = vmax.f32 %v3094_v59, %v3125_v4  ;;  %v416_v33 = vmax.f32 %v3097_v14, %v3128_v9 }
  0x4c   : > { %v1034_v36 = vsel %vm947_vm10, %v798_v0, %v1033_v3  ;;  %v417_v37 = vmax.f32 %v3105_v16, %v3136_v48  ;;  %v418_v40 = vmax.f32 %v3108_v58, %v3139_v20  ;;  %v419_v42 = vmax.f32 %v3111_v61, %v3142_v21 }
  0x4d   : > { %1036 = vst.msk [vmem:[#allocation2 + $0x3d] sm:$0xff] %vm950_vm11, %v1034_v36  ;;  %v420_v5 = vmax.f32 %v3122_v63, %v3154_v19  ;;  %v421_v43 = vmax.f32 %v3151_v45, %v3157_v7  ;;  %v519_v34 = vsel %vm462_vm3, %v406_v46, -inf  ;;  %v526_v47 = vsel %vm462_vm3, %v407_v51, -inf }
  0x4e   : > { %v520_v8 = vrot.slane %v519_v34, 4  ;;  %v527_v26 = vrot.slane %v526_v47, 4  ;;  %v533_v30 = vsel %vm462_vm3, %v408_v10, -inf  ;;  %v540_v49 = vsel %vm462_vm3, %v409_v22, -inf }
  0x4f   : > { %v534_v50 = vrot.slane %v533_v30, 4  ;;  %v541_v38 = vrot.slane %v540_v49, 4  ;;  %v547_v39 = vsel %vm462_vm3, %v410_v23, -inf  ;;  %v554_v31 = vsel %vm462_vm3, %v411_v24, -inf }
  0x50   : > { %v521_v52 = vmax.f32 %v519_v34, %v520_v8  ;;  %v528_v53 = vmax.f32 %v526_v47, %v527_v26  ;;  %v548_v11 = vrot.slane %v547_v39, 4  ;;  %v555_v12 = vrot.slane %v554_v31, 4 }
  0x51   : > { %v535_v55 = vmax.f32 %v533_v30, %v534_v50  ;;  %v542_v56 = vmax.f32 %v540_v49, %v541_v38  ;;  %v561_v57 = vsel %vm462_vm3, %v412_v25, -inf  ;;  %v568_v44 = vsel %vm462_vm3, %v413_v27, -inf  ;;  %v1093_v32 = vld [vmem:[#allocation2 + $0x31] sm:$0xff] }
  0x52   : > { %v522_v46 = vrot.slane %v521_v52, 2  ;;  %v529_v60 = vrot.slane %v528_v53, 2  ;;  %v549_v35 = vmax.f32 %v547_v39, %v548_v11  ;;  %v556_v15 = vmax.f32 %v554_v31, %v555_v12 }
  0x53   : > { %v536_v51 = vrot.slane %v535_v55, 2  ;;  %v543_v2 = vrot.slane %v542_v56, 2  ;;  %v562_v41 = vrot.slane %v561_v57, 4  ;;  %v569_v18 = vrot.slane %v568_v44, 4 }
  0x54   : > { %v1094_v10 = vld [vmem:[#allocation2 + $0x39] sm:$0xff]  ;;  %v523_v13 = vmax.f32 %v521_v52, %v522_v46  ;;  %v530_v17 = vmax.f32 %v528_v53, %v529_v60  ;;  %v550_v22 = vrot.slane %v549_v35, 2  ;;  %v557_v23 = vrot.slane %v556_v15, 2 }
  0x55   : > { %v1100_v0 = vpack.c.bf16 %v1094_v10, %v1093_v32  ;;  %v537_v3 = vmax.f32 %v535_v55, %v536_v51  ;;  %v544_v24 = vmax.f32 %v542_v56, %v543_v2  ;;  %v563_v25 = vmax.f32 %v561_v57, %v562_v41 }
  0x56   : > { %v524_v36 = vrot.slane %v523_v13, 1  ;;  %v531_v27 = vrot.slane %v530_v17, 1  ;;  %v551_v34 = vmax.f32 %v549_v35, %v550_v22  ;;  %v558_v47 = vmax.f32 %v556_v15, %v557_v23 }
  0x57   : > { %2491 = vmatmul.mubr.msk.bf16.vlgmr.msra.gmra.mrb[0].mxu1 %vm911_vm1, %v1100_v0  ;;  %v538_v8 = vrot.slane %v537_v3, 1  ;;  %v545_v26 = vrot.slane %v544_v24, 1  ;;  %v564_v30 = vrot.slane %v563_v25, 2  ;;  %v570_v49 = vmax.f32 %v568_v44, %v569_v18 }
  0x58   : > { %2499 = vmatpush3.bf16.msra.mxu1 %v2810_v6  ;;  %2494 = vmatprep.mubr.msk.bf16.mxu1 %vm2699_vm2, %v2698_v1  ;;  %v3194_v50 = vmax.f32 %v523_v13, %v524_v36  ;;  %v3196_v38 = vmax.f32 %v530_v17, %v531_v27  ;;  %v552_v39 = vrot.slane %v551_v34, 1  ;;  %v559_v31 = vrot.slane %v558_v47, 1  ;;  %v366_v36 = vld [vmem:[%s2804_s9 + $0xc0] sm:$0x3] }
  0x59   : > { %v3198_v52 = vmax.f32 %v537_v3, %v538_v8  ;;  %v3200_v53 = vmax.f32 %v544_v24, %v545_v26  ;;  %v565_v11 = vmax.f32 %v563_v25, %v564_v30  ;;  %v571_v12 = vrot.slane %v570_v49, 2  ;;  %2542 = vmatprep.subr.bf16.mxu1 %v2698_v1 }
  0x5a   : > { %v3203_v55 = vmax.f32 %v551_v34, %v552_v39  ;;  %v3205_v6 = vmax.f32 %v558_v47, %v559_v31  ;;  %v575_v56 = vsel %vm462_vm3, %v414_v28, -inf  ;;  %v582_v57 = vsel %vm462_vm3, %v415_v29, -inf  ;;  %v367_v34 = vld [vmem:[%s2804_s9 + $0xc2] sm:$0x3]  ;;  %v368_v47 = vld [vmem:[%s2804_s9 + $0xc4] sm:$0x3] }
  0x5b   : > { %v566_v44 = vrot.slane %v565_v11, 1  ;;  %v572_v32 = vmax.f32 %v570_v49, %v571_v12  ;;  %v576_v46 = vrot.slane %v575_v56, 4  ;;  %v583_v60 = vrot.slane %v582_v57, 4  ;;  %v374_v39 = vld [vmem:[%s2804_s9 + $0xd0] sm:$0x3] }
  0x5c   : > { %v589_v35 = vsel %vm462_vm3, %v416_v33, -inf  ;;  %v596_v54 = vsel %vm462_vm3, %v417_v37, -inf  ;;  %v603_v59 = vsel %vm462_vm3, %v418_v40, -inf  ;;  %v610_v62 = vsel %vm462_vm3, %v419_v42, -inf }
  0x5d   : > { %v3231_v4 = vmax.f32 %v565_v11, %v566_v44  ;;  %v573_v14 = vrot.slane %v572_v32, 1  ;;  %v577_v9 = vmax.f32 %v575_v56, %v576_v46  ;;  %v584_v28 = vmax.f32 %v582_v57, %v583_v60  ;;  %v375_v57 = vld [vmem:[%s2804_s9 + $0xd2] sm:$0x3]  ;;  %v376_v44 = vld [vmem:[%s2804_s9 + $0xd4] sm:$0x3] }
  0x5e   : > { %v590_v29 = vrot.slane %v589_v35, 4  ;;  %v597_v33 = vrot.slane %v596_v54, 4  ;;  %v604_v16 = vrot.slane %v603_v59, 4  ;;  %v611_v48 = vrot.slane %v610_v62, 4 }
  0x5f   : > { %v3233_v37 = vmax.f32 %v572_v32, %v573_v14  ;;  %v578_v15 = vrot.slane %v577_v9, 2  ;;  %v585_v58 = vrot.slane %v584_v28, 2  ;;  %v617_v61 = vsel %vm462_vm3, %v420_v5, -inf }
  0x60   : > { %v591_v20 = vmax.f32 %v589_v35, %v590_v29  ;;  %v598_v21 = vmax.f32 %v596_v54, %v597_v33  ;;  %v605_v40 = vmax.f32 %v603_v59, %v604_v16  ;;  %v612_v42 = vmax.f32 %v610_v62, %v611_v48  ;;  %v369_v54 = vld [vmem:[%s2804_s9 + $0xc6] sm:$0x3]  ;;  %v370_v59 = vld [vmem:[%s2804_s9 + $0xc8] sm:$0x3]  ;;  %v371_v62 = vld [vmem:[%s2804_s9 + $0xca] sm:$0x3] }
  0x61   : > { %v579_v51 = vmax.f32 %v577_v9, %v578_v15  ;;  %v586_v2 = vmax.f32 %v584_v28, %v585_v58  ;;  %v618_v41 = vrot.slane %v617_v61, 4  ;;  %v624_v18 = vsel %vm462_vm3, %v421_v43, -inf  ;;  %v378_v28 = vld [vmem:[%s2804_s9 + $0xd8] sm:$0x3]  ;;  %v372_v48 = vld [vmem:[%s2804_s9 + $0xcc] sm:$0x3] }
  0x62   : > { %v592_v10 = vrot.slane %v591_v20, 2  ;;  %v599_v13 = vrot.slane %v598_v21, 2  ;;  %v606_v17 = vrot.slane %v605_v40, 2  ;;  %v613_v63 = vrot.slane %v612_v42, 2  ;;  %v373_v15 = vld [vmem:[%s2804_s9 + $0xce] sm:$0x3] }
  0x63   : > { %v580_v19 = vrot.slane %v579_v51, 1  ;;  %v587_v5 = vrot.slane %v586_v2, 1  ;;  %v619_v22 = vmax.f32 %v617_v61, %v618_v41  ;;  %v625_v23 = vrot.slane %v624_v18, 4  ;;  %v379_v58 = vld [vmem:[%s2804_s9 + $0xda] sm:$0x3] }
  0x64   : > { %v593_v0 = vmax.f32 %v591_v20, %v592_v10  ;;  %v600_v3 = vmax.f32 %v598_v21, %v599_v13  ;;  %v607_v24 = vmax.f32 %v605_v40, %v606_v17  ;;  %v614_v25 = vmax.f32 %v612_v42, %v613_v63 }
  0x65   : > { %v581_v45 = vmax.f32 %v579_v51, %v580_v19  ;;  %v588_v7 = vmax.f32 %v586_v2, %v587_v5  ;;  %v620_v43 = vrot.slane %v619_v22, 2  ;;  %v626_v27 = vmax.f32 %v624_v18, %v625_v23  ;;  %v380_v51 = vld [vmem:[%s2804_s9 + $0xdc] sm:$0x3]  ;;  %v381_v2 = vld [vmem:[%s2804_s9 + $0xde] sm:$0x3] }
  0x66   : > { %v594_v8 = vrot.slane %v593_v0, 1  ;;  %v601_v26 = vrot.slane %v600_v3, 1  ;;  %v608_v30 = vrot.slane %v607_v24, 1  ;;  %v615_v49 = vrot.slane %v614_v25, 1 }
  0x67   : > { %v621_v31 = vmax.f32 %v619_v22, %v620_v43  ;;  %v627_v11 = vrot.slane %v626_v27, 2  ;;  %v960_v12 = vsel %vm935_vm4, %v3196_v38, %v3194_v50  ;;  %v977_v56 = vsel %vm935_vm4, %v588_v7, %v581_v45  ;;  %v377_v38 = vld [vmem:[%s2804_s9 + $0xd6] sm:$0x3] }
  0x68   : > { %v595_v32 = vmax.f32 %v593_v0, %v594_v8  ;;  %v602_v46 = vmax.f32 %v600_v3, %v601_v26  ;;  %v609_v60 = vmax.f32 %v607_v24, %v608_v30  ;;  %v616_v35 = vmax.f32 %v614_v25, %v615_v49 }
  0x69   : > { %v622_v14 = vrot.slane %v621_v31, 1  ;;  %v628_v9 = vmax.f32 %v626_v27, %v627_v11  ;;  %v961_v50 = vsel %vm937_vm5, %v3198_v52, %v960_v12  ;;  %v446_v29 = vmax.f32 %v366_v36, %v374_v39 }
  0x6a   : > { %v962_v33 = vsel %vm939_vm6, %v3200_v53, %v961_v50  ;;  %v978_v16 = vsel %vm937_vm5, %v595_v32, %v977_v56  ;;  %v447_v61 = vmax.f32 %v367_v34, %v375_v57  ;;  %v448_v20 = vmax.f32 %v368_v47, %v376_v44 }
  0x6b   : > { %v623_v21 = vmax.f32 %v621_v31, %v622_v14  ;;  %v629_v40 = vrot.slane %v628_v9, 1  ;;  %v963_v42 = vsel %vm941_vm7, %v3203_v55, %v962_v33  ;;  %v979_v52 = vsel %vm939_vm6, %v602_v46, %v978_v16  ;;  %v318_v33 = vld [vmem:[%s2804_s9 + $0x60] sm:$0x3] }
  0x6c   : > { %v964_v41 = vsel %vm943_vm8, %v3205_v6, %v963_v42  ;;  %v980_v53 = vsel %vm941_vm7, %v609_v60, %v979_v52  ;;  %v449_v18 = vmax.f32 %v369_v54, %v377_v38  ;;  %v450_v10 = vmax.f32 %v370_v59, %v378_v28  ;;  %v320_v52 = vld [vmem:[%s2804_s9 + $0x64] sm:$0x3] }
  0x6d   : > { %v630_v13 = vmax.f32 %v628_v9, %v629_v40  ;;  %v965_v17 = vsel %vm945_vm9, %v3231_v4, %v964_v41  ;;  %v981_v63 = vsel %vm943_vm8, %v616_v35, %v980_v53  ;;  %v451_v19 = vmax.f32 %v371_v62, %v379_v58  ;;  %v327_v41 = vld [vmem:[%s2804_s9 + $0x72] sm:$0x3] }
  0x6e   : > { %v966_v55 = vsel %vm947_vm10, %v3233_v37, %v965_v17  ;;  %v982_v5 = vsel %vm945_vm9, %v623_v21, %v981_v63  ;;  %v452_v22 = vmax.f32 %v372_v48, %v380_v51  ;;  %v453_v23 = vmax.f32 %v373_v15, %v381_v2  ;;  %v321_v51 = vld [vmem:[%s2804_s9 + $0x66] sm:$0x3]  ;;  %v326_v2 = vld [vmem:[%s2804_s9 + $0x70] sm:$0x3]  ;;  %v322_v17 = vld [vmem:[%s2804_s9 + $0x68] sm:$0x3] }
  0x6f   : > { %968 = vst.msk [vmem:[#allocation2 + $0x15] sm:$0xff] %vm950_vm11, %v966_v55  ;;  %v983_v6 = vsel %vm947_vm10, %v630_v13, %v982_v5  ;;  %v799_v0 = vsel %vm462_vm3, %v446_v29, -inf  ;;  %v806_v3 = vsel %vm462_vm3, %v447_v61, -inf  ;;  %v813_v4 = vsel %vm462_vm3, %v448_v20, -inf  ;;  %v319_v61 = vld [vmem:[%s2804_s9 + $0x62] sm:$0x3] }
  0x70   : > { %985 = vst.msk [vmem:[#allocation2 + $0x1f] sm:$0xff] %vm950_vm11, %v983_v6  ;;  %v800_v24 = vrot.slane %v799_v0, 4  ;;  %v807_v25 = vrot.slane %v806_v3, 4  ;;  %v814_v36 = vrot.slane %v813_v4, 4  ;;  %v820_v37 = vsel %vm462_vm3, %v449_v18, -inf }
  0x71   : > { %v821_v45 = vrot.slane %v820_v37, 4  ;;  %v827_v7 = vsel %vm462_vm3, %v450_v10, -inf  ;;  %v834_v43 = vsel %vm462_vm3, %v451_v19, -inf  ;;  %v841_v27 = vsel %vm462_vm3, %v452_v22, -inf  ;;  %v323_v63 = vld [vmem:[%s2804_s9 + $0x6a] sm:$0x3] }
  0x72   : > { %v801_v34 = vmax.f32 %v799_v0, %v800_v24  ;;  %v808_v47 = vmax.f32 %v806_v3, %v807_v25  ;;  %v815_v8 = vmax.f32 %v813_v4, %v814_v36  ;;  %v828_v26 = vrot.slane %v827_v7, 4  ;;  %v324_v19 = vld [vmem:[%s2804_s9 + $0x6c] sm:$0x3]  ;;  %v328_v55 = vld [vmem:[%s2804_s9 + $0x74] sm:$0x3] }
  0x73   : > { %v822_v30 = vmax.f32 %v820_v37, %v821_v45  ;;  %v835_v49 = vrot.slane %v834_v43, 4  ;;  %v842_v39 = vrot.slane %v841_v27, 4  ;;  %v848_v31 = vsel %vm462_vm3, %v453_v23, -inf  ;;  %v329_v0 = vld [vmem:[%s2804_s9 + $0x76] sm:$0x3] }
  0x74   : > { %v802_v11 = vrot.slane %v801_v34, 2  ;;  %v809_v12 = vrot.slane %v808_v47, 2  ;;  %v816_v56 = vrot.slane %v815_v8, 2  ;;  %v829_v57 = vmax.f32 %v827_v7, %v828_v26  ;;  %v330_v24 = vld [vmem:[%s2804_s9 + $0x78] sm:$0x3] }
  0x75   : > { %v823_v44 = vrot.slane %v822_v30, 2  ;;  %v836_v32 = vmax.f32 %v834_v43, %v835_v49  ;;  %v843_v46 = vmax.f32 %v841_v27, %v842_v39  ;;  %v849_v60 = vrot.slane %v848_v31, 4  ;;  %v331_v25 = vld [vmem:[%s2804_s9 + $0x7a] sm:$0x3]  ;;  %v332_v36 = vld [vmem:[%s2804_s9 + $0x7c] sm:$0x3] }
  0x76   : > { %v1089_v35 = vld [vmem:[#allocation2 + $0x11] sm:$0xff]  ;;  %v803_v54 = vmax.f32 %v801_v34, %v802_v11  ;;  %v810_v59 = vmax.f32 %v808_v47, %v809_v12  ;;  %v817_v62 = vmax.f32 %v815_v8, %v816_v56  ;;  %v830_v14 = vrot.slane %v829_v57, 2  ;;  %v325_v47 = vld [vmem:[%s2804_s9 + $0x6e] sm:$0x3]  ;;  %v333_v8 = vld [vmem:[%s2804_s9 + $0x7e] sm:$0x3] }
  0x77   : > { %v1090_v9 = vld [vmem:[#allocation2 + $0x19] sm:$0xff]  ;;  %v824_v50 = vmax.f32 %v822_v30, %v823_v44  ;;  %v837_v38 = vrot.slane %v836_v32, 2  ;;  %v844_v28 = vrot.slane %v843_v46, 2  ;;  %v850_v29 = vmax.f32 %v848_v31, %v849_v60 }
  0x78   : > { %v1098_v16 = vpack.c.bf16 %v1090_v9, %v1089_v35  ;;  %v804_v48 = vrot.slane %v803_v54, 1  ;;  %v811_v15 = vrot.slane %v810_v59, 1  ;;  %v818_v58 = vrot.slane %v817_v62, 1 }
  0x79   : > { %v825_v20 = vrot.slane %v824_v50, 1  ;;  %v831_v21 = vmax.f32 %v829_v57, %v830_v14  ;;  %v838_v40 = vmax.f32 %v836_v32, %v837_v38  ;;  %v845_v42 = vmax.f32 %v843_v46, %v844_v28 }
  0x7a   : > { %2483 = vmatmul.mubr.msk.bf16.gmra.mrb[4].mxu0 %vm911_vm1, %v1098_v16  ;;  %v805_v53 = vmax.f32 %v803_v54, %v804_v48  ;;  %v812_v18 = vmax.f32 %v810_v59, %v811_v15  ;;  %v819_v10 = vmax.f32 %v817_v62, %v818_v58  ;;  %v851_v13 = vrot.slane %v850_v29, 2 }
  0x7b   : > { %v826_v5 = vmax.f32 %v824_v50, %v825_v20  ;;  %v832_v22 = vrot.slane %v831_v21, 1  ;;  %v839_v23 = vrot.slane %v838_v40, 1  ;;  %v846_v6 = vrot.slane %v845_v42, 1  ;;  %2486 = vmatprep.mubr.msk.bf16.mxu0 %vm2699_vm2, %v2698_v1 }
  0x7c   : > { %v852_v3 = vmax.f32 %v850_v29, %v851_v13  ;;  %v1045_v4 = vsel %vm935_vm4, %v812_v18, %v805_v53  ;;  %v422_v37 = vmax.f32 %v318_v33, %v326_v2  ;;  %v423_v45 = vmax.f32 %v319_v61, %v327_v41 }
  0x7d   : > { %v833_v7 = vmax.f32 %v831_v21, %v832_v22  ;;  %v840_v43 = vmax.f32 %v838_v40, %v839_v23  ;;  %v847_v27 = vmax.f32 %v845_v42, %v846_v6  ;;  %v1046_v34 = vsel %vm937_vm5, %v819_v10, %v1045_v4 }
  0x7e   : > { %v853_v26 = vrot.slane %v852_v3, 1  ;;  %v1047_v30 = vsel %vm939_vm6, %v826_v5, %v1046_v34  ;;  %v424_v49 = vmax.f32 %v320_v52, %v328_v55  ;;  %v425_v39 = vmax.f32 %v321_v51, %v329_v0 }
  0x7f   : > { %v1048_v31 = vsel %vm941_vm7, %v833_v7, %v1047_v30  ;;  %v426_v11 = vmax.f32 %v322_v17, %v330_v24  ;;  %v427_v12 = vmax.f32 %v323_v63, %v331_v25  ;;  %v428_v56 = vmax.f32 %v324_v19, %v332_v36 }
  0x80   : > { %v854_v57 = vmax.f32 %v852_v3, %v853_v26  ;;  %v1049_v44 = vsel %vm943_vm8, %v840_v43, %v1048_v31  ;;  %v429_v32 = vmax.f32 %v325_v47, %v333_v8  ;;  %v631_v46 = vsel %vm462_vm3, %v422_v37, -inf  ;;  %v1071_v8 = vld [vmem:[#allocation2] sm:$0xff]  ;;  %v2382_v26 = vld [vmem:[%s3605_s1 + $0xc] sm:$0xf] }
  0x81   : > { %v1050_v60 = vsel %vm945_vm9, %v847_v27, %v1049_v44  ;;  %v632_v35 = vrot.slane %v631_v46, 4  ;;  %v638_v54 = vsel %vm462_vm3, %v423_v45, -inf  ;;  %v645_v59 = vsel %vm462_vm3, %v424_v49, -inf  ;;  %v1072_v31 = vld [vmem:[#allocation2 + $0x8] sm:$0xff] }
  0x82   : > { %v1051_v62 = vsel %vm947_vm10, %v854_v57, %v1050_v60  ;;  %v639_v14 = vrot.slane %v638_v54, 4  ;;  %v646_v9 = vrot.slane %v645_v59, 4  ;;  %v652_v50 = vsel %vm462_vm3, %v425_v39, -inf  ;;  %v390_v60 = vld [vmem:[%s2804_s9 + $0xf0] sm:$0x3] }
  0x83   : > { %1053 = vst.msk [vmem:[#allocation2 + $0x47] sm:$0xff] %vm950_vm11, %v1051_v62  ;;  %v633_v38 = vmax.f32 %v631_v46, %v632_v35  ;;  %v653_v28 = vrot.slane %v652_v50, 4  ;;  %v659_v29 = vsel %vm462_vm3, %v426_v11, -inf  ;;  %v666_v33 = vsel %vm462_vm3, %v427_v12, -inf  ;;  %v382_v11 = vld [vmem:[%s2804_s9 + $0xe0] sm:$0x3] }
  0x84   : > { %v640_v16 = vmax.f32 %v638_v54, %v639_v14  ;;  %v647_v48 = vmax.f32 %v645_v59, %v646_v9  ;;  %v660_v15 = vrot.slane %v659_v29, 4  ;;  %v667_v58 = vrot.slane %v666_v33, 4  ;;  %v383_v12 = vld [vmem:[%s2804_s9 + $0xe2] sm:$0x3]  ;;  %v385_v46 = vld [vmem:[%s2804_s9 + $0xe6] sm:$0x3] }
  0x85   : > { %v634_v61 = vrot.slane %v633_v38, 2  ;;  %v654_v20 = vmax.f32 %v652_v50, %v653_v28  ;;  %v673_v21 = vsel %vm462_vm3, %v428_v56, -inf  ;;  %v680_v40 = vsel %vm462_vm3, %v429_v32, -inf  ;;  %v384_v32 = vld [vmem:[%s2804_s9 + $0xe4] sm:$0x3]  ;;  %v3340_v14 = vld [vmem:[#allocation2 + $0x10] sm:$0xff] }
  0x86   : > { %v641_v42 = vrot.slane %v640_v16, 2  ;;  %v648_v52 = vrot.slane %v647_v48, 2  ;;  %v661_v51 = vmax.f32 %v659_v29, %v660_v15  ;;  %v668_v2 = vmax.f32 %v666_v33, %v667_v58  ;;  %v391_v35 = vld [vmem:[%s2804_s9 + $0xf2] sm:$0x3]  ;;  %v3342_v9 = vld [vmem:[#allocation2 + $0x18] sm:$0xff] }
  0x87   : > { %v635_v41 = vmax.f32 %v633_v38, %v634_v61  ;;  %v655_v53 = vrot.slane %v654_v20, 2  ;;  %v674_v18 = vrot.slane %v673_v21, 4  ;;  %v681_v10 = vrot.slane %v680_v40, 4  ;;  %v386_v50 = vld [vmem:[%s2804_s9 + $0xe8] sm:$0x3] }
  0x88   : > { %v642_v13 = vmax.f32 %v640_v16, %v641_v42  ;;  %v649_v17 = vmax.f32 %v647_v48, %v648_v52  ;;  %v662_v63 = vrot.slane %v661_v51, 2  ;;  %v669_v19 = vrot.slane %v668_v2, 2  ;;  %v387_v38 = vld [vmem:[%s2804_s9 + $0xea] sm:$0x3]  ;;  %v388_v28 = vld [vmem:[%s2804_s9 + $0xec] sm:$0x3] }
  0x89   : > { %v636_v55 = vrot.slane %v635_v41, 1  ;;  %v656_v5 = vmax.f32 %v654_v20, %v655_v53  ;;  %v675_v22 = vmax.f32 %v673_v21, %v674_v18  ;;  %v682_v23 = vmax.f32 %v680_v40, %v681_v10  ;;  %v389_v29 = vld [vmem:[%s2804_s9 + $0xee] sm:$0x3]  ;;  %v392_v33 = vld [vmem:[%s2804_s9 + $0xf4] sm:$0x3] }
  0x8a   : > { %v1095_v6 = vld [vmem:[#allocation2 + $0x41] sm:$0xff]  ;;  %v1096_v0 = vld [vmem:[#allocation2 + $0x49] sm:$0xff]  ;;  %v643_v3 = vrot.slane %v642_v13, 1  ;;  %v650_v4 = vrot.slane %v649_v17, 1  ;;  %v663_v24 = vmax.f32 %v661_v51, %v662_v63  ;;  %v670_v25 = vmax.f32 %v668_v2, %v669_v19  ;;  %v393_v15 = vld [vmem:[%s2804_s9 + $0xf6] sm:$0x3] }
  0x8b   : > { %v1101_v36 = vpack.c.bf16 %v1096_v0, %v1095_v6  ;;  %v637_v37 = vmax.f32 %v635_v41, %v636_v55  ;;  %v657_v45 = vrot.slane %v656_v5, 1  ;;  %v676_v7 = vrot.slane %v675_v22, 2  ;;  %v394_v58 = vld [vmem:[%s2804_s9 + $0xf8] sm:$0x3]  ;;  %v395_v61 = vld [vmem:[%s2804_s9 + $0xfa] sm:$0x3] }
  0x8c   : > { %v644_v43 = vmax.f32 %v642_v13, %v643_v3  ;;  %v651_v27 = vmax.f32 %v649_v17, %v650_v4  ;;  %v664_v34 = vrot.slane %v663_v24, 1  ;;  %v671_v47 = vrot.slane %v670_v25, 1  ;;  %v396_v52 = vld [vmem:[%s2804_s9 + $0xfc] sm:$0x3]  ;;  %v397_v51 = vld [vmem:[%s2804_s9 + $0xfe] sm:$0x3]  ;;  %s268_s9 = scalar_lea.vmem %s3610_s6, %s3613_s22 }
  0x8d   : > { %2495 = vmatmul.mubr.msk.bf16.gmra.mrb[4].mxu1 %vm911_vm1, %v1101_v36  ;;  %v658_v30 = vmax.f32 %v656_v5, %v657_v45  ;;  %v677_v49 = vmax.f32 %v675_v22, %v676_v7  ;;  %v683_v39 = vrot.slane %v682_v23, 2  ;;  %v1081_v48 = vpack.c.bf16 %v1072_v31, %v1071_v8 }
  0x8e   : > { %2500 = vmatprep.mubr.msk.bf16.mxu1 %vm2699_vm2, %v2698_v1  ;;  %v665_v56 = vmax.f32 %v663_v24, %v664_v34  ;;  %v672_v57 = vmax.f32 %v670_v25, %v671_v47  ;;  %v994_v44 = vsel %vm935_vm4, %v644_v43, %v637_v37  ;;  %v1438_v42 = vsel %vm1119_vm0, %v2382_v26, 0 }
  0x8f   : > { %v678_v54 = vrot.slane %v677_v49, 1  ;;  %v684_v59 = vmax.f32 %v682_v23, %v683_v39  ;;  %v995_v62 = vsel %vm937_vm5, %v651_v27, %v994_v44  ;;  %v1082_v41 = vpack.c.bf16 %v3342_v9, %v3340_v14 }
  0x90   : > { %v996_v16 = vsel %vm939_vm6, %v658_v30, %v995_v62  ;;  %v454_v53 = vmax.f32 %v382_v11, %v390_v60  ;;  %v455_v18 = vmax.f32 %v383_v12, %v391_v35  ;;  %v456_v17 = vmax.f32 %v384_v32, %v392_v33  ;;  %v1075_v35 = vld [vmem:[#allocation2 + $0x20] sm:$0xff] }
  0x91   : > { %v679_v20 = vmax.f32 %v677_v49, %v678_v54  ;;  %v685_v21 = vrot.slane %v684_v59, 1  ;;  %v997_v40 = vsel %vm941_vm7, %v665_v56, %v996_v16  ;;  %v457_v63 = vmax.f32 %v385_v46, %v393_v15 }
  0x92   : > { %v998_v2 = vsel %vm943_vm8, %v672_v57, %v997_v40  ;;  %v458_v19 = vmax.f32 %v386_v50, %v394_v58  ;;  %v459_v55 = vmax.f32 %v387_v38, %v395_v61  ;;  %v460_v5 = vmax.f32 %v388_v28, %v396_v52  ;;  %v1091_v57 = vld [vmem:[#allocation2 + $0x21] sm:$0xff]  ;;  %v3379_v40 = vld [vmem:[#allocation2 + $0xa] sm:$0xff] }
  0x93   : > { %v686_v10 = vmax.f32 %v684_v59, %v685_v21  ;;  %v999_v13 = vsel %vm945_vm9, %v679_v20, %v998_v2  ;;  %v461_v22 = vmax.f32 %v389_v29, %v397_v51  ;;  %v855_v6 = vsel %vm462_vm3, %v454_v53, -inf  ;;  %v1287_v21 = vld [vmem:[#allocation2 + $0x2] sm:$0xff] }
  0x94   : > { %v862_v0 = vsel %vm462_vm3, %v455_v18, -inf  ;;  %v869_v3 = vsel %vm462_vm3, %v456_v17, -inf  ;;  %v856_v4 = vrot.slane %v855_v6, 4  ;;  %v876_v36 = vsel %vm462_vm3, %v457_v63, -inf }
  0x95   : > { %v1000_v23 = vsel %vm947_vm10, %v686_v10, %v999_v13  ;;  %2501 = vmatmul.mubr.msk.bf16.vlgmr.msra.gmra.mrb[8].mxu1 %vm911_vm1, %v1081_v48  ;;  %v863_v24 = vrot.slane %v862_v0, 4  ;;  %v870_v25 = vrot.slane %v869_v3, 4  ;;  %v877_v37 = vrot.slane %v876_v36, 4 }
  0x96   : > { %1002 = vst.msk [vmem:[#allocation2 + $0x29] sm:$0xff] %vm950_vm11, %v1000_v23  ;;  %2543 = vmatpush3.bf16.msra.mxu1 %v1438_v42  ;;  %2504 = vmatprep.mubr.msk.bf16.mxu1 %vm2699_vm2, %v2698_v1  ;;  %v883_v45 = vsel %vm462_vm3, %v458_v19, -inf  ;;  %v890_v7 = vsel %vm462_vm3, %v459_v55, -inf  ;;  %v897_v43 = vsel %vm462_vm3, %v460_v5, -inf  ;;  %v857_v27 = vmax.f32 %v855_v6, %v856_v4  ;;  %v2388_v55 = vld [vmem:[%s3605_s1 + $0x10] sm:$0xf] }
  0x97   : > { %2586 = vmatprep.subr.bf16.mxu1 %v2698_v1  ;;  %v864_v34 = vmax.f32 %v862_v0, %v863_v24  ;;  %v871_v47 = vmax.f32 %v869_v3, %v870_v25  ;;  %v884_v8 = vrot.slane %v883_v45, 4  ;;  %v878_v26 = vmax.f32 %v876_v36, %v877_v37  ;;  %v1078_v37 = vld [vmem:[#allocation2 + $0x38] sm:$0xff] }
  0x98   : > { %v891_v30 = vrot.slane %v890_v7, 4  ;;  %v898_v49 = vrot.slane %v897_v43, 4  ;;  %v904_v39 = vsel %vm462_vm3, %v461_v22, -inf  ;;  %v858_v31 = vrot.slane %v857_v27, 2 }
  0x99   : > { %v865_v11 = vrot.slane %v864_v34, 2  ;;  %v872_v12 = vrot.slane %v871_v47, 2  ;;  %v885_v56 = vmax.f32 %v883_v45, %v884_v8  ;;  %v879_v44 = vrot.slane %v878_v26, 2 }
  0x9a   : > { %v892_v32 = vmax.f32 %v890_v7, %v891_v30  ;;  %v899_v46 = vmax.f32 %v897_v43, %v898_v49  ;;  %v905_v60 = vrot.slane %v904_v39, 4  ;;  %v859_v54 = vmax.f32 %v857_v27, %v858_v31  ;;  %v1079_v49 = vld [vmem:[#allocation2 + $0x40] sm:$0xff] }
  0x9b   : > { %v866_v59 = vmax.f32 %v864_v34, %v865_v11  ;;  %v873_v62 = vmax.f32 %v871_v47, %v872_v12  ;;  %v886_v14 = vrot.slane %v885_v56, 2  ;;  %v880_v38 = vmax.f32 %v878_v26, %v879_v44  ;;  %v1289_v34 = vld [vmem:[#allocation2 + $0x12] sm:$0xff]  ;;  %v1290_v47 = vld [vmem:[#allocation2 + $0x1a] sm:$0xff] }
  0x9c   : > { %v893_v28 = vrot.slane %v892_v32, 2  ;;  %v900_v29 = vrot.slane %v899_v46, 2  ;;  %v906_v33 = vmax.f32 %v904_v39, %v905_v60  ;;  %v860_v48 = vrot.slane %v859_v54, 1  ;;  %v1080_v39 = vld [vmem:[#allocation2 + $0x48] sm:$0xff]  ;;  %v1293_v44 = vld [vmem:[#allocation2 + $0x32] sm:$0xff] }
  0x9d   : > { %v1092_v9 = vld [vmem:[#allocation2 + $0x29] sm:$0xff]  ;;  %2505 = vmatmul.mubr.msk.bf16.gmra.mrb[12].mxu1 %vm911_vm1, %v1082_v41  ;;  %v867_v58 = vrot.slane %v866_v59, 1  ;;  %v874_v61 = vrot.slane %v873_v62, 1  ;;  %v881_v20 = vrot.slane %v880_v38, 1  ;;  %v887_v52 = vmax.f32 %v885_v56, %v886_v14 }
  0x9e   : > { %v1076_v50 = vld [vmem:[#allocation2 + $0x28] sm:$0xff]  ;;  %v1099_v16 = vpack.c.bf16 %v1092_v9, %v1091_v57  ;;  %2508 = vmatprep.mubr.msk.bf16.mxu1 %vm2699_vm2, %v2698_v1  ;;  %v861_v42 = vmax.f32 %v859_v54, %v860_v48  ;;  %v894_v51 = vmax.f32 %v892_v32, %v893_v28  ;;  %v901_v2 = vmax.f32 %v899_v46, %v900_v29  ;;  %v1077_v36 = vld [vmem:[#allocation2 + $0x30] sm:$0xff]  ;;  %v1294_v32 = vld [vmem:[#allocation2 + $0x3a] sm:$0xff] }
  0x9f   : > { %v1083_v15 = vpack.c.bf16 %v1076_v50, %v1075_v35  ;;  %v868_v41 = vmax.f32 %v866_v59, %v867_v58  ;;  %v875_v53 = vmax.f32 %v873_v62, %v874_v61  ;;  %v882_v18 = vmax.f32 %v880_v38, %v881_v20  ;;  %v1291_v31 = vld [vmem:[#allocation2 + $0x22] sm:$0xff]  ;;  %v1292_v11 = vld [vmem:[#allocation2 + $0x2a] sm:$0xff]  ;;  %v2394_v57 = vld [vmem:[%s3605_s1 + $0x14] sm:$0xf] }
  0xa0   : > { %2487 = vmatmul.mubr.msk.bf16.gmra.mrb[8].mxu0 %vm911_vm1, %v1099_v16  ;;  %v907_v10 = vrot.slane %v906_v33, 2  ;;  %v888_v13 = vrot.slane %v887_v52, 1  ;;  %v895_v17 = vrot.slane %v894_v51, 1  ;;  %v902_v63 = vrot.slane %v901_v2, 1  ;;  %v1295_v54 = vld [vmem:[#allocation2 + $0x42] sm:$0xff]  ;;  %v1523_v9 = vld [vmem:[#allocation2 + $0xb] sm:$0xff] }
  0xa1   : > { %2522 = vmatprep.mubr.msk.bf16.mxu0 %vm2699_vm2, %v2698_v1  ;;  %v1297_v19 = vpack.c.bf16 %v3379_v40, %v1287_v21  ;;  %v1062_v22 = vsel %vm935_vm4, %v868_v41, %v861_v42  ;;  %v1556_v25 = vsel %vm1119_vm0, %v2388_v55, 0  ;;  %v1084_v8 = vpack.c.bf16 %v1078_v37, %v1077_v36  ;;  %v1524_v50 = vld [vmem:[#allocation2 + $0x13] sm:$0xff]  ;;  %v1525_v16 = vld [vmem:[#allocation2 + $0x1b] sm:$0xff]  ;;  %v1526_v48 = vld [vmem:[#allocation2 + $0x23] sm:$0xff] }
  0xa2   : > { %v908_v5 = vmax.f32 %v906_v33, %v907_v10  ;;  %v889_v23 = vmax.f32 %v887_v52, %v888_v13  ;;  %v896_v6 = vmax.f32 %v894_v51, %v895_v17  ;;  %v903_v0 = vmax.f32 %v901_v2, %v902_v63  ;;  %v2400_v28 = vld [vmem:[%s3605_s1 + $0x18] sm:$0xf]  ;;  %v1527_v20 = vld [vmem:[#allocation2 + $0x2b] sm:$0xff]  ;;  %v2406_v2 = vld [vmem:[%s3605_s1 + $0x1c] sm:$0xf] }
  0xa3   : > { %v1063_v3 = vsel %vm937_vm5, %v875_v53, %v1062_v22  ;;  %v1298_v30 = vpack.c.bf16 %v1290_v47, %v1289_v34  ;;  %v1085_v12 = vpack.c.bf16 %v1080_v39, %v1079_v49  ;;  %v1299_v56 = vpack.c.bf16 %v1292_v11, %v1291_v31  ;;  %v1528_v21 = vld [vmem:[#allocation2 + $0x33] sm:$0xff]  ;;  %v1529_v41 = vld [vmem:[#allocation2 + $0x3b] sm:$0xff]  ;;  %v1530_v53 = vld [vmem:[#allocation2 + $0x43] sm:$0xff] }
  0xa4   : > { %v909_v4 = vrot.slane %v908_v5, 1  ;;  %v1064_v24 = vsel %vm939_vm6, %v882_v18, %v1063_v3  ;;  %v1415_v46 = vpack.c.bf16 %v1289_v34, %v3379_v40  ;;  %v1674_v60 = vsel %vm1119_vm0, %v2394_v57, 0  ;;  %v1641_v52 = vld [vmem:[#allocation2 + $0xc] sm:$0xff]  ;;  %v1642_v51 = vld [vmem:[#allocation2 + $0x14] sm:$0xff]  ;;  %v1643_v17 = vld [vmem:[#allocation2 + $0x1c] sm:$0xff] }
  0xa5   : > { %2509 = vmatmul.mubr.msk.bf16.gmra.mrb[16].mxu1 %vm911_vm1, %v1083_v15  ;;  %v1065_v45 = vsel %vm941_vm7, %v889_v23, %v1064_v24  ;;  %v1300_v35 = vpack.c.bf16 %v1294_v32, %v1293_v44  ;;  %v1416_v62 = vpack.c.bf16 %v1291_v31, %v1290_v47  ;;  %v1417_v38 = vpack.c.bf16 %v1293_v44, %v1292_v11  ;;  %v1644_v63 = vld [vmem:[#allocation2 + $0x24] sm:$0xff]  ;;  %v1645_v23 = vld [vmem:[#allocation2 + $0x2c] sm:$0xff]  ;;  %v2412_v3 = vld [vmem:[%s3605_s1 + $0x20] sm:$0xf] }
  0xa6   : > { %2512 = vmatprep.mubr.msk.bf16.mxu1 %vm2699_vm2, %v2698_v1  ;;  %v910_v7 = vmax.f32 %v908_v5, %v909_v4  ;;  %v1066_v43 = vsel %vm943_vm8, %v896_v6, %v1065_v45  ;;  %v1533_v29 = vpack.c.bf16 %v1524_v50, %v1523_v9  ;;  %v1792_v33 = vsel %vm1119_vm0, %v2400_v28, 0  ;;  %v1646_v6 = vld [vmem:[#allocation2 + $0x34] sm:$0xff]  ;;  %v1647_v37 = vld [vmem:[#allocation2 + $0x3c] sm:$0xff]  ;;  %v1648_v45 = vld [vmem:[#allocation2 + $0x44] sm:$0xff] }
  0xa7   : > { %v1067_v27 = vsel %vm945_vm9, %v903_v0, %v1066_v43  ;;  %v1418_v15 = vpack.c.bf16 %v1295_v54, %v1294_v32  ;;  %v1534_v58 = vpack.c.bf16 %v1526_v48, %v1525_v16  ;;  %v1535_v42 = vpack.c.bf16 %v1528_v21, %v1527_v20  ;;  %v2131_v43 = vld [vmem:[%s3607_s3 + $0x8] sm:$0xff]  ;;  %v2133_v47 = vld [vmem:[%s3607_s3 + $0x18] sm:$0xff]  ;;  %v2136_v39 = vld [vmem:[%s3607_s3 + $0x30] sm:$0xff] }
  0xa8   : > { %2523 = vmatmul.mubr.msk.bf16.vlgmr.msra.gmra.mrb[12].mxu0 %vm911_vm1, %v1297_v19  ;;  %v1068_v26 = vsel %vm947_vm10, %v910_v7, %v1067_v27  ;;  %v1651_v18 = vpack.c.bf16 %v1642_v51, %v1641_v52  ;;  %v1910_v10 = vsel %vm1119_vm0, %v2406_v2, 0  ;;  %v1536_v13 = vpack.c.bf16 %v1530_v53, %v1529_v41  ;;  %v2132_v7 = vld [vmem:[%s3607_s3 + $0x10] sm:$0xff]  ;;  %v2135_v49 = vld [vmem:[%s3607_s3 + $0x28] sm:$0xff]  ;;  %v1878_v44 = vld [vmem:[#allocation2 + $0x1d] sm:$0xff] }
  0xa9   : > { %2565 = vmatpush3.bf16.msra.mxu0 %v1556_v25  ;;  %2526 = vmatprep.mubr.msk.bf16.mxu0 %vm2699_vm2, %v2698_v1  ;;  %1070 = vst.msk [vmem:[#allocation2 + $0x51] sm:$0xff] %vm950_vm11, %v1068_v26  ;;  %v1652_v5 = vpack.c.bf16 %v1644_v63, %v1643_v17  ;;  %v1653_v0 = vpack.c.bf16 %v1646_v6, %v1645_v23  ;;  %v2700_v24 = vmov 0   ;;  %v2130_v25 = vld [vmem:[%s3607_s3] sm:$0xff]  ;;  %v2028_v36 = vsel %vm1119_vm0, %v2412_v3, 0  ;;  %v1877_v57 = vld [vmem:[#allocation2 + $0x15] sm:$0xff]  ;;  %v1880_v9 = vld [vmem:[#allocation2 + $0x2d] sm:$0xff] }
  0xaa   : > { %2608 = vmatprep.subr.bf16.mxu0 %v2698_v1  ;;  %v1769_v4 = vpack.c.bf16 %v1643_v17, %v1642_v51  ;;  %2688 = vset.pattern.permute.xlu0 %v2700_v24  ;;  %v1654_v27 = vpack.c.bf16 %v1648_v45, %v1647_v37  ;;  %v1770_v34 = vpack.c.bf16 %v1645_v23, %v1644_v63  ;;  %v1768_v50 = vld [vmem:[#allocation2 + $0x5c] sm:$0xff]  ;;  %v1997_v21 = vld [vmem:[#allocation2 + $0x26] sm:$0xff] }
  0xab   : > { %2142 = vperm.xlu0 %2688, %v2130_v25   ;;  %2689 = vset.pattern.permute.xlu1 %v2700_v24  ;;  %v1771_v11 = vpack.c.bf16 %v1647_v37, %v1646_v6  ;;  %v1995_v16 = vld [vmem:[#allocation2 + $0x16] sm:$0xff]  ;;  %v1996_v48 = vld [vmem:[#allocation2 + $0x1e] sm:$0xff] }
  0xac   : > { %2152 = vperm.xlu1 %2689, %v2132_v7   ;;  %v1886_v2 = vld [vmem:[#allocation2 + $0x5d] sm:$0xff] }
  0xad   : > { %2513 = vmatmul.mubr.msk.bf16.gmra.mrb[20].mxu1 %vm911_vm1, %v1084_v8  ;;  %v2134_v8 = vld [vmem:[%s3607_s3 + $0x20] sm:$0xff]  ;;  %v1999_v41 = vld [vmem:[#allocation2 + $0x36] sm:$0xff] }
  0xae   : > { %2516 = vmatprep.mubr.msk.bf16.mxu1 %vm2699_vm2, %v2698_v1  ;;  %v2000_v53 = vld [vmem:[#allocation2 + $0x3e] sm:$0xff] }
  0xaf   : > { %2147 = vperm.xlu0 %2688, %v2131_v43   ;;  %v2007_v17 = vpack.c.bf16 %v2000_v53, %v1999_v41  ;;  %v2004_v6 = vld [vmem:[#allocation2 + $0x5e] sm:$0xff] }
  0xb0   : > { %2527 = vmatmul.mubr.msk.bf16.gmra.mrb[16].mxu0 %vm911_vm1, %v1298_v30  ;;  %v1296_v59 = vld [vmem:[#allocation2 + $0x4a] sm:$0xff]  ;;  %v1414_v61 = vld [vmem:[#allocation2 + $0x52] sm:$0xff]  ;;  %2157 = vperm.xlu1 %2689, %v2133_v47  }
  0xb1   : > { %2530 = vmatprep.mubr.msk.bf16.mxu0 %vm2699_vm2, %v2698_v1  ;;  %v1301_v14 = vpack.c.bf16 %v1296_v59, %v1295_v54  ;;  %v1419_v40 = vpack.c.bf16 %v1414_v61, %v1296_v59  ;;  %v1531_v19 = vld [vmem:[#allocation2 + $0x4b] sm:$0xff]  ;;  %v1532_v55 = vld [vmem:[#allocation2 + $0x53] sm:$0xff] }
  0xb2   : > { %v1537_v22 = vpack.c.bf16 %v1532_v55, %v1531_v19  ;;  %v1649_v26 = vld [vmem:[#allocation2 + $0x4c] sm:$0xff]  ;;  %v1650_v30 = vld [vmem:[#allocation2 + $0x54] sm:$0xff] }
  0xb3   : > { %2162 = vperm.xlu0 %2688, %v2134_v8   ;;  %v1655_v31 = vpack.c.bf16 %v1650_v30, %v1649_v26  ;;  %v1773_v28 = vpack.c.bf16 %v1768_v50, %v1650_v30  ;;  %v1883_v61 = vld [vmem:[#allocation2 + $0x45] sm:$0xff]  ;;  %v1884_v20 = vld [vmem:[#allocation2 + $0x4d] sm:$0xff]  ;;  %v1885_v51 = vld [vmem:[#allocation2 + $0x55] sm:$0xff] }
  0xb4   : > { %2167 = vperm.xlu1 %2689, %v2135_v49   ;;  %v2001_v55 = vld [vmem:[#allocation2 + $0x46] sm:$0xff]  ;;  %v2003_v23 = vld [vmem:[#allocation2 + $0x56] sm:$0xff] }
  0xb5   : > { %2517 = vmatmul.mubr.msk.bf16.gmra.mrb[24].mxu1 %vm911_vm1, %v1085_v12  ;;  %v2137_v12 = vld [vmem:[%s3607_s3 + $0x38] sm:$0xff] }
  0xb6   : > { %2544 = vmatprep.mubr.msk.bf16.mxu1 %vm2699_vm2, %v2698_v1 }
  0xb7   : > { %2172 = vperm.xlu0 %2688, %v2136_v39  }
  0xb8   : > { %2531 = vmatmul.mubr.msk.bf16.gmra.mrb[20].mxu0 %vm911_vm1, %v1299_v56  ;;  %v2138_v56 = vld [vmem:[%s3607_s3 + $0x40] sm:$0xff]  ;;  %2177 = vperm.xlu1 %2689, %v2137_v12  }
  0xb9   : > { %2534 = vmatprep.mubr.msk.bf16.mxu0 %vm2699_vm2, %v2698_v1 }
  0xbb   : > { %2182 = vperm.xlu0 %2688, %v2138_v56  }
  0xbd   : > { %2545 = vmatmul.mubr.msk.bf16.vlgmr.msra.gmra.mrb[28].mxu1 %vm911_vm1, %v1415_v46  ;;  %v2139_v46 = vld [vmem:[%s3607_s3 + $0x48] sm:$0xff] }
  0xbe   : > { %2587 = vmatpush3.bf16.msra.mxu1 %v1674_v60  ;;  %2548 = vmatprep.mubr.msk.bf16.mxu1 %vm2699_vm2, %v2698_v1 }
  0xbf   : > { %2630 = vmatprep.subr.bf16.mxu1 %v2698_v1  ;;  %2187 = vperm.xlu1 %2689, %v2139_v46  }
  0xc0   : > { %2535 = vmatmul.mubr.msk.bf16.gmra.mrb[24].mxu0 %vm911_vm1, %v1300_v35  ;;  %v1887_v35 = vpack.c.bf16 %v1878_v44, %v1877_v57 }
  0xc1   : > { %2538 = vmatprep.mubr.msk.bf16.mxu0 %vm2699_vm2, %v2698_v1 }
  0xc5   : > { %2549 = vmatmul.mubr.msk.bf16.gmra.mrb[32].mxu1 %vm911_vm1, %v1416_v62  ;;  %v1772_v62 = vpack.c.bf16 %v1649_v26, %v1648_v45 }
  0xc6   : > { %2552 = vmatprep.mubr.msk.bf16.mxu1 %vm2699_vm2, %v2698_v1 }
  0xc8   : > { %2539 = vmatmul.mubr.msk.bf16.gmra.mrb[28].mxu0 %vm911_vm1, %v1301_v14  ;;  %v1879_v14 = vld [vmem:[#allocation2 + $0x25] sm:$0xff] }
  0xc9   : > { %2566 = vmatprep.mubr.msk.bf16.mxu0 %vm2699_vm2, %v2698_v1 }
  0xcd   : > { %2553 = vmatmul.mubr.msk.bf16.gmra.mrb[36].mxu1 %vm911_vm1, %v1417_v38  ;;  %v1888_v38 = vpack.c.bf16 %v1880_v9, %v1879_v14 }
  0xce   : > { %2556 = vmatprep.mubr.msk.bf16.mxu1 %vm2699_vm2, %v2698_v1 }
  0xd0   : > { %2567 = vmatmul.mubr.msk.bf16.vlgmr.msra.gmra.mrb[32].mxu0 %vm911_vm1, %v1533_v29  ;;  %v1881_v29 = vld [vmem:[#allocation2 + $0x35] sm:$0xff] }
  0xd1   : > { %2609 = vmatpush3.bf16.msra.mxu0 %v1792_v33  ;;  %2570 = vmatprep.mubr.msk.bf16.mxu0 %vm2699_vm2, %v2698_v1  ;;  %v1882_v33 = vld [vmem:[#allocation2 + $0x3d] sm:$0xff] }
  0xd2   : > { %2652 = vmatprep.subr.bf16.mxu0 %v2698_v1 }
  0xd5   : > { %2557 = vmatmul.mubr.msk.bf16.gmra.mrb[40].mxu1 %vm911_vm1, %v1418_v15  ;;  %v1889_v15 = vpack.c.bf16 %v1882_v33, %v1881_v29 }
  0xd6   : > { %2560 = vmatprep.mubr.msk.bf16.mxu1 %vm2699_vm2, %v2698_v1 }
  0xd8   : > { %2571 = vmatmul.mubr.msk.bf16.gmra.mrb[36].mxu0 %vm911_vm1, %v1534_v58  ;;  %v2005_v58 = vpack.c.bf16 %v1996_v48, %v1995_v16 }
  0xd9   : > { %2574 = vmatprep.mubr.msk.bf16.mxu0 %vm2699_vm2, %v2698_v1 }
  0xdd   : > { %2561 = vmatmul.mubr.msk.bf16.gmra.mrb[44].mxu1 %vm911_vm1, %v1419_v40  ;;  %v1998_v40 = vld [vmem:[#allocation2 + $0x2e] sm:$0xff] }
  0xde   : > { %2588 = vmatprep.mubr.msk.bf16.mxu1 %vm2699_vm2, %v2698_v1  ;;  %v2006_v52 = vpack.c.bf16 %v1998_v40, %v1997_v21 }
  0xe0   : > { %2575 = vmatmul.mubr.msk.bf16.gmra.mrb[40].mxu0 %vm911_vm1, %v1535_v42  ;;  %v1890_v42 = vpack.c.bf16 %v1884_v20, %v1883_v61 }
  0xe1   : > { %2578 = vmatprep.mubr.msk.bf16.mxu0 %vm2699_vm2, %v2698_v1 }
  0xe5   : > { %2589 = vmatmul.mubr.msk.bf16.vlgmr.msra.gmra.mrb[48].mxu1 %vm911_vm1, %v1651_v18  ;;  %v1891_v18 = vpack.c.bf16 %v1886_v2, %v1885_v51 }
  0xe6   : > { %2631 = vmatpush3.bf16.msra.mxu1 %v1910_v10  ;;  %2592 = vmatprep.mubr.msk.bf16.mxu1 %vm2699_vm2, %v2698_v1 }
  0xe8   : > { %2579 = vmatmul.mubr.msk.bf16.gmra.mrb[44].mxu0 %vm911_vm1, %v1536_v13 }
  0xe9   : > { %2582 = vmatprep.mubr.msk.bf16.mxu0 %vm2699_vm2, %v2698_v1 }
  0xed   : > { %2593 = vmatmul.mubr.msk.bf16.gmra.mrb[52].mxu1 %vm911_vm1, %v1652_v5  ;;  %v2002_v5 = vld [vmem:[#allocation2 + $0x4e] sm:$0xff] }
  0xee   : > { %2596 = vmatprep.mubr.msk.bf16.mxu1 %vm2699_vm2, %v2698_v1 }
  0xf0   : > { %2583 = vmatmul.mubr.msk.bf16.gmra.mrb[48].mxu0 %vm911_vm1, %v1537_v22  ;;  %v2008_v22 = vpack.c.bf16 %v2002_v5, %v2001_v55 }
  0xf1   : > { %2610 = vmatprep.mubr.msk.bf16.mxu0 %vm2699_vm2, %v2698_v1 }
  0xf5   : > { %2597 = vmatmul.mubr.msk.bf16.gmra.mrb[56].mxu1 %vm911_vm1, %v1653_v0  ;;  %v2009_v0 = vpack.c.bf16 %v2004_v6, %v2003_v23 }
  0xf6   : > { %2600 = vmatprep.mubr.msk.bf16.mxu1 %vm2699_vm2, %v2698_v1 }
  0xf8   : > { %2611 = vmatmul.mubr.msk.bf16.vlgmr.msra.gmra.mrb[52].mxu0 %vm911_vm1, %v1769_v4 }
  0xf9   : > { %2653 = vmatpush3.bf16.msra.mxu0 %v2028_v36  ;;  %2614 = vmatprep.mubr.msk.bf16.mxu0 %vm2699_vm2, %v2698_v1 }
  0xfd   : > { %2601 = vmatmul.mubr.msk.bf16.gmra.mrb[60].mxu1 %vm911_vm1, %v1654_v27 }
  0xfe   : > { %2604 = vmatprep.mubr.msk.bf16.mxu1 %vm2699_vm2, %v2698_v1 }
 0x100   : > { %2615 = vmatmul.mubr.msk.bf16.gmra.mrb[56].mxu0 %vm911_vm1, %v1770_v34 }
 0x101   : > { %2618 = vmatprep.mubr.msk.bf16.mxu0 %vm2699_vm2, %v2698_v1 }
 0x105   : > { %2605 = vmatmul.mubr.msk.bf16.gmra.mrb[64].mxu1 %vm911_vm1, %v1655_v31 }
 0x106   : > { %2632 = vmatprep.mubr.msk.bf16.mxu1 %vm2699_vm2, %v2698_v1 }
 0x107   : > { %v3518_v32 = vpop.f32.mrb[0].mxu0 }
 0x108   : > { %2619 = vmatmul.mubr.msk.bf16.gmra.mrb[60].mxu0 %vm911_vm1, %v1771_v11  ;;  %v2480_v60 = vpop.f32.mrb[1].mxu0 }
 0x109   : > { %2622 = vmatprep.mubr.msk.bf16.mxu0 %vm2699_vm2, %v2698_v1  ;;  %v3526_v54 = vpop.f32.mrb[2].mxu0 }
 0x10a   : > { %v2481_v59 = vpop.f32.mrb[3].mxu0 }
 0x10d   : > { %2633 = vmatmul.mubr.msk.bf16.vlgmr.msra.gmra.mrb[68].mxu1 %vm911_vm1, %v1887_v35 }
 0x10e   : > { %2636 = vmatprep.mubr.msk.bf16.mxu1 %vm2699_vm2, %v2698_v1 }
 0x110   : > { %2623 = vmatmul.mubr.msk.bf16.gmra.mrb[64].mxu0 %vm911_vm1, %v1772_v62 }
 0x111   : > { %2626 = vmatprep.mubr.msk.bf16.mxu0 %vm2699_vm2, %v2698_v1 }
 0x115   : > { %2637 = vmatmul.mubr.msk.bf16.gmra.mrb[72].mxu1 %vm911_vm1, %v1888_v38 }
 0x116   : > { %2640 = vmatprep.mubr.msk.bf16.mxu1 %vm2699_vm2, %v2698_v1 }
 0x118   : > { %2627 = vmatmul.mubr.msk.bf16.gmra.mrb[68].mxu0 %vm911_vm1, %v1773_v28 }
 0x119   : > { %2654 = vmatprep.mubr.msk.bf16.mxu0 %vm2699_vm2, %v2698_v1 }
 0x11d   : > { %2641 = vmatmul.mubr.msk.bf16.gmra.mrb[76].mxu1 %vm911_vm1, %v1889_v15 }
 0x11e   : > { %2644 = vmatprep.mubr.msk.bf16.mxu1 %vm2699_vm2, %v2698_v1 }
 0x120   : > { %2655 = vmatmul.mubr.msk.bf16.vlgmr.msra.gmra.mrb[72].mxu0 %vm911_vm1, %v2005_v58 }
 0x121   : > { %2658 = vmatprep.mubr.msk.bf16.mxu0 %vm2699_vm2, %v2698_v1 }
 0x125   : > { %2645 = vmatmul.mubr.msk.bf16.gmra.mrb[80].mxu1 %vm911_vm1, %v1890_v42 }
 0x126   : > { %2648 = vmatprep.mubr.msk.bf16.mxu1 %vm2699_vm2, %v2698_v1 }
 0x128   : > { %2659 = vmatmul.mubr.msk.bf16.gmra.mrb[76].mxu0 %vm911_vm1, %v2006_v52 }
 0x129   : > { %2662 = vmatprep.mubr.msk.bf16.mxu0 %vm2699_vm2, %v2698_v1 }
 0x12a   : > { %v1181_v10 = vpop.f32.mrb[0].mxu1 }
 0x12b   : > { %v2492_v13 = vpop.f32.mrb[1].mxu1 }
 0x12c   : > { %v1184_v63 = vpop.f32.mrb[2].mxu1 }
 0x12d   : > { %2649 = vmatmul.mubr.msk.bf16.gmra.mrb[84].mxu1 %vm911_vm1, %v1891_v18  ;;  %v2493_v19 = vpop.f32.mrb[3].mxu1 }
 0x130   : > { %2663 = vmatmul.mubr.msk.bf16.gmra.mrb[80].mxu0 %vm911_vm1, %v2007_v17 }
 0x131   : > { %2666 = vmatprep.mubr.msk.bf16.mxu0 %vm2699_vm2, %v2698_v1 }
 0x138   : > { %2667 = vmatmul.mubr.msk.bf16.gmra.mrb[84].mxu0 %vm911_vm1, %v2008_v22 }
 0x139   : > { %2670 = vmatprep.mubr.msk.bf16.mxu0 %vm2699_vm2, %v2698_v1 }
 0x140   : > { %2671 = vmatmul.mubr.msk.bf16.gmra.mrb[88].mxu0 %vm911_vm1, %v2009_v0 }
 0x14d   : > { %v1165_v3 = vpop.f32.mrb[4].mxu0 }
 0x14e   : > { %v2484_v4 = vpop.f32.mrb[5].mxu0 }
 0x14f   : > { %v1168_v24 = vpop.f32.mrb[6].mxu0 }
 0x150   : > { %v2485_v25 = vpop.f32.mrb[7].mxu0 }
 0x160   : > { %v1189_v36 = vpop.f32.mrb[4].mxu1 }
 0x161   : > { %v2496_v37 = vpop.f32.mrb[5].mxu1 }
 0x162   : > { %v1192_v45 = vpop.f32.mrb[6].mxu1 }
 0x163   : > { %v2497_v7 = vpop.f32.mrb[7].mxu1 }
 0x168   : > { %v1248_v43 = vpop.f32.mrb[8].mxu1 }
 0x169   : > { %v1249_v27 = vadd.f32 %v1248_v43, %v3518_v32  ;;  %v2502_v34 = vpop.f32.mrb[9].mxu1 }
 0x16a   : > { %v1251_v47 = vpop.f32.mrb[10].mxu1 }
 0x16b   : > { %v1252_v1 = vadd.f32 %v1251_v47, %v3526_v54  ;;  %v2503_v8 = vpop.f32.mrb[11].mxu1 }
 0x170   : > { %v1256_v26 = vpop.f32.mrb[12].mxu1 }
 0x171   : > { %v1257_v30 = vadd.f32 %v1256_v26, %v1165_v3  ;;  %v2506_v49 = vpop.f32.mrb[13].mxu1 }
 0x172   : > { %v1259_v39 = vpop.f32.mrb[14].mxu1 }
 0x173   : > { %v1173_v31 = vpop.f32.mrb[8].mxu0  ;;  %v1260_v11 = vadd.f32 %v1259_v39, %v1168_v24  ;;  %v2507_v12 = vpop.f32.mrb[15].mxu1 }
 0x174   : > { %v2488_v56 = vpop.f32.mrb[9].mxu0 }
 0x175   : > { %v1176_v57 = vpop.f32.mrb[10].mxu0 }
 0x176   : > { %v2489_v44 = vpop.f32.mrb[11].mxu0 }
 0x178   : > { %v1264_v46 = vpop.f32.mrb[16].mxu1 }
 0x179   : > { %v1265_v60 = vadd.f32 %v1264_v46, %v1173_v31  ;;  %v2510_v35 = vpop.f32.mrb[17].mxu1 }
 0x17a   : > { %v1267_v59 = vpop.f32.mrb[18].mxu1 }
 0x17b   : > { %v1356_v32 = vpop.f32.mrb[12].mxu0  ;;  %v1268_v62 = vadd.f32 %v1267_v59, %v1176_v57  ;;  %v2511_v14 = vpop.f32.mrb[19].mxu1 }
 0x17c   : > { %v1395_v9 = vadd.f32 %v1356_v32, %v1249_v27  ;;  %v2524_v54 = vpop.f32.mrb[13].mxu0 }
 0x17d   : > { %v1359_v50 = vpop.f32.mrb[14].mxu0 }
 0x17e   : > { %v1396_v38 = vadd.f32 %v1359_v50, %v1252_v1  ;;  %v2525_v28 = vpop.f32.mrb[15].mxu0 }
 0x180   : > { %v1272_v29 = vpop.f32.mrb[20].mxu1 }
 0x181   : > { %v1273_v33 = vadd.f32 %v1272_v29, %v1181_v10  ;;  %v2514_v16 = vpop.f32.mrb[21].mxu1 }
 0x182   : > { %v1275_v48 = vpop.f32.mrb[22].mxu1 }
 0x183   : > { %v1364_v15 = vpop.f32.mrb[16].mxu0  ;;  %v1276_v58 = vadd.f32 %v1275_v48, %v1184_v63  ;;  %v2515_v61 = vpop.f32.mrb[23].mxu1 }
 0x184   : > { %v1397_v20 = vadd.f32 %v1364_v15, %v1257_v30  ;;  %v2528_v21 = vpop.f32.mrb[17].mxu0 }
 0x185   : > { %v1367_v40 = vpop.f32.mrb[18].mxu0 }
 0x186   : > { %v1398_v42 = vadd.f32 %v1367_v40, %v1260_v11  ;;  %v2529_v52 = vpop.f32.mrb[19].mxu0 }
 0x188   : > { %v1280_v51 = vpop.f32.mrb[24].mxu1 }
 0x189   : > { %v1281_v2 = vadd.f32 %v1280_v51, %v1189_v36  ;;  %v2518_v41 = vpop.f32.mrb[25].mxu1 }
 0x18a   : > { %v1283_v53 = vpop.f32.mrb[26].mxu1 }
 0x18b   : > { %v1372_v18 = vpop.f32.mrb[20].mxu0  ;;  %v1284_v13 = vadd.f32 %v1283_v53, %v1192_v45  ;;  %v2519_v17 = vpop.f32.mrb[27].mxu1 }
 0x18c   : > { %v1399_v19 = vadd.f32 %v1372_v18, %v1265_v60  ;;  %v2532_v55 = vpop.f32.mrb[21].mxu0 }
 0x18d   : > { %v1375_v10 = vpop.f32.mrb[22].mxu0 }
 0x18e   : > { %v1400_v5 = vadd.f32 %v1375_v10, %v1268_v62  ;;  %v2533_v22 = vpop.f32.mrb[23].mxu0 }
 0x190   : > { %v1474_v23 = vpop.f32.mrb[28].mxu1 }
 0x191   : > { %v1513_v63 = vadd.f32 %v1474_v23, %v1395_v9  ;;  %v2546_v6 = vpop.f32.mrb[29].mxu1 }
 0x192   : > { %v1477_v0 = vpop.f32.mrb[30].mxu1 }
 0x193   : > { %v1380_v3 = vpop.f32.mrb[24].mxu0  ;;  %v1514_v4 = vadd.f32 %v1477_v0, %v1396_v38  ;;  %v2547_v24 = vpop.f32.mrb[31].mxu1 }
 0x194   : > { %v1401_v25 = vadd.f32 %v1380_v3, %v1273_v33  ;;  %v2536_v37 = vpop.f32.mrb[25].mxu0 }
 0x195   : > { %v1383_v36 = vpop.f32.mrb[26].mxu0 }
 0x196   : > { %v1402_v7 = vadd.f32 %v1383_v36, %v1276_v58  ;;  %v2537_v43 = vpop.f32.mrb[27].mxu0 }
 0x198   : > { %v1482_v27 = vpop.f32.mrb[32].mxu1 }
 0x199   : > { %v1515_v45 = vadd.f32 %v1482_v27, %v1397_v20  ;;  %v2550_v34 = vpop.f32.mrb[33].mxu1 }
 0x19a   : > { %v1485_v47 = vpop.f32.mrb[34].mxu1 }
 0x19b   : > { %v1388_v1 = vpop.f32.mrb[28].mxu0  ;;  %v1516_v8 = vadd.f32 %v1485_v47, %v1398_v42  ;;  %v2551_v26 = vpop.f32.mrb[35].mxu1 }
 0x19c   : > { %v1403_v30 = vadd.f32 %v1388_v1, %v1281_v2  ;;  %v2540_v49 = vpop.f32.mrb[29].mxu0 }
 0x19d   : > { %v1391_v39 = vpop.f32.mrb[30].mxu0 }
 0x19e   : > { %v1404_v31 = vadd.f32 %v1391_v39, %v1284_v13  ;;  %v2541_v11 = vpop.f32.mrb[31].mxu0 }
 0x1a0   : > { %v1490_v12 = vpop.f32.mrb[36].mxu1 }
 0x1a1   : > { %v1517_v56 = vadd.f32 %v1490_v12, %v1399_v19  ;;  %v2554_v57 = vpop.f32.mrb[37].mxu1 }
 0x1a2   : > { %v1493_v44 = vpop.f32.mrb[38].mxu1 }
 0x1a3   : > { %v1592_v46 = vpop.f32.mrb[32].mxu0  ;;  %v1518_v60 = vadd.f32 %v1493_v44, %v1400_v5  ;;  %v2555_v35 = vpop.f32.mrb[39].mxu1 }
 0x1a4   : > { %v1631_v59 = vadd.f32 %v1592_v46, %v1513_v63  ;;  %v2568_v32 = vpop.f32.mrb[33].mxu0 }
 0x1a5   : > { %v1595_v62 = vpop.f32.mrb[34].mxu0 }
 0x1a6   : > { %v1632_v14 = vadd.f32 %v1595_v62, %v1514_v4  ;;  %v2569_v9 = vpop.f32.mrb[35].mxu0 }
 0x1a8   : > { %v1498_v54 = vpop.f32.mrb[40].mxu1 }
 0x1a9   : > { %v1519_v50 = vadd.f32 %v1498_v54, %v1401_v25  ;;  %v2558_v38 = vpop.f32.mrb[41].mxu1 }
 0x1aa   : > { %v1501_v28 = vpop.f32.mrb[42].mxu1 }
 0x1ab   : > { %v1600_v29 = vpop.f32.mrb[36].mxu0  ;;  %v1520_v33 = vadd.f32 %v1501_v28, %v1402_v7  ;;  %v2559_v16 = vpop.f32.mrb[43].mxu1 }
 0x1ac   : > { %v1633_v48 = vadd.f32 %v1600_v29, %v1515_v45  ;;  %v2572_v15 = vpop.f32.mrb[37].mxu0 }
 0x1ad   : > { %v1603_v58 = vpop.f32.mrb[38].mxu0 }
 0x1ae   : > { %v1634_v61 = vadd.f32 %v1603_v58, %v1516_v8  ;;  %v2573_v20 = vpop.f32.mrb[39].mxu0 }
 0x1b0   : > { %v1506_v21 = vpop.f32.mrb[44].mxu1 }
 0x1b1   : > { %v1521_v40 = vadd.f32 %v1506_v21, %v1403_v30  ;;  %v2562_v42 = vpop.f32.mrb[45].mxu1 }
 0x1b2   : > { %v1509_v52 = vpop.f32.mrb[46].mxu1 }
 0x1b3   : > { %v1608_v51 = vpop.f32.mrb[40].mxu0  ;;  %v1522_v2 = vadd.f32 %v1509_v52, %v1404_v31  ;;  %v2563_v41 = vpop.f32.mrb[47].mxu1 }
 0x1b4   : > { %v1635_v53 = vadd.f32 %v1608_v51, %v1517_v56  ;;  %v2576_v18 = vpop.f32.mrb[41].mxu0 }
 0x1b5   : > { %v1611_v13 = vpop.f32.mrb[42].mxu0 }
 0x1b6   : > { %v1636_v17 = vadd.f32 %v1611_v13, %v1518_v60  ;;  %v2577_v19 = vpop.f32.mrb[43].mxu0 }
 0x1b8   : > { %v1710_v55 = vpop.f32.mrb[48].mxu1 }
 0x1b9   : > { %v1749_v10 = vadd.f32 %v1710_v55, %v1631_v59  ;;  %v2590_v5 = vpop.f32.mrb[49].mxu1 }
 0x1ba   : > { %v1713_v22 = vpop.f32.mrb[50].mxu1 }
 0x1bb   : > { %v1616_v23 = vpop.f32.mrb[44].mxu0  ;;  %v1750_v63 = vadd.f32 %v1713_v22, %v1632_v14  ;;  %v2591_v6 = vpop.f32.mrb[51].mxu1 }
 0x1bc   : > { %v1637_v0 = vadd.f32 %v1616_v23, %v1519_v50  ;;  %v2580_v3 = vpop.f32.mrb[45].mxu0 }
 0x1bd   : > { %v1619_v4 = vpop.f32.mrb[46].mxu0 }
 0x1be   : > { %v1638_v24 = vadd.f32 %v1619_v4, %v1520_v33  ;;  %v2581_v25 = vpop.f32.mrb[47].mxu0 }
 0x1c0   : > { %v1718_v37 = vpop.f32.mrb[52].mxu1 }
 0x1c1   : > { %v1751_v36 = vadd.f32 %v1718_v37, %v1633_v48  ;;  %v2594_v7 = vpop.f32.mrb[53].mxu1 }
 0x1c2   : > { %v1721_v43 = vpop.f32.mrb[54].mxu1 }
 0x1c3   : > { %v1624_v27 = vpop.f32.mrb[48].mxu0  ;;  %v1752_v45 = vadd.f32 %v1721_v43, %v1634_v61  ;;  %v2595_v34 = vpop.f32.mrb[55].mxu1 }
 0x1c4   : > { %v1639_v47 = vadd.f32 %v1624_v27, %v1521_v40  ;;  %v2584_v1 = vpop.f32.mrb[49].mxu0 }
 0x1c5   : > { %v1627_v8 = vpop.f32.mrb[50].mxu0 }
 0x1c6   : > { %v1640_v26 = vadd.f32 %v1627_v8, %v1522_v2  ;;  %v2585_v30 = vpop.f32.mrb[51].mxu0  ;;  %v2143_v8 = vpop.permute.xlu0 %2142 }
 0x1c8   : > { %v1726_v49 = vpop.f32.mrb[56].mxu1 }
 0x1c9   : > { %v1753_v39 = vadd.f32 %v1726_v49, %v1635_v53  ;;  %v2598_v31 = vpop.f32.mrb[57].mxu1 }
 0x1ca   : > { %v1729_v11 = vpop.f32.mrb[58].mxu1  ;;  %v3566_v31 = vld [vmem:[%s3606_s2] ss:$0 sm:$0xff] }
 0x1cb   : > { %v1828_v12 = vpop.f32.mrb[52].mxu0  ;;  %v1754_v56 = vadd.f32 %v1729_v11, %v1636_v17  ;;  %v2599_v57 = vpop.f32.mrb[59].mxu1 }
 0x1cc   : > { %v1867_v44 = vadd.f32 %v1828_v12, %v1749_v10  ;;  %v2612_v46 = vpop.f32.mrb[53].mxu0 }
 0x1cd   : > { %v1831_v60 = vpop.f32.mrb[54].mxu0 }
 0x1ce   : > { %v1868_v35 = vadd.f32 %v1831_v60, %v1750_v63  ;;  %v2613_v59 = vpop.f32.mrb[55].mxu0 }
 0x1cf   : > { %v2148_v59 = vpop.permute.xlu0 %2147 }
 0x1d0   : > { %v1734_v32 = vpop.f32.mrb[60].mxu1 }
 0x1d1   : > { %v1755_v62 = vadd.f32 %v1734_v32, %v1637_v0  ;;  %v2602_v14 = vpop.f32.mrb[61].mxu1 }
 0x1d2   : > { %v1737_v9 = vpop.f32.mrb[62].mxu1 }
 0x1d3   : > { %v1836_v54 = vpop.f32.mrb[56].mxu0  ;;  %v1756_v50 = vadd.f32 %v1737_v9, %v1638_v24  ;;  %v2603_v38 = vpop.f32.mrb[63].mxu1 }
 0x1d4   : > { %v1869_v28 = vadd.f32 %v1836_v54, %v1751_v36  ;;  %v2616_v29 = vpop.f32.mrb[57].mxu0 }
 0x1d5   : > { %v1839_v33 = vpop.f32.mrb[58].mxu0 }
 0x1d6   : > { %v1870_v16 = vadd.f32 %v1839_v33, %v1752_v45  ;;  %v2617_v48 = vpop.f32.mrb[59].mxu0 }
 0x1d8   : > { %v1742_v15 = vpop.f32.mrb[64].mxu1 }
 0x1d9   : > { %v1757_v58 = vadd.f32 %v1742_v15, %v1639_v47  ;;  %v2606_v61 = vpop.f32.mrb[65].mxu1 }
 0x1da   : > { %v1745_v20 = vpop.f32.mrb[66].mxu1 }
 0x1db   : > { %v1844_v21 = vpop.f32.mrb[60].mxu0  ;;  %v1758_v40 = vadd.f32 %v1745_v20, %v1640_v26  ;;  %v2607_v42 = vpop.f32.mrb[67].mxu1 }
 0x1dc   : > { %v1871_v52 = vadd.f32 %v1844_v21, %v1753_v39  ;;  %v2620_v51 = vpop.f32.mrb[61].mxu0 }
 0x1dd   : > { %v1847_v2 = vpop.f32.mrb[62].mxu0 }
 0x1de   : > { %v1872_v41 = vadd.f32 %v1847_v2, %v1754_v56  ;;  %v2621_v53 = vpop.f32.mrb[63].mxu0 }
 0x1e0   : > { %v1946_v18 = vpop.f32.mrb[68].mxu1 }
 0x1e1   : > { %v1985_v13 = vadd.f32 %v1946_v18, %v1867_v44  ;;  %v2634_v17 = vpop.f32.mrb[69].mxu1 }
 0x1e2   : > { %v1949_v19 = vpop.f32.mrb[70].mxu1 }
 0x1e3   : > { %v1852_v55 = vpop.f32.mrb[64].mxu0  ;;  %v1986_v10 = vadd.f32 %v1949_v19, %v1868_v35  ;;  %v2635_v5 = vpop.f32.mrb[71].mxu1 }
 0x1e4   : > { %v1873_v22 = vadd.f32 %v1852_v55, %v1755_v62  ;;  %v2624_v23 = vpop.f32.mrb[65].mxu0 }
 0x1e5   : > { %v1855_v63 = vpop.f32.mrb[66].mxu0 }
 0x1e6   : > { %v1874_v6 = vadd.f32 %v1855_v63, %v1756_v50  ;;  %v2625_v0 = vpop.f32.mrb[67].mxu0  ;;  %v2153_v50 = vpop.permute.xlu1 %2152 }
 0x1e8   : > { %v1954_v3 = vpop.f32.mrb[72].mxu1 }
 0x1e9   : > { %v1987_v4 = vadd.f32 %v1954_v3, %v1869_v28  ;;  %v2638_v24 = vpop.f32.mrb[73].mxu1 }
 0x1ea   : > { %v1957_v25 = vpop.f32.mrb[74].mxu1  ;;  %v2158_v18 = vpop.permute.xlu1 %2157 }
 0x1eb   : > { %v1860_v37 = vpop.f32.mrb[68].mxu0  ;;  %v1988_v36 = vadd.f32 %v1957_v25, %v1870_v16  ;;  %v2639_v7 = vpop.f32.mrb[75].mxu1 }
 0x1ec   : > { %v1875_v43 = vadd.f32 %v1860_v37, %v1757_v58  ;;  %v2628_v27 = vpop.f32.mrb[69].mxu0 }
 0x1ed   : > { %v1863_v45 = vpop.f32.mrb[70].mxu0  ;;  %v2163_v27 = vpop.permute.xlu0 %2162 }
 0x1ee   : > { %v1876_v34 = vadd.f32 %v1863_v45, %v1758_v40  ;;  %v2629_v47 = vpop.f32.mrb[71].mxu0 }
 0x1f0   : > { %v1962_v1 = vpop.f32.mrb[76].mxu1 }
 0x1f1   : > { %v1989_v26 = vadd.f32 %v1962_v1, %v1871_v52  ;;  %v2642_v30 = vpop.f32.mrb[77].mxu1 }
 0x1f2   : > { %v1965_v49 = vpop.f32.mrb[78].mxu1 }
 0x1f3   : > { %v2064_v39 = vpop.f32.mrb[72].mxu0  ;;  %v1990_v11 = vadd.f32 %v1965_v49, %v1872_v41  ;;  %v2643_v12 = vpop.f32.mrb[79].mxu1 }
 0x1f4   : > { %v2103_v56 = vadd.f32 %v2064_v39, %v1985_v13  ;;  %v2656_v57 = vpop.f32.mrb[73].mxu0 }
 0x1f5   : > { %v2067_v44 = vpop.f32.mrb[74].mxu0 }
 0x1f6   : > { %v2120_v46 = vadd.f32 %v3566_v31, %v2103_v56  ;;  %v2104_v60 = vadd.f32 %v2067_v44, %v1986_v10  ;;  %v2657_v35 = vpop.f32.mrb[75].mxu0 }
 0x1f8   : > { %v2190_v32 = vmul.f32 %v2143_v8, %v2120_v46  ;;  %v2121_v62 = vadd.f32 %v3566_v31, %v2104_v60  ;;  %v1970_v14 = vpop.f32.mrb[80].mxu1 }
 0x1f9   : > { %v1991_v9 = vadd.f32 %v1970_v14, %v1873_v22  ;;  %v2646_v54 = vpop.f32.mrb[81].mxu1 }
 0x1fa   : > { %2242 = vst [vmem:[%s3572_s27] sm:$0xff] %v2190_v32  ;;  %v2191_v38 = vmul.f32 %v2148_v59, %v2121_v62  ;;  %v1973_v28 = vpop.f32.mrb[82].mxu1  ;;  %v2216_v48 = vmul.f32 %v2190_v32, %v2190_v32  ;;  %v2173_v59 = vpop.permute.xlu0 %2172 }
 0x1fb   : > { %v2072_v29 = vpop.f32.mrb[76].mxu0  ;;  %v1992_v33 = vadd.f32 %v1973_v28, %v1874_v6  ;;  %v2647_v16 = vpop.f32.mrb[83].mxu1 }
 0x1fc   : > { %v2200_v15 = vadd.f32 %v2191_v38, %v2190_v32  ;;  %v2217_v58 = vmul.f32 %v2191_v38, %v2191_v38  ;;  %2243 = vst [vmem:[%s3572_s27 + $0x8] sm:$0xff] %v2191_v38  ;;  %v2105_v61 = vadd.f32 %v2072_v29, %v1987_v4  ;;  %v2660_v20 = vpop.f32.mrb[77].mxu0 }
 0x1fd   : > { %v2075_v21 = vpop.f32.mrb[78].mxu0 }
 0x1fe   : > { %v2226_v40 = vadd.f32 %v2217_v58, %v2216_v48  ;;  %v2122_v42 = vadd.f32 %v3566_v31, %v2105_v61  ;;  %v2106_v52 = vadd.f32 %v2075_v21, %v1988_v36  ;;  %v2661_v51 = vpop.f32.mrb[79].mxu0 }
 0x200   : > { %v2192_v2 = vmul.f32 %v2153_v50, %v2122_v42  ;;  %v2123_v41 = vadd.f32 %v3566_v31, %v2106_v52  ;;  %v1978_v53 = vpop.f32.mrb[84].mxu1 }
 0x201   : > { %v1993_v13 = vadd.f32 %v1978_v53, %v1875_v43  ;;  %v2650_v17 = vpop.f32.mrb[85].mxu1 }
 0x202   : > { %v2201_v19 = vadd.f32 %v2200_v15, %v2192_v2  ;;  %v2218_v55 = vmul.f32 %v2192_v2, %v2192_v2  ;;  %2244 = vst [vmem:[%s3572_s27 + $0x10] sm:$0xff] %v2192_v2  ;;  %v2193_v10 = vmul.f32 %v2158_v18, %v2123_v41  ;;  %v1981_v5 = vpop.f32.mrb[86].mxu1 }
 0x203   : > { %v2080_v22 = vpop.f32.mrb[80].mxu0  ;;  %v1994_v23 = vadd.f32 %v1981_v5, %v1876_v34  ;;  %v2651_v63 = vpop.f32.mrb[87].mxu1 }
 0x204   : > { %v2227_v6 = vadd.f32 %v2226_v40, %v2218_v55  ;;  %v2202_v0 = vadd.f32 %v2201_v19, %v2193_v10  ;;  %v2219_v3 = vmul.f32 %v2193_v10, %v2193_v10  ;;  %2245 = vst [vmem:[%s3572_s27 + $0x18] sm:$0xff] %v2193_v10  ;;  %v2107_v4 = vadd.f32 %v2080_v22, %v1989_v26  ;;  %v2664_v24 = vpop.f32.mrb[81].mxu0  ;;  %v2168_v34 = vpop.permute.xlu1 %2167 }
 0x205   : > { %v2083_v25 = vpop.f32.mrb[82].mxu0  ;;  %v2183_v40 = vpop.permute.xlu0 %2182 }
 0x206   : > { %v2228_v37 = vadd.f32 %v2227_v6, %v2219_v3  ;;  %v2124_v36 = vadd.f32 %v3566_v31, %v2107_v4  ;;  %v2108_v7 = vadd.f32 %v2083_v25, %v1990_v11  ;;  %v2665_v43 = vpop.f32.mrb[83].mxu0 }
 0x208   : > { %v2194_v45 = vmul.f32 %v2163_v27, %v2124_v36  ;;  %v2125_v47 = vadd.f32 %v3566_v31, %v2108_v7  ;;  %v2178_v14 = vpop.permute.xlu1 %2177 }
 0x20a   : > { %v2203_v1 = vadd.f32 %v2202_v0, %v2194_v45  ;;  %v2220_v8 = vmul.f32 %v2194_v45, %v2194_v45  ;;  %2246 = vst [vmem:[%s3572_s27 + $0x20] sm:$0xff] %v2194_v45  ;;  %v2195_v30 = vmul.f32 %v2168_v34, %v2125_v47 }
 0x20b   : > { %v2088_v49 = vpop.f32.mrb[84].mxu0 }
 0x20c   : > { %v2229_v39 = vadd.f32 %v2228_v37, %v2220_v8  ;;  %v2204_v26 = vadd.f32 %v2203_v1, %v2195_v30  ;;  %v2221_v12 = vmul.f32 %v2195_v30, %v2195_v30  ;;  %2247 = vst [vmem:[%s3572_s27 + $0x28] sm:$0xff] %v2195_v30  ;;  %v2109_v56 = vadd.f32 %v2088_v49, %v1991_v9  ;;  %v2668_v57 = vpop.f32.mrb[85].mxu0  ;;  %v2188_v51 = vpop.permute.xlu1 %2187 }
 0x20d   : > { %v2091_v44 = vpop.f32.mrb[86].mxu0 }
 0x20e   : > { %v2230_v11 = vadd.f32 %v2229_v39, %v2221_v12  ;;  %v2126_v46 = vadd.f32 %v3566_v31, %v2109_v56  ;;  %v2110_v60 = vadd.f32 %v2091_v44, %v1992_v33  ;;  %v2669_v35 = vpop.f32.mrb[87].mxu0 }
 0x210   : > { %v2196_v32 = vmul.f32 %v2173_v59, %v2126_v46  ;;  %v2127_v62 = vadd.f32 %v3566_v31, %v2110_v60 }
 0x212   : > { %v2205_v54 = vadd.f32 %v2204_v26, %v2196_v32  ;;  %v2222_v50 = vmul.f32 %v2196_v32, %v2196_v32  ;;  %2248 = vst [vmem:[%s3572_s27 + $0x30] sm:$0xff] %v2196_v32  ;;  %v2197_v38 = vmul.f32 %v2178_v14, %v2127_v62 }
 0x213   : > { %v2096_v28 = vpop.f32.mrb[88].mxu0 }
 0x214   : > { %v2231_v29 = vadd.f32 %v2230_v11, %v2222_v50  ;;  %v2206_v9 = vadd.f32 %v2205_v54, %v2197_v38  ;;  %v2223_v16 = vmul.f32 %v2197_v38, %v2197_v38  ;;  %2249 = vst [vmem:[%s3572_s27 + $0x38] sm:$0xff] %v2197_v38  ;;  %v2111_v48 = vadd.f32 %v2096_v28, %v1993_v13  ;;  %v2672_v15 = vpop.f32.mrb[89].mxu0 }
 0x215   : > { %v2099_v58 = vpop.f32.mrb[90].mxu0 }
 0x216   : > { %v2232_v33 = vadd.f32 %v2231_v29, %v2223_v16  ;;  %v2128_v61 = vadd.f32 %v3566_v31, %v2111_v48  ;;  %v2112_v20 = vadd.f32 %v2099_v58, %v1994_v23  ;;  %v2673_v21 = vpop.f32.mrb[91].mxu0 }
 0x218   : > { %v2198_v42 = vmul.f32 %v2183_v40, %v2128_v61  ;;  %v2129_v52 = vadd.f32 %v3566_v31, %v2112_v20 }
 0x21a   : > { %v2207_v2 = vadd.f32 %v2206_v9, %v2198_v42  ;;  %v2224_v41 = vmul.f32 %v2198_v42, %v2198_v42  ;;  %2250 = vst [vmem:[%s3572_s27 + $0x40] sm:$0xff] %v2198_v42  ;;  %v2199_v53 = vmul.f32 %v2188_v51, %v2129_v52 }
 0x21c   : > { %v2233_v18 = vadd.f32 %v2232_v33, %v2224_v41  ;;  %v2208_v13 = vadd.f32 %v2207_v2, %v2199_v53  ;;  %v2225_v17 = vmul.f32 %v2199_v53, %v2199_v53  ;;  %2251 = vst [vmem:[%s3572_s27 + $0x48] sm:$0xff] %v2199_v53 }
 0x21e   : > { %v2209_v19 = vrot.slane %v2208_v13, 4  ;;  %v2234_v55 = vadd.f32 %v2233_v18, %v2225_v17 }
 0x220   : > { %v2210_v10 = vadd.f32 %v2209_v19, %v2208_v13  ;;  %v2235_v5 = vrot.slane %v2234_v55, 4 }
 0x222   : > { %v2211_v22 = vrot.slane %v2210_v10, 2  ;;  %v2236_v23 = vadd.f32 %v2235_v5, %v2234_v55 }
 0x224   : > { %v2212_v63 = vadd.f32 %v2211_v22, %v2210_v10  ;;  %v2237_v6 = vrot.slane %v2236_v23, 2 }
 0x226   : > { %v2213_v31 = vrot.slane %v2212_v63, 1  ;;  %v2238_v0 = vadd.f32 %v2237_v6, %v2236_v23 }
 0x228   : > { %v2214_v3 = vadd.f32 %v2213_v31, %v2212_v63  ;;  %v2239_v4 = vrot.slane %v2238_v0, 1 }
 0x22a   : > { %2215 = vst [vmem:[%s265_s30] sm:$0x1] %v2214_v3  ;;  %v2240_v24 = vadd.f32 %v2239_v4, %v2238_v0 }
 0x22c   : > { %2241 = vst [vmem:[%s268_s9] sm:$0x1] %v2240_v24 }
 0x22d PF: > { %s17_s21 = sadd.s32 1, %s2696_s21  }
 0x22e   : > { %p14_p4 = scmp.ge.s32.totalorder %s17_s21, 4  }
 0x230   :  { %16 = sbr.rel (!%p14_p4) target bundleno = 1 (0x1), region = 98 }

</bundles_post_ra>
